<compile_context>
chip_gen: v6e
topology: v6e:2x2x1
jax: 0.10.0
libtpu: 0.0.40
codegen_flags: <defaults>
</compile_context>

<pallas_src>
import functools

import jax
import jax.numpy as jnp
from jax import lax
from jax.experimental import pallas as pl
from jax.experimental.pallas import tpu as pltpu

D_IN, H, D_OUT = 784, 100, 10
D_IN_P, H_P, D_OUT_P = 896, 128, 128   # lane-padded feature sizes
BN_EPS = 1e-5                          # nn.BatchNorm1d default


def _round_up(n, m):
    return ((n + m - 1) // m) * m


def mlp_bn_kernel(x_ref,
                  w1_ref, b1_ref, g1_ref, s1_ref,
                  w2_ref, b2_ref, g2_ref, s2_ref,
                  w3_ref, b3_ref, g3_ref, s3_ref,
                  w4_ref, b4_ref,
                  out_ref, *, training, n_valid, tb):
    # Row-validity mask (training only, when the batch was padded up to a multiple of 8).
    if training and n_valid < tb:
        row = lax.broadcasted_iota(jnp.int32, (tb, 1), 0)
        valid = (row < n_valid).astype(jnp.float32)
    else:
        valid = None
    inv_n = 1.0 / float(n_valid)

    def dense_relu(h_bf16, w_ref, b_ref):
        # bf16 x bf16 -> f32 accumulation on the MXU; bias add + ReLU in f32 on the VPU.
        y = jnp.dot(h_bf16, w_ref[...], preferred_element_type=jnp.float32)
        return jnp.maximum(y + b_ref[...], 0.0)

    def batchnorm(h, g_ref, s_ref):
        if training:
            # Batch statistics over the real rows of the whole-batch tile; biased variance,
            # matching PyTorch's normalization in train mode.
            hm = h if valid is None else h * valid
            mean = jnp.sum(hm, axis=0, keepdims=True) * inv_n
            c = h - mean
            cm = c if valid is None else c * valid
            var = jnp.sum(cm * cm, axis=0, keepdims=True) * inv_n
            return c * lax.rsqrt(var + BN_EPS) * g_ref[...] + s_ref[...]
        # Eval mode: running-stat BN folded on host into scale (g_ref) / shift (s_ref).
        return h * g_ref[...] + s_ref[...]

    h = batchnorm(dense_relu(x_ref[...], w1_ref, b1_ref), g1_ref, s1_ref)
    h = batchnorm(dense_relu(h.astype(jnp.bfloat16), w2_ref, b2_ref), g2_ref, s2_ref)
    h = batchnorm(dense_relu(h.astype(jnp.bfloat16), w3_ref, b3_ref), g3_ref, s3_ref)
    logits = dense_relu(h.astype(jnp.bfloat16), w4_ref, b4_ref)

    # Softmax over the 10 real classes; padded columns masked with a large finite negative
    # constant (ReLU already guarantees a finite row max, this keeps it NaN-proof).
    col = lax.broadcasted_iota(jnp.int32, logits.shape, 1)
    logits = jnp.where(col < D_OUT, logits, -1e30)
    m = jnp.max(logits, axis=-1, keepdims=True)
    e = jnp.exp(logits - m)
    out_ref[...] = e / jnp.sum(e, axis=-1, keepdims=True)


def nn_batchnorm_forward(x, params, *, training=False, tb=256):
    B = x.shape[0]
    linears, bns = params["linear"], params["bn"]

    if training:
        # BN needs full-batch statistics -> whole (padded) batch in one grid step.
        tb = _round_up(B, 8)
    else:
        tb = _round_up(min(tb, _round_up(B, 8)), 8)
    B_pad = _round_up(B, tb)

    # Pad batch and features; store activations in bf16 to halve the dominant HBM stream.
    x_p = jnp.zeros((B_pad, D_IN_P), jnp.bfloat16).at[:B, :D_IN].set(x.astype(jnp.bfloat16))

    # Per-layer BN params handed to the kernel:
    #   training -> (gamma, beta); eval -> folded (scale, shift) from running stats.
    bn_args = []
    for gamma, beta, r_mean, r_var in bns:
        if training:
            bn_args.append((gamma, beta))
        else:
            scale = gamma / jnp.sqrt(r_var + BN_EPS)
            bn_args.append((scale, beta - r_mean * scale))

    (w1, b1), (w2, b2), (w3, b3), (w4, b4) = linears
    (g1, s1), (g2, s2), (g3, s3) = bn_args

    full = lambda i: (0, 0)   # weights / biases / BN params: fetched once, VMEM-resident
    tile = lambda i: (i, 0)   # batch-tiled activations

    grid_spec = pltpu.PrefetchScalarGridSpec(
        num_scalar_prefetch=0,
        grid=(B_pad // tb,),
        in_specs=[
            pl.BlockSpec((tb, D_IN_P), tile),
            pl.BlockSpec((D_IN_P, H_P), full), pl.BlockSpec((1, H_P), full),
            pl.BlockSpec((1, H_P), full), pl.BlockSpec((1, H_P), full),
            pl.BlockSpec((H_P, H_P), full), pl.BlockSpec((1, H_P), full),
            pl.BlockSpec((1, H_P), full), pl.BlockSpec((1, H_P), full),
            pl.BlockSpec((H_P, H_P), full), pl.BlockSpec((1, H_P), full),
            pl.BlockSpec((1, H_P), full), pl.BlockSpec((1, H_P), full),
            pl.BlockSpec((H_P, D_OUT_P), full), pl.BlockSpec((1, D_OUT_P), full),
        ],
        out_specs=pl.BlockSpec((tb, D_OUT_P), tile),
    )

    out = pl.pallas_call(
        functools.partial(mlp_bn_kernel, training=training, n_valid=B, tb=tb),
        out_shape=jax.ShapeDtypeStruct((B_pad, D_OUT_P), jnp.float32),
        grid_spec=grid_spec,
        compiler_params=pltpu.CompilerParams(dimension_semantics=("parallel",)),
    )(x_p, w1, b1, g1, s1, w2, b2, g2, s2, w3, b3, g3, s3, w4, b4)
    return out[:B, :D_OUT]


def init_params(key):
    """PyTorch-style init, zero-padded and laid out for the kernel.

    nn.Linear: W, b ~ U(-1/sqrt(fan_in), 1/sqrt(fan_in)); W stored transposed (in, out), bf16.
    nn.BatchNorm1d defaults are gamma=1, beta=0, running_mean=0, running_var=1; random values
    are drawn instead (as after training) so the eval-mode BN path is exercised non-trivially.
    """
    def linear(k, fan_in, fan_out, pad_in, pad_out):
        k1, k2 = jax.random.split(k)
        bound = 1.0 / float(fan_in) ** 0.5
        w = jax.random.uniform(k1, (fan_in, fan_out), jnp.float32, -bound, bound)
        b = jax.random.uniform(k2, (fan_out,), jnp.float32, -bound, bound)
        w_p = jnp.zeros((pad_in, pad_out), jnp.float32).at[:fan_in, :fan_out].set(w)
        b_p = jnp.zeros((1, pad_out), jnp.float32).at[0, :fan_out].set(b)
        return w_p.astype(jnp.bfloat16), b_p

    def bnorm(k, n, pad_n):
        k1, k2, k3, k4 = jax.random.split(k, 4)
        gamma = jax.random.uniform(k1, (n,), jnp.float32, 0.5, 1.5)
        beta = 0.1 * jax.random.normal(k2, (n,), jnp.float32)
        r_mean = 0.5 * jax.random.normal(k3, (n,), jnp.float32)
        r_var = jax.random.uniform(k4, (n,), jnp.float32, 0.5, 1.5)
        pad = lambda v, fill: jnp.full((1, pad_n), fill, jnp.float32).at[0, :n].set(v)
        return pad(gamma, 0.0), pad(beta, 0.0), pad(r_mean, 0.0), pad(r_var, 1.0)

    ks = jax.random.split(key, 7)
    return {
        "linear": [linear(ks[0], D_IN, H, D_IN_P, H_P),
                   linear(ks[1], H, H, H_P, H_P),
                   linear(ks[2], H, H, H_P, H_P),
                   linear(ks[3], H, D_OUT, H_P, D_OUT_P)],
        "bn": [bnorm(ks[4], H, H_P), bnorm(ks[5], H, H_P), bnorm(ks[6], H, H_P)],
    }


def _reference(x, params, *, training):
    """Pure-JAX reference mirroring the kernel numerics (bf16 matmul inputs, f32 accum)."""
    linears, bns = params["linear"], params["bn"]
    h = jnp.zeros((x.shape[0], D_IN_P), jnp.float32).at[:, :D_IN].set(x)
    for i, (w, b) in enumerate(linears):
        h = jnp.dot(h.astype(jnp.bfloat16), w, preferred_element_type=jnp.float32) + b
        h = jnp.maximum(h, 0.0)
        if i < 3:
            gamma, beta, r_mean, r_var = bns[i]
            if training:
                mean = jnp.mean(h, axis=0, keepdims=True)
                var = jnp.mean((h - mean) ** 2, axis=0, keepdims=True)
            else:
                mean, var = r_mean, r_var
            h = (h - mean) / jnp.sqrt(var + BN_EPS) * gamma + beta
    logits = h[:, :D_OUT]
    m = jnp.max(logits, axis=-1, keepdims=True)
    e = jnp.exp(logits - m)
    return e / jnp.sum(e, axis=-1, keepdims=True)


if __name__ == "__main__":
    key = jax.random.PRNGKey(0)
    k_param, k_x1, k_x2 = jax.random.split(key, 3)
    params = init_params(k_param)

    # MNIST-shaped inputs; 256 rows keep the MXU batch tile well utilized.
    B = 256
    x = jax.random.normal(k_x1, (B, D_IN), jnp.float32)

    # Eval mode (running-stat BN folded to scale/shift).
    out_eval = jax.block_until_ready(nn_batchnorm_forward(x, params, training=False))
    ref_eval = _reference(x, params, training=False)
    assert out_eval.shape == (B, D_OUT)
    assert jnp.allclose(jnp.sum(out_eval, axis=-1), 1.0, atol=1e-4)
    assert jnp.allclose(out_eval, ref_eval, atol=3e-3, rtol=3e-2), \
        float(jnp.max(jnp.abs(out_eval - ref_eval)))

    # Training mode (in-kernel full-batch statistics).
    out_train = jax.block_until_ready(nn_batchnorm_forward(x, params, training=True))
    ref_train = _reference(x, params, training=True)
    assert out_train.shape == (B, D_OUT)
    assert jnp.allclose(jnp.sum(out_train, axis=-1), 1.0, atol=1e-4)
    assert jnp.allclose(out_train, ref_train, atol=3e-3, rtol=3e-2), \
        float(jnp.max(jnp.abs(out_train - ref_train)))

    # Non-multiple-of-8 batch: exercises batch padding + masked BN statistics.
    B2 = 100
    x2 = jax.random.normal(k_x2, (B2, D_IN), jnp.float32)
    out2 = jax.block_until_ready(nn_batchnorm_forward(x2, params, training=True))
    ref2 = _reference(x2, params, training=True)
    assert out2.shape == (B2, D_OUT)
    assert jnp.allclose(out2, ref2, atol=3e-3, rtol=3e-2), \
        float(jnp.max(jnp.abs(out2 - ref2)))

    print("KERNEL_OK")
</pallas_src>

<mosaic_0001>
module attributes {stable_mosaic.version = 11 : i64} {
  func.func @mlp_bn_kernel(%arg0: i32, %arg1: memref<256x896xbf16, #tpu.memory_space<vmem>>, %arg2: memref<896x128xbf16, #tpu.memory_space<vmem>>, %arg3: memref<1x128xf32, #tpu.memory_space<vmem>>, %arg4: memref<1x128xf32, #tpu.memory_space<vmem>>, %arg5: memref<1x128xf32, #tpu.memory_space<vmem>>, %arg6: memref<128x128xbf16, #tpu.memory_space<vmem>>, %arg7: memref<1x128xf32, #tpu.memory_space<vmem>>, %arg8: memref<1x128xf32, #tpu.memory_space<vmem>>, %arg9: memref<1x128xf32, #tpu.memory_space<vmem>>, %arg10: memref<128x128xbf16, #tpu.memory_space<vmem>>, %arg11: memref<1x128xf32, #tpu.memory_space<vmem>>, %arg12: memref<1x128xf32, #tpu.memory_space<vmem>>, %arg13: memref<1x128xf32, #tpu.memory_space<vmem>>, %arg14: memref<128x128xbf16, #tpu.memory_space<vmem>>, %arg15: memref<1x128xf32, #tpu.memory_space<vmem>>, %arg16: memref<256x128xf32, #tpu.memory_space<vmem>>) attributes {dimension_semantics = [#tpu.dimension_semantics<parallel>], iteration_bounds = array<i64: 1>, scalar_prefetch = 0 : i64, scratch_operands = 0 : i64, tpu.core_type = #tpu.core_type<tc>, window_params = [{transform_indices = @transform_0, window_bounds = array<i64: 256, 896>}, {pipeline_mode = #tpu.pipeline_mode<synchronous>, transform_indices = @transform_1, window_bounds = array<i64: 896, 128>}, {pipeline_mode = #tpu.pipeline_mode<synchronous>, transform_indices = @transform_2, window_bounds = array<i64: 1, 128>}, {pipeline_mode = #tpu.pipeline_mode<synchronous>, transform_indices = @transform_3, window_bounds = array<i64: 1, 128>}, {pipeline_mode = #tpu.pipeline_mode<synchronous>, transform_indices = @transform_4, window_bounds = array<i64: 1, 128>}, {pipeline_mode = #tpu.pipeline_mode<synchronous>, transform_indices = @transform_5, window_bounds = array<i64: 128, 128>}, {pipeline_mode = #tpu.pipeline_mode<synchronous>, transform_indices = @transform_6, window_bounds = array<i64: 1, 128>}, {pipeline_mode = #tpu.pipeline_mode<synchronous>, transform_indices = @transform_7, window_bounds = array<i64: 1, 128>}, {pipeline_mode = #tpu.pipeline_mode<synchronous>, transform_indices = @transform_8, window_bounds = array<i64: 1, 128>}, {pipeline_mode = #tpu.pipeline_mode<synchronous>, transform_indices = @transform_9, window_bounds = array<i64: 128, 128>}, {pipeline_mode = #tpu.pipeline_mode<synchronous>, transform_indices = @transform_10, window_bounds = array<i64: 1, 128>}, {pipeline_mode = #tpu.pipeline_mode<synchronous>, transform_indices = @transform_11, window_bounds = array<i64: 1, 128>}, {pipeline_mode = #tpu.pipeline_mode<synchronous>, transform_indices = @transform_12, window_bounds = array<i64: 1, 128>}, {pipeline_mode = #tpu.pipeline_mode<synchronous>, transform_indices = @transform_13, window_bounds = array<i64: 128, 128>}, {pipeline_mode = #tpu.pipeline_mode<synchronous>, transform_indices = @transform_14, window_bounds = array<i64: 1, 128>}, {transform_indices = @transform_15, window_bounds = array<i64: 256, 128>}]} {
    %c0 = arith.constant 0 : index
    %c0_0 = arith.constant 0 : index
    %0 = vector.load %arg1[%c0, %c0_0] : memref<256x896xbf16, #tpu.memory_space<vmem>>, vector<256x896xbf16>
    %c0_1 = arith.constant 0 : index
    %c0_2 = arith.constant 0 : index
    %1 = vector.load %arg2[%c0_1, %c0_2] : memref<896x128xbf16, #tpu.memory_space<vmem>>, vector<896x128xbf16>
    %cst = arith.constant dense<0.000000e+00> : vector<256x128xf32>
    %2 = tpu.matmul %0, %1, %cst {dimension_numbers = #tpu.dot_dimension_numbers<[1], [0], [0], [1], [0, 0, 1, 1], [], []>} : vector<256x896xbf16>, vector<896x128xbf16>, vector<256x128xf32> -> vector<256x128xf32>
    %c0_3 = arith.constant 0 : index
    %c0_4 = arith.constant 0 : index
    %3 = vector.load %arg3[%c0_3, %c0_4] : memref<1x128xf32, #tpu.memory_space<vmem>>, vector<1x128xf32>
    %4 = vector.broadcast %3 : vector<1x128xf32> to vector<256x128xf32>
    %5 = arith.addf %2, %4 : vector<256x128xf32>
    %cst_5 = arith.constant 0.000000e+00 : f32
    %6 = vector.broadcast %cst_5 : f32 to vector<256x128xf32>
    %7 = arith.maximumf %5, %6 : vector<256x128xf32>
    %c0_6 = arith.constant 0 : index
    %c0_7 = arith.constant 0 : index
    %8 = vector.load %arg4[%c0_6, %c0_7] : memref<1x128xf32, #tpu.memory_space<vmem>>, vector<1x128xf32>
    %9 = vector.broadcast %8 : vector<1x128xf32> to vector<256x128xf32>
    %10 = arith.mulf %7, %9 : vector<256x128xf32>
    %c0_8 = arith.constant 0 : index
    %c0_9 = arith.constant 0 : index
    %11 = vector.load %arg5[%c0_8, %c0_9] : memref<1x128xf32, #tpu.memory_space<vmem>>, vector<1x128xf32>
    %12 = vector.broadcast %11 : vector<1x128xf32> to vector<256x128xf32>
    %13 = arith.addf %10, %12 : vector<256x128xf32>
    %14 = arith.truncf %13 : vector<256x128xf32> to vector<256x128xbf16>
    %c0_10 = arith.constant 0 : index
    %c0_11 = arith.constant 0 : index
    %15 = vector.load %arg6[%c0_10, %c0_11] : memref<128x128xbf16, #tpu.memory_space<vmem>>, vector<128x128xbf16>
    %cst_12 = arith.constant dense<0.000000e+00> : vector<256x128xf32>
    %16 = tpu.matmul %14, %15, %cst_12 {dimension_numbers = #tpu.dot_dimension_numbers<[1], [0], [0], [1], [0, 0, 1, 1], [], []>} : vector<256x128xbf16>, vector<128x128xbf16>, vector<256x128xf32> -> vector<256x128xf32>
    %c0_13 = arith.constant 0 : index
    %c0_14 = arith.constant 0 : index
    %17 = vector.load %arg7[%c0_13, %c0_14] : memref<1x128xf32, #tpu.memory_space<vmem>>, vector<1x128xf32>
    %18 = vector.broadcast %17 : vector<1x128xf32> to vector<256x128xf32>
    %19 = arith.addf %16, %18 : vector<256x128xf32>
    %cst_15 = arith.constant 0.000000e+00 : f32
    %20 = vector.broadcast %cst_15 : f32 to vector<256x128xf32>
    %21 = arith.maximumf %19, %20 : vector<256x128xf32>
    %c0_16 = arith.constant 0 : index
    %c0_17 = arith.constant 0 : index
    %22 = vector.load %arg8[%c0_16, %c0_17] : memref<1x128xf32, #tpu.memory_space<vmem>>, vector<1x128xf32>
    %23 = vector.broadcast %22 : vector<1x128xf32> to vector<256x128xf32>
    %24 = arith.mulf %21, %23 : vector<256x128xf32>
    %c0_18 = arith.constant 0 : index
    %c0_19 = arith.constant 0 : index
    %25 = vector.load %arg9[%c0_18, %c0_19] : memref<1x128xf32, #tpu.memory_space<vmem>>, vector<1x128xf32>
    %26 = vector.broadcast %25 : vector<1x128xf32> to vector<256x128xf32>
    %27 = arith.addf %24, %26 : vector<256x128xf32>
    %28 = arith.truncf %27 : vector<256x128xf32> to vector<256x128xbf16>
    %c0_20 = arith.constant 0 : index
    %c0_21 = arith.constant 0 : index
    %29 = vector.load %arg10[%c0_20, %c0_21] : memref<128x128xbf16, #tpu.memory_space<vmem>>, vector<128x128xbf16>
    %cst_22 = arith.constant dense<0.000000e+00> : vector<256x128xf32>
    %30 = tpu.matmul %28, %29, %cst_22 {dimension_numbers = #tpu.dot_dimension_numbers<[1], [0], [0], [1], [0, 0, 1, 1], [], []>} : vector<256x128xbf16>, vector<128x128xbf16>, vector<256x128xf32> -> vector<256x128xf32>
    %c0_23 = arith.constant 0 : index
    %c0_24 = arith.constant 0 : index
    %31 = vector.load %arg11[%c0_23, %c0_24] : memref<1x128xf32, #tpu.memory_space<vmem>>, vector<1x128xf32>
    %32 = vector.broadcast %31 : vector<1x128xf32> to vector<256x128xf32>
    %33 = arith.addf %30, %32 : vector<256x128xf32>
    %cst_25 = arith.constant 0.000000e+00 : f32
    %34 = vector.broadcast %cst_25 : f32 to vector<256x128xf32>
    %35 = arith.maximumf %33, %34 : vector<256x128xf32>
    %c0_26 = arith.constant 0 : index
    %c0_27 = arith.constant 0 : index
    %36 = vector.load %arg12[%c0_26, %c0_27] : memref<1x128xf32, #tpu.memory_space<vmem>>, vector<1x128xf32>
    %37 = vector.broadcast %36 : vector<1x128xf32> to vector<256x128xf32>
    %38 = arith.mulf %35, %37 : vector<256x128xf32>
    %c0_28 = arith.constant 0 : index
    %c0_29 = arith.constant 0 : index
    %39 = vector.load %arg13[%c0_28, %c0_29] : memref<1x128xf32, #tpu.memory_space<vmem>>, vector<1x128xf32>
    %40 = vector.broadcast %39 : vector<1x128xf32> to vector<256x128xf32>
    %41 = arith.addf %38, %40 : vector<256x128xf32>
    %42 = arith.truncf %41 : vector<256x128xf32> to vector<256x128xbf16>
    %c0_30 = arith.constant 0 : index
    %c0_31 = arith.constant 0 : index
    %43 = vector.load %arg14[%c0_30, %c0_31] : memref<128x128xbf16, #tpu.memory_space<vmem>>, vector<128x128xbf16>
    %cst_32 = arith.constant dense<0.000000e+00> : vector<256x128xf32>
    %44 = tpu.matmul %42, %43, %cst_32 {dimension_numbers = #tpu.dot_dimension_numbers<[1], [0], [0], [1], [0, 0, 1, 1], [], []>} : vector<256x128xbf16>, vector<128x128xbf16>, vector<256x128xf32> -> vector<256x128xf32>
    %c0_33 = arith.constant 0 : index
    %c0_34 = arith.constant 0 : index
    %45 = vector.load %arg15[%c0_33, %c0_34] : memref<1x128xf32, #tpu.memory_space<vmem>>, vector<1x128xf32>
    %46 = vector.broadcast %45 : vector<1x128xf32> to vector<256x128xf32>
    %47 = arith.addf %44, %46 : vector<256x128xf32>
    %cst_35 = arith.constant 0.000000e+00 : f32
    %48 = vector.broadcast %cst_35 : f32 to vector<256x128xf32>
    %49 = arith.maximumf %47, %48 : vector<256x128xf32>
    %50 = tpu.iota {dimensions = array<i32: 1>} : vector<256x128xi32>
    %c10_i32 = arith.constant 10 : i32
    %51 = vector.broadcast %c10_i32 : i32 to vector<256x128xi32>
    %52 = arith.cmpi slt, %50, %51 : vector<256x128xi32>
    %cst_36 = arith.constant -1.000000e+30 : f32
    %53 = vector.broadcast %cst_36 : f32 to vector<256x128xf32>
    %54 = arith.select %52, %49, %53 : vector<256x128xi1>, vector<256x128xf32>
    %cst_37 = arith.constant dense<0xFF800000> : vector<256xf32>
    %55 = vector.multi_reduction <maximumf>, %54, %cst_37 [1] : vector<256x128xf32> to vector<256xf32>
    %56 = vector.shape_cast %55 : vector<256xf32> to vector<256x1xf32>
    %57 = vector.broadcast %56 : vector<256x1xf32> to vector<256x128xf32>
    %58 = arith.subf %54, %57 : vector<256x128xf32>
    %59 = math.exp %58 : vector<256x128xf32>
    %cst_38 = arith.constant dense<0.000000e+00> : vector<256xf32>
    %60 = vector.multi_reduction <add>, %59, %cst_38 [1] : vector<256x128xf32> to vector<256xf32>
    %61 = vector.shape_cast %60 : vector<256xf32> to vector<256x1xf32>
    %62 = vector.broadcast %61 : vector<256x1xf32> to vector<256x128xf32>
    %63 = arith.divf %59, %62 : vector<256x128xf32>
    %c0_39 = arith.constant 0 : index
    %c0_40 = arith.constant 0 : index
    %64 = vector.load %arg16[%c0_39, %c0_40] : memref<256x128xf32, #tpu.memory_space<vmem>>, vector<256x128xf32>
    tpu.vector_store %arg16[%c0_39, %c0_40], %63 {strides = array<i32>} : memref<256x128xf32, #tpu.memory_space<vmem>>, vector<256x128xf32>,
    return
  }
  func.func @transform_0(%arg0: i32) -> (i32, i32) {
    %c0_i32 = arith.constant 0 : i32
    %c0_i32_0 = arith.constant 0 : i32
    return %arg0, %c0_i32 : i32, i32
  }
  func.func @transform_1(%arg0: i32) -> (i32, i32) {
    %c0_i32 = arith.constant 0 : i32
    %c0_i32_0 = arith.constant 0 : i32
    %c0_i32_1 = arith.constant 0 : i32
    return %c0_i32, %c0_i32_0 : i32, i32
  }
  func.func @transform_2(%arg0: i32) -> (i32, i32) {
    %c0_i32 = arith.constant 0 : i32
    %c0_i32_0 = arith.constant 0 : i32
    %c0_i32_1 = arith.constant 0 : i32
    return %c0_i32, %c0_i32_0 : i32, i32
  }
  func.func @transform_3(%arg0: i32) -> (i32, i32) {
    %c0_i32 = arith.constant 0 : i32
    %c0_i32_0 = arith.constant 0 : i32
    %c0_i32_1 = arith.constant 0 : i32
    return %c0_i32, %c0_i32_0 : i32, i32
  }
  func.func @transform_4(%arg0: i32) -> (i32, i32) {
    %c0_i32 = arith.constant 0 : i32
    %c0_i32_0 = arith.constant 0 : i32
    %c0_i32_1 = arith.constant 0 : i32
    return %c0_i32, %c0_i32_0 : i32, i32
  }
  func.func @transform_5(%arg0: i32) -> (i32, i32) {
    %c0_i32 = arith.constant 0 : i32
    %c0_i32_0 = arith.constant 0 : i32
    %c0_i32_1 = arith.constant 0 : i32
    return %c0_i32, %c0_i32_0 : i32, i32
  }
  func.func @transform_6(%arg0: i32) -> (i32, i32) {
    %c0_i32 = arith.constant 0 : i32
    %c0_i32_0 = arith.constant 0 : i32
    %c0_i32_1 = arith.constant 0 : i32
    return %c0_i32, %c0_i32_0 : i32, i32
  }
  func.func @transform_7(%arg0: i32) -> (i32, i32) {
    %c0_i32 = arith.constant 0 : i32
    %c0_i32_0 = arith.constant 0 : i32
    %c0_i32_1 = arith.constant 0 : i32
    return %c0_i32, %c0_i32_0 : i32, i32
  }
  func.func @transform_8(%arg0: i32) -> (i32, i32) {
    %c0_i32 = arith.constant 0 : i32
    %c0_i32_0 = arith.constant 0 : i32
    %c0_i32_1 = arith.constant 0 : i32
    return %c0_i32, %c0_i32_0 : i32, i32
  }
  func.func @transform_9(%arg0: i32) -> (i32, i32) {
    %c0_i32 = arith.constant 0 : i32
    %c0_i32_0 = arith.constant 0 : i32
    %c0_i32_1 = arith.constant 0 : i32
    return %c0_i32, %c0_i32_0 : i32, i32
  }
  func.func @transform_10(%arg0: i32) -> (i32, i32) {
    %c0_i32 = arith.constant 0 : i32
    %c0_i32_0 = arith.constant 0 : i32
    %c0_i32_1 = arith.constant 0 : i32
    return %c0_i32, %c0_i32_0 : i32, i32
  }
  func.func @transform_11(%arg0: i32) -> (i32, i32) {
    %c0_i32 = arith.constant 0 : i32
    %c0_i32_0 = arith.constant 0 : i32
    %c0_i32_1 = arith.constant 0 : i32
    return %c0_i32, %c0_i32_0 : i32, i32
  }
  func.func @transform_12(%arg0: i32) -> (i32, i32) {
    %c0_i32 = arith.constant 0 : i32
    %c0_i32_0 = arith.constant 0 : i32
    %c0_i32_1 = arith.constant 0 : i32
    return %c0_i32, %c0_i32_0 : i32, i32
  }
  func.func @transform_13(%arg0: i32) -> (i32, i32) {
    %c0_i32 = arith.constant 0 : i32
    %c0_i32_0 = arith.constant 0 : i32
    %c0_i32_1 = arith.constant 0 : i32
    return %c0_i32, %c0_i32_0 : i32, i32
  }
  func.func @transform_14(%arg0: i32) -> (i32, i32) {
    %c0_i32 = arith.constant 0 : i32
    %c0_i32_0 = arith.constant 0 : i32
    %c0_i32_1 = arith.constant 0 : i32
    return %c0_i32, %c0_i32_0 : i32, i32
  }
  func.func @transform_15(%arg0: i32) -> (i32, i32) {
    %c0_i32 = arith.constant 0 : i32
    %c0_i32_0 = arith.constant 0 : i32
    return %arg0, %c0_i32 : i32, i32
  }
}

</mosaic_0001>

<bundles_post_ra>
// kernel: tpu_custom_call.1
= control target key start
LH: loop header
LB: loop body
LE: loop exit
PB: predicated region body
PF: predicated region fallthrough
CT: control target
= control target key end

     0   :  { %20 = vsyncpa [#allocation3], 0  ;;  %s5648_s0 = inlined_call_operand.hbm [shape: bf16[256,896], index: 0, kind: input, shape index: {}]   ;;  %s5649_s1 = inlined_call_operand.hbm [shape: bf16[896,128], index: 1, kind: input, shape index: {}]   ;;  %s5650_s2 = inlined_call_operand.vmem [shape: f32[1,128], index: 2, kind: input, shape index: {}]   ;;  %s5651_s3 = inlined_call_operand.vmem [shape: f32[1,128], index: 3, kind: input, shape index: {}]   ;;  %s5652_s4 = inlined_call_operand.vmem [shape: f32[1,128], index: 4, kind: input, shape index: {}]   ;;  %s5653_s5 = inlined_call_operand.hbm [shape: bf16[128,128], index: 5, kind: input, shape index: {}]   ;;  %s5654_s6 = inlined_call_operand.vmem [shape: f32[1,128], index: 6, kind: input, shape index: {}]   ;;  %s5655_s7 = inlined_call_operand.vmem [shape: f32[1,128], index: 7, kind: input, shape index: {}]   ;;  %s5656_s8 = inlined_call_operand.vmem [shape: f32[1,128], index: 8, kind: input, shape index: {}]   ;;  %s5657_s9 = inlined_call_operand.hbm [shape: bf16[128,128], index: 9, kind: input, shape index: {}]   ;;  %s5658_s10 = inlined_call_operand.vmem [shape: f32[1,128], index: 10, kind: input, shape index: {}]   ;;  %s5659_s11 = inlined_call_operand.vmem [shape: f32[1,128], index: 11, kind: input, shape index: {}]   ;;  %s5660_s12 = inlined_call_operand.vmem [shape: f32[1,128], index: 12, kind: input, shape index: {}]   ;;  %s5661_s13 = inlined_call_operand.hbm [shape: bf16[128,128], index: 13, kind: input, shape index: {}]   ;;  %s5662_s14 = inlined_call_operand.vmem [shape: f32[1,128], index: 14, kind: input, shape index: {}]   ;;  %s5663_s15 = inlined_call_operand.hbm [shape: f32[256,128], index: 15, kind: output, shape index: {}]  }
   0x1   :  { %21 = vsyncpa [#allocation6], 0 }
   0x2   :  { %22 = vsyncpa [#allocation9], 0 }
   0x3   :  { %23 = vsyncpa [#allocation4], 0  ;;  %s4737_s18 = smov [#allocation5]  }
   0x4   :  { %s41_s19 = sshll.u32 %s4737_s18, 4  ;;  %s42_s19 = int_to_ptr.vmem [resolvable:$true] %s41_s19 }
   0x5   :  { %s4617_s20 = scalar_lea.vmem %s42_s19, 7168  ;;  %p4622_p1 = scmp.lt.s32.totalorder %s42_s19, %s42_s19 }
   0x6   :  { %p4618_p0 = scmp.ne.s32.totalorder %s42_s19, %s4617_s20  ;;  %p4623_p2 = scmp.lt.s32.totalorder %s4617_s20, %s4617_s20 }
   0x8   :  { %p4624_p3 = por %p4623_p2, %p4622_p1 }
   0xa   :  { %p4625_p4 = pnand %p4624_p3, %p4618_p0 }
   0xc   :  { %4628 = shalt.err (!%p4625_p4)
}
   0xd   :  { %s4738_s21 = smov 64   ;;  %s4739_s22 = smov 4  }
   0xe   :  { %47 = dma.hbm_to_vmem [thread:$0]  %s5649_s1, 7168, %s42_s19, [#allocation6], %s4738_s21, %s4738_s21, %s4739_s22  }
   0xf   :  { %s4740_s25 = smov [#allocation8]   ;;  %s4741_s27 = smov [#allocation2]  }
  0x10   :  { %s77_s26 = sshll.u32 %s4740_s25, 4  ;;  %s29_s28 = sshll.u32 %s4741_s27, 4  ;;  %s78_s26 = int_to_ptr.vmem [resolvable:$true] %s77_s26  ;;  %s30_s28 = int_to_ptr.vmem [resolvable:$true] %s29_s28 }
  0x11   :  { %s4637_s29 = scalar_lea.vmem %s78_s26, 1024  ;;  %p4642_p6 = scmp.lt.s32.totalorder %s78_s26, %s78_s26 }
  0x12   :  { %p4638_p5 = scmp.ne.s32.totalorder %s78_s26, %s4637_s29  ;;  %p4643_p7 = scmp.lt.s32.totalorder %s4637_s29, %s4637_s29 }
  0x14   :  { %p4644_p8 = por %p4643_p7, %p4642_p6 }
  0x16   :  { %p4645_p9 = pnand %p4644_p8, %p4638_p5 }
  0x18   :  { %4648 = shalt.err (!%p4645_p9)
}
  0x19   :  { %83 = dma.hbm_to_vmem [thread:$0]  %s5657_s9, 1024, %s78_s26, [#allocation9], %s4738_s21, %s4738_s21, %s4739_s22  }
  0x1a   :  { %s4657_s1 = scalar_lea.vmem %s30_s28, 14336  ;;  %p4662_p11 = scmp.lt.s32.totalorder %s30_s28, %s30_s28 }
  0x1b   :  { %p4658_p10 = scmp.ne.s32.totalorder %s30_s28, %s4657_s1  ;;  %p4663_p12 = scmp.lt.s32.totalorder %s4657_s1, %s4657_s1 }
  0x1d   :  { %p4664_p13 = por %p4663_p12, %p4662_p11 }
  0x1f   :  { %p4665_p0 = pnand %p4664_p13, %p4658_p10 }
  0x21   :  { %4668 = shalt.err (!%p4665_p0)
}
  0x22   :  { %s4742_s17 = smov 448   ;;  %s4743_s18 = smov 28  }
  0x23   :  { %35 = dma.hbm_to_vmem [thread:$0]  %s5648_s0, 14336, %s30_s28, [#allocation3], %s4742_s17, %s4742_s17, %s4743_s18  }
  0x24   :  { %s4744_s23 = smov [#allocation7]   ;;  %s4745_s25 = smov [#allocation10]  }
  0x25   :  { %s59_s24 = sshll.u32 %s4744_s23, 4  ;;  %s95_s27 = sshll.u32 %s4745_s25, 4  ;;  %s60_s24 = int_to_ptr.vmem [resolvable:$true] %s59_s24  ;;  %s96_s27 = int_to_ptr.vmem [resolvable:$true] %s95_s27 }
  0x26   :  { %s4677_s9 = scalar_lea.vmem %s60_s24, 1024  ;;  %p4682_p2 = scmp.lt.s32.totalorder %s60_s24, %s60_s24 }
  0x27   :  { %p4678_p1 = scmp.ne.s32.totalorder %s60_s24, %s4677_s9  ;;  %p4683_p3 = scmp.lt.s32.totalorder %s4677_s9, %s4677_s9 }
  0x29   :  { %p4684_p4 = por %p4683_p3, %p4682_p2 }
  0x2b   :  { %p4685_p5 = pnand %p4684_p4, %p4678_p1 }
  0x2d   :  { %4688 = shalt.err (!%p4685_p5)
}
  0x2e   :  { %65 = dma.hbm_to_vmem [thread:$0]  %s5653_s5, 1024, %s60_s24, [#allocation6], %s4738_s21, %s4738_s21, %s4739_s22  }
  0x2f   :  { %s4697_s0 = scalar_lea.vmem %s96_s27, 1024  ;;  %p4702_p7 = scmp.lt.s32.totalorder %s96_s27, %s96_s27 }
  0x30   :  { %p4698_p6 = scmp.ne.s32.totalorder %s96_s27, %s4697_s0  ;;  %p4703_p8 = scmp.lt.s32.totalorder %s4697_s0, %s4697_s0 }
  0x32   :  { %p4704_p9 = por %p4703_p8, %p4702_p7 }
  0x34   :  { %p4705_p10 = pnand %p4704_p9, %p4698_p6 }
  0x36   :  { %4708 = shalt.err (!%p4705_p10)
}
  0x37   :  { %101 = dma.hbm_to_vmem [thread:$0]  %s5661_s13, 1024, %s96_s27, [#allocation9], %s4738_s21, %s4738_s21, %s4739_s22  }
  0x38   :  { %4729 = dma.done.wait [#allocation3], 14336  }
  0x39   :  { %4730 = vsyncadd [#allocation3], 4294952960 }
  0x3a   :  { %4731 = dma.done.wait [#allocation6], 8192  }
  0x3b   :  { %4732 = vsyncadd [#allocation6], 4294959104 }
  0x3c   :  { %4733 = dma.done.wait [#allocation9], 2048  }
  0x3d   :  { %4734 = vsyncadd [#allocation9], 4294965248  ;;  %v4241_v0 = vld [vmem:[#allocation5 + $0x78] sm:$0xff]   ;;  %v4245_v4 = vld [vmem:[#allocation5 + $0x70] sm:$0xff]  }
  0x3e   :  { %v4242_v1 = vld [vmem:[#allocation5 + $0x38] sm:$0xff]   ;;  %3605 = vmatprep.subr.bf16.mxu0 %v4241_v0  ;;  %v4246_v5 = vld [vmem:[#allocation5 + $0x30] sm:$0xff]   ;;  %v4249_v8 = vld [vmem:[#allocation5 + $0x68] sm:$0xff]  }
  0x3f   :  { %v4243_v2 = vld [vmem:[#allocation5 + $0xf8] sm:$0xff]   ;;  %3606 = vmatpush3.bf16.msra.mxu0 %v4242_v1  ;;  %v4247_v6 = vld [vmem:[#allocation5 + $0xf0] sm:$0xff]   ;;  %v4250_v9 = vld [vmem:[#allocation5 + $0x28] sm:$0xff]  }
  0x40   :  { %v4244_v3 = vld [vmem:[#allocation5 + $0xb8] sm:$0xff]   ;;  %3717 = vmatprep.subr.bf16.mxu1 %v4243_v2  ;;  %3607 = vmatprep.subr.bf16.mxu0 %v4245_v4  ;;  %v4248_v7 = vld [vmem:[#allocation5 + $0xb0] sm:$0xff]   ;;  %v4251_v10 = vld [vmem:[#allocation5 + $0xe8] sm:$0xff]  }
  0x41   :  { %3718 = vmatpush3.bf16.msra.mxu1 %v4244_v3  ;;  %v4252_v11 = vld [vmem:[#allocation5 + $0xa8] sm:$0xff]   ;;  %v4253_v12 = vld [vmem:[#allocation5 + $0x60] sm:$0xff]   ;;  %v4257_v16 = vld [vmem:[#allocation5 + $0x58] sm:$0xff]  }
  0x42   :  { %3719 = vmatprep.subr.bf16.mxu1 %v4247_v6  ;;  %v4254_v13 = vld [vmem:[#allocation5 + $0x20] sm:$0xff]   ;;  %v4258_v17 = vld [vmem:[#allocation5 + $0x18] sm:$0xff]   ;;  %v4261_v20 = vld [vmem:[#allocation5 + $0x50] sm:$0xff]  }
  0x43   :  { %3608 = vmatpush3.bf16.msra.mxu0 %v4246_v5  ;;  %v4255_v14 = vld [vmem:[#allocation5 + $0xe0] sm:$0xff]   ;;  %v4259_v18 = vld [vmem:[#allocation5 + $0xd8] sm:$0xff]   ;;  %v4262_v21 = vld [vmem:[#allocation5 + $0x10] sm:$0xff]  }
  0x44   :  { %3609 = vmatprep.subr.bf16.mxu0 %v4249_v8  ;;  %v4256_v15 = vld [vmem:[#allocation5 + $0xa0] sm:$0xff]   ;;  %v4260_v19 = vld [vmem:[#allocation5 + $0x98] sm:$0xff]   ;;  %v4263_v22 = vld [vmem:[#allocation5 + $0xd0] sm:$0xff]  }
  0x45   :  { %3720 = vmatpush3.bf16.msra.mxu1 %v4248_v7  ;;  %v4264_v23 = vld [vmem:[#allocation5 + $0x90] sm:$0xff]   ;;  %v4265_v24 = vld [vmem:[#allocation5 + $0x48] sm:$0xff]   ;;  %v4269_v28 = vld [vmem:[#allocation5 + $0x40] sm:$0xff]  }
  0x46   :  { %3721 = vmatprep.subr.bf16.mxu1 %v4251_v10  ;;  %v4266_v25 = vld [vmem:[#allocation5 + $0x8] sm:$0xff]   ;;  %v4270_v29 = vld [vmem:[#allocation5] sm:$0xff]   ;;  %v4276_v34 = vld [vmem:[#allocation5 + $0x178] sm:$0xff]  }
  0x47   :  { %3610 = vmatpush3.bf16.msra.mxu0 %v4250_v9  ;;  %v4267_v26 = vld [vmem:[#allocation5 + $0xc8] sm:$0xff]   ;;  %v4271_v30 = vld [vmem:[#allocation5 + $0xc0] sm:$0xff]   ;;  %v4280_v37 = vld [vmem:[#allocation5 + $0x138] sm:$0xff]  }
  0x48   :  { %3611 = vmatprep.subr.bf16.mxu0 %v4253_v12  ;;  %v4268_v27 = vld [vmem:[#allocation5 + $0x88] sm:$0xff]   ;;  %v4272_v31 = vld [vmem:[#allocation2] ss:$28 sps:$4 sm:$0xff]   ;;  %v4283_v40 = vld [vmem:[#allocation2 + $0x38] ss:$28 sps:$4 sm:$0xff]  }
  0x49   :  { %3722 = vmatpush3.bf16.msra.mxu1 %v4252_v11  ;;  %v4274_v32 = vld [vmem:[#allocation2 + $0x4] ss:$28 sps:$4 sm:$0xff]   ;;  %v4279_v36 = vld [vmem:[#allocation2 + $0xc] ss:$28 sps:$4 sm:$0xff]   ;;  %v4281_v38 = vld [vmem:[#allocation2 + $0x3c] ss:$28 sps:$4 sm:$0xff]  }
  0x4a   :  { %3723 = vmatprep.subr.bf16.mxu1 %v4255_v14  ;;  %v4275_v33 = vld [vmem:[#allocation5 + $0x80] sm:$0xff]   ;;  %1311 = vmatprep.mubr.bf16.mxu0 %v4274_v32  ;;  %v4287_v41 = vld [vmem:[#allocation2 + $0x74] ss:$28 sps:$4 sm:$0xff]   ;;  %v4291_v44 = vld [vmem:[#allocation2 + $0x7c] ss:$28 sps:$4 sm:$0xff]  }
  0x4b   :  { %3612 = vmatpush3.bf16.msra.mxu0 %v4254_v13  ;;  %v4277_v35 = vld [vmem:[#allocation2 + $0x8] ss:$28 sps:$4 sm:$0xff]   ;;  %1472 = vmatprep.mubr.bf16.mxu1 %v4279_v36  ;;  %v4290_v42 = vld [vmem:[#allocation5 + $0x170] sm:$0xff]   ;;  %v4286_v43 = vld [vmem:[#allocation2 + $0x40] ss:$28 sps:$4 sm:$0xff]  }
  0x4c   :  { %3613 = vmatprep.subr.bf16.mxu0 %v4257_v16  ;;  %v4284_v39 = vld [vmem:[#allocation2 + $0x44] ss:$28 sps:$4 sm:$0xff]   ;;  %v4293_v45 = vld [vmem:[#allocation5 + $0x130] sm:$0xff]   ;;  %v4295_v47 = vld [vmem:[#allocation2 + $0xac] ss:$28 sps:$4 sm:$0xff]  }
  0x4d   :  { %3724 = vmatpush3.bf16.msra.mxu1 %v4256_v15  ;;  %v4289_v46 = vld [vmem:[#allocation2 + $0x70] ss:$28 sps:$4 sm:$0xff]   ;;  %v4294_v49 = vld [vmem:[#allocation2 + $0x78] ss:$28 sps:$4 sm:$0xff]   ;;  %v4297_v52 = vld [vmem:[#allocation2 + $0xa8] ss:$28 sps:$4 sm:$0xff]  }
  0x4e   :  { %3725 = vmatprep.subr.bf16.mxu1 %v4259_v18  ;;  %v4304_v48 = vld [vmem:[#allocation5 + $0x168] sm:$0xff]   ;;  %v4298_v51 = vld [vmem:[#allocation2 + $0xb4] ss:$28 sps:$4 sm:$0xff]   ;;  %v4301_v53 = vld [vmem:[#allocation2 + $0xe4] ss:$28 sps:$4 sm:$0xff]  }
  0x4f   :  { %3614 = vmatpush3.bf16.msra.mxu0 %v4258_v17  ;;  %v4307_v50 = vld [vmem:[#allocation5 + $0x128] sm:$0xff]   ;;  %v4318_v54 = vld [vmem:[#allocation5 + $0x160] sm:$0xff]   ;;  %v4332_v59 = vld [vmem:[#allocation5 + $0x158] sm:$0xff]  }
  0x50   :  { %3615 = vmatprep.subr.bf16.mxu0 %v4261_v20  ;;  %v4300_v55 = vld [vmem:[#allocation2 + $0xb0] ss:$28 sps:$4 sm:$0xff]   ;;  %v4321_v56 = vld [vmem:[#allocation5 + $0x120] sm:$0xff]   ;;  %v4309_v60 = vld [vmem:[#allocation2 + $0x11c] ss:$28 sps:$4 sm:$0xff]  }
  0x51   :  { %3726 = vmatpush3.bf16.msra.mxu1 %v4260_v19  ;;  %v4305_v57 = vld [vmem:[#allocation2 + $0xec] ss:$28 sps:$4 sm:$0xff]   ;;  %v4303_v58 = vld [vmem:[#allocation2 + $0xe0] ss:$28 sps:$4 sm:$0xff]   ;;  %v4311_v1 = vld [vmem:[#allocation2 + $0x118] ss:$28 sps:$4 sm:$0xff]  }
  0x52   :  { %3727 = vmatprep.subr.bf16.mxu1 %v4263_v22  ;;  %v4308_v61 = vld [vmem:[#allocation2 + $0xe8] ss:$28 sps:$4 sm:$0xff]   ;;  %v4335_v62 = vld [vmem:[#allocation5 + $0x118] sm:$0xff]   ;;  %v4347_v2 = vld [vmem:[#allocation5 + $0x150] sm:$0xff]  }
  0x53   :  { %3616 = vmatpush3.bf16.msra.mxu0 %v4262_v21  ;;  %v4337_v63 = vld [vmem:[#allocation5 + $0x1b8] sm:$0xff]   ;;  %v4312_v0 = vld [vmem:[#allocation2 + $0x124] ss:$28 sps:$4 sm:$0xff]   ;;  %v4315_v4 = vld [vmem:[#allocation2 + $0x154] ss:$28 sps:$4 sm:$0xff]  }
  0x54   :  { %3617 = vmatprep.subr.bf16.mxu0 %v4265_v24  ;;  %v4314_v3 = vld [vmem:[#allocation2 + $0x120] ss:$28 sps:$4 sm:$0xff]   ;;  %v4350_v5 = vld [vmem:[#allocation5 + $0x110] sm:$0xff]   ;;  %v4323_v9 = vld [vmem:[#allocation2 + $0x18c] ss:$28 sps:$4 sm:$0xff]  }
  0x55   :  { %3728 = vmatpush3.bf16.msra.mxu1 %v4264_v23  ;;  %v4319_v6 = vld [vmem:[#allocation2 + $0x15c] ss:$28 sps:$4 sm:$0xff]   ;;  %v4352_v7 = vld [vmem:[#allocation5 + $0x1b0] sm:$0xff]   ;;  %v4362_v10 = vld [vmem:[#allocation5 + $0x148] sm:$0xff]  }
  0x56   :  { %3729 = vmatprep.subr.bf16.mxu1 %v4267_v26  ;;  %v4317_v8 = vld [vmem:[#allocation2 + $0x150] ss:$28 sps:$4 sm:$0xff]   ;;  %v4322_v11 = vld [vmem:[#allocation2 + $0x158] ss:$28 sps:$4 sm:$0xff]   ;;  %v4325_v15 = vld [vmem:[#allocation2 + $0x188] ss:$28 sps:$4 sm:$0xff]  }
  0x57   :  { %3618 = vmatpush3.bf16.msra.mxu0 %v4266_v25  ;;  %v4326_v12 = vld [vmem:[#allocation2 + $0x194] ss:$28 sps:$4 sm:$0xff]   ;;  %v4365_v13 = vld [vmem:[#allocation5 + $0x108] sm:$0xff]   ;;  %v4329_v16 = vld [vmem:[#allocation2 + $0x1c4] ss:$28 sps:$4 sm:$0xff]  }
  0x58   :  { %3619 = vmatprep.subr.bf16.mxu0 %v4269_v28  ;;  %v4367_v14 = vld [vmem:[#allocation5 + $0x1a8] sm:$0xff]   ;;  %v4377_v17 = vld [vmem:[#allocation5 + $0x140] sm:$0xff]   ;;  %v4383_v22 = vld [vmem:[#allocation5 + $0x198] sm:$0xff]  }
  0x59   :  { %3730 = vmatpush3.bf16.msra.mxu1 %v4268_v27  ;;  %v4378_v18 = vld [vmem:[#allocation5 + $0x1a0] sm:$0xff]   ;;  %v4328_v19 = vld [vmem:[#allocation2 + $0x190] ss:$28 sps:$4 sm:$0xff]   ;;  %v4338_v25 = vld [vmem:[#allocation2 + $0x1fc] ss:$28 sps:$4 sm:$0xff]  }
  0x5a   :  { %3731 = vmatprep.subr.bf16.mxu1 %v4271_v30  ;;  %v4333_v20 = vld [vmem:[#allocation2 + $0x1cc] ss:$28 sps:$4 sm:$0xff]   ;;  %v4381_v21 = vld [vmem:[#allocation5 + $0x100] sm:$0xff]   ;;  %v4387_v24 = vld [vmem:[#allocation5 + $0x190] sm:$0xff]  }
  0x5b   :  { %3620 = vmatpush3.bf16.msra.mxu0 %v4270_v29  ;;  %v4331_v23 = vld [vmem:[#allocation2 + $0x1c0] ss:$28 sps:$4 sm:$0xff]   ;;  %v4391_v26 = vld [vmem:[#allocation5 + $0x188] sm:$0xff]   ;;  %v4340_v30 = vld [vmem:[#allocation2 + $0x1f8] ss:$28 sps:$4 sm:$0xff]  }
  0x5c   :  { %3829 = vmatprep.subr.bf16.mxu0 %v4276_v34  ;;  %v4336_v27 = vld [vmem:[#allocation2 + $0x1c8] ss:$28 sps:$4 sm:$0xff]   ;;  %v4343_v32 = vld [vmem:[#allocation2 + $0x200] ss:$28 sps:$4 sm:$0xff]   ;;  %v4346_v34 = vld [vmem:[#allocation2 + $0x230] ss:$28 sps:$4 sm:$0xff]  }
  0x5d   :  { %3732 = vmatpush3.bf16.msra.mxu1 %v4275_v33  ;;  %v4341_v28 = vld [vmem:[#allocation2 + $0x204] ss:$28 sps:$4 sm:$0xff]   ;;  %v4348_v33 = vld [vmem:[#allocation2 + $0x23c] ss:$28 sps:$4 sm:$0xff]  }
  0x5e   :  { %1312 = vmatmul.mubr.bf16.vlgmr.msra.gmra.mxu0 %v4272_v31  ;;  %4037 = vmatprep.subr.bf16.mxu1 %v4337_v63  ;;  %v4395_v29 = vld [vmem:[#allocation5 + $0x180] sm:$0xff]   ;;  %v4344_v31 = vld [vmem:[#allocation2 + $0x234] ss:$28 sps:$4 sm:$0xff]  }
  0x5f   :  { %3830 = vmatpush3.bf16.msra.mxu0 %v4280_v37  ;;  %1319 = vmatprep.mubr.bf16.mxu0 %v4281_v38  ;;  %v4351_v36 = vld [vmem:[#allocation2 + $0x238] ss:$28 sps:$4 sm:$0xff]   ;;  %v4355_v38 = vld [vmem:[#allocation2 + $0x268] ss:$28 sps:$4 sm:$0xff]  }
  0x60   :  { %1473 = vmatmul.mubr.bf16.vlgmr.msra.gmra.mxu1 %v4277_v35  ;;  %3831 = vmatprep.subr.bf16.mxu0 %v4290_v42  ;;  %v4353_v35 = vld [vmem:[#allocation2 + $0x26c] ss:$28 sps:$4 sm:$0xff]   ;;  %v4356_v37 = vld [vmem:[#allocation2 + $0x274] ss:$28 sps:$4 sm:$0xff]   ;;  %v4361_v42 = vld [vmem:[#allocation2 + $0x2a0] ss:$28 sps:$4 sm:$0xff]  }
  0x61   :  { %1480 = vmatprep.mubr.bf16.mxu1 %v4284_v39  ;;  %4038 = vmatpush3.bf16.msra.mxu1 %v4337_v63  ;;  %v4359_v39 = vld [vmem:[#allocation2 + $0x2a4] ss:$28 sps:$4 sm:$0xff]  }
  0x62   :  { %4039 = vmatprep.subr.bf16.mxu1 %v4352_v7  ;;  %v4401_v63 = vld [vmem:[#allocation2 + $0x84] ss:$28 sps:$4 sm:$0xff]  }
  0x63   :  { %3832 = vmatpush3.bf16.msra.mxu0 %v4293_v45  ;;  %v4371_v45 = vld [vmem:[#allocation2 + $0x2e4] ss:$28 sps:$4 sm:$0xff]  }
  0x64   :  { %3833 = vmatprep.subr.bf16.mxu0 %v4304_v48  ;;  %v4373_v48 = vld [vmem:[#allocation2 + $0x2e0] ss:$28 sps:$4 sm:$0xff]  }
  0x65   :  { %4040 = vmatpush3.bf16.msra.mxu1 %v4352_v7  ;;  %v4409_v7 = vld [vmem:[#allocation2 + $0xf4] ss:$28 sps:$4 sm:$0xff]  }
  0x66   :  { %1320 = vmatmul.mubr.bf16.gmra.mxu0 %v4283_v40  ;;  %4041 = vmatprep.subr.bf16.mxu1 %v4367_v14  ;;  %v4358_v40 = vld [vmem:[#allocation2 + $0x270] ss:$28 sps:$4 sm:$0xff]  }
  0x67   :  { %1327 = vmatprep.mubr.bf16.mxu0 %v4287_v41  ;;  %3834 = vmatpush3.bf16.msra.mxu0 %v4307_v50  ;;  %v4363_v41 = vld [vmem:[#allocation2 + $0x2ac] ss:$28 sps:$4 sm:$0xff]  }
  0x68   :  { %1481 = vmatmul.mubr.bf16.gmra.mxu1 %v4286_v43  ;;  %3835 = vmatprep.subr.bf16.mxu0 %v4318_v54  ;;  %v4368_v43 = vld [vmem:[#allocation2 + $0x2dc] ss:$28 sps:$4 sm:$0xff]   ;;  %v4376_v50 = vld [vmem:[#allocation2 + $0x310] ss:$28 sps:$4 sm:$0xff]   ;;  %v4386_v54 = vld [vmem:[#allocation2 + $0x348] ss:$28 sps:$4 sm:$0xff]  }
  0x69   :  { %1488 = vmatprep.mubr.bf16.mxu1 %v4291_v44  ;;  %4042 = vmatpush3.bf16.msra.mxu1 %v4367_v14  ;;  %v4366_v44 = vld [vmem:[#allocation2 + $0x2a8] ss:$28 sps:$4 sm:$0xff]  }
  0x6a   :  { %4043 = vmatprep.subr.bf16.mxu1 %v4378_v18  ;;  %v4416_v14 = vld [vmem:[#allocation2 + $0x128] ss:$28 sps:$4 sm:$0xff]  }
  0x6b   :  { %3836 = vmatpush3.bf16.msra.mxu0 %v4321_v56  ;;  %v4390_v56 = vld [vmem:[#allocation2 + $0x350] ss:$28 sps:$4 sm:$0xff]  }
  0x6c   :  { %3837 = vmatprep.subr.bf16.mxu0 %v4332_v59  ;;  %v4398_v59 = vld [vmem:[#allocation2 + $0x4c] ss:$28 sps:$4 sm:$0xff]  }
  0x6d   :  { %4044 = vmatpush3.bf16.msra.mxu1 %v4378_v18  ;;  %v4419_v18 = vld [vmem:[#allocation2 + $0x160] ss:$28 sps:$4 sm:$0xff]  }
  0x6e   :  { %1328 = vmatmul.mubr.bf16.gmra.mxu0 %v4289_v46  ;;  %4045 = vmatprep.subr.bf16.mxu1 %v4383_v22  ;;  %v4370_v46 = vld [vmem:[#allocation2 + $0x2d8] ss:$28 sps:$4 sm:$0xff]  }
  0x6f   :  { %1335 = vmatprep.mubr.bf16.mxu0 %v4295_v47  ;;  %3838 = vmatpush3.bf16.msra.mxu0 %v4335_v62  ;;  %v4374_v47 = vld [vmem:[#allocation2 + $0x314] ss:$28 sps:$4 sm:$0xff]   ;;  %v4400_v62 = vld [vmem:[#allocation2 + $0x48] ss:$28 sps:$4 sm:$0xff]  }
  0x70   :  { %1489 = vmatmul.mubr.bf16.gmra.mxu1 %v4294_v49  ;;  %3839 = vmatprep.subr.bf16.mxu0 %v4347_v2  ;;  %v4379_v49 = vld [vmem:[#allocation2 + $0x31c] ss:$28 sps:$4 sm:$0xff]  }
  0x71   :  { %1496 = vmatprep.mubr.bf16.mxu1 %v4298_v51  ;;  %4046 = vmatpush3.bf16.msra.mxu1 %v4383_v22  ;;  %v4384_v51 = vld [vmem:[#allocation2 + $0x34c] ss:$28 sps:$4 sm:$0xff]   ;;  %v4403_v2 = vld [vmem:[#allocation2 + $0x80] ss:$28 sps:$4 sm:$0xff]   ;;  %v4424_v22 = vld [vmem:[#allocation2 + $0x198] ss:$28 sps:$4 sm:$0xff]  }
  0x72   :  { %4047 = vmatprep.subr.bf16.mxu1 %v4387_v24 }
  0x73   :  { %3840 = vmatpush3.bf16.msra.mxu0 %v4350_v5  ;;  %v4420_v5 = vld [vmem:[#allocation2 + $0x168] ss:$28 sps:$4 sm:$0xff]  }
  0x74   :  { %3841 = vmatprep.subr.bf16.mxu0 %v4362_v10  ;;  %v4411_v10 = vld [vmem:[#allocation2 + $0xf0] ss:$28 sps:$4 sm:$0xff]  }
  0x75   :  { %4048 = vmatpush3.bf16.msra.mxu1 %v4387_v24  ;;  %v4453_v24 = vld [vmem:[#allocation2 + $0x360] ss:$28 sps:$4 sm:$0xff]  }
  0x76   :  { %1336 = vmatmul.mubr.bf16.gmra.mxu0 %v4297_v52  ;;  %4049 = vmatprep.subr.bf16.mxu1 %v4391_v26  ;;  %v4382_v52 = vld [vmem:[#allocation2 + $0x318] ss:$28 sps:$4 sm:$0xff]  }
  0x77   :  { %1343 = vmatprep.mubr.bf16.mxu0 %v4301_v53  ;;  %3842 = vmatpush3.bf16.msra.mxu0 %v4365_v13  ;;  %v4388_v53 = vld [vmem:[#allocation2 + $0x354] ss:$28 sps:$4 sm:$0xff]   ;;  %v4436_v13 = vld [vmem:[#allocation2 + $0x248] ss:$28 sps:$4 sm:$0xff]  }
  0x78   :  { %1497 = vmatmul.mubr.bf16.gmra.mxu1 %v4300_v55  ;;  %3843 = vmatprep.subr.bf16.mxu0 %v4377_v17  ;;  %v4394_v55 = vld [vmem:[#allocation2 + $0x14] ss:$28 sps:$4 sm:$0xff]  }
  0x79   :  { %1504 = vmatprep.mubr.bf16.mxu1 %v4305_v57  ;;  %4050 = vmatpush3.bf16.msra.mxu1 %v4391_v26  ;;  %v4396_v57 = vld [vmem:[#allocation2 + $0x18] ss:$28 sps:$4 sm:$0xff]  }
  0x7a   :  { %4051 = vmatprep.subr.bf16.mxu1 %v4395_v29  ;;  %v4444_v17 = vld [vmem:[#allocation2 + $0x2b8] ss:$28 sps:$4 sm:$0xff]  }
  0x7b   :  { %3844 = vmatpush3.bf16.msra.mxu0 %v4381_v21  ;;  %v4452_v21 = vld [vmem:[#allocation2 + $0x328] ss:$28 sps:$4 sm:$0xff]   ;;  %v4457_v26 = vld [vmem:[#allocation7 + $0x38] sm:$0xff]  }
  0x7d   :  { %4052 = vmatpush3.bf16.msra.mxu1 %v4395_v29  ;;  %v4458_v29 = vld [vmem:[#allocation7 + $0x30] sm:$0xff]  }
  0x7e   :  { %1344 = vmatmul.mubr.bf16.gmra.mxu0 %v4303_v58  ;;  %v4392_v58 = vld [vmem:[#allocation2 + $0x10] ss:$28 sps:$4 sm:$0xff]   ;;  %4085 = vmatprep.subr.bf16.mxu1 %v4457_v26 }
  0x7f   :  { %1351 = vmatprep.mubr.bf16.mxu0 %v4309_v60  ;;  %v4397_v60 = vld [vmem:[#allocation2 + $0x50] ss:$28 sps:$4 sm:$0xff]  }
  0x80   :  { %1505 = vmatmul.mubr.bf16.gmra.mxu1 %v4308_v61  ;;  %v4404_v61 = vld [vmem:[#allocation2 + $0x88] ss:$28 sps:$4 sm:$0xff]  }
  0x81   :  { %1512 = vmatprep.mubr.bf16.mxu1 %v4312_v0  ;;  %v4405_v0 = vld [vmem:[#allocation2 + $0xc0] ss:$28 sps:$4 sm:$0xff]  }
  0x86   :  { %1352 = vmatmul.mubr.bf16.gmra.mxu0 %v4311_v1  ;;  %v4412_v1 = vld [vmem:[#allocation2 + $0xf8] ss:$28 sps:$4 sm:$0xff]  }
  0x87   :  { %1359 = vmatprep.mubr.bf16.mxu0 %v4315_v4  ;;  %v4413_v4 = vld [vmem:[#allocation2 + $0x130] ss:$28 sps:$4 sm:$0xff]  }
  0x88   :  { %1513 = vmatmul.mubr.bf16.gmra.mxu1 %v4314_v3  ;;  %v4406_v3 = vld [vmem:[#allocation2 + $0xbc] ss:$28 sps:$4 sm:$0xff]  }
  0x89   :  { %1520 = vmatprep.mubr.bf16.mxu1 %v4319_v6  ;;  %v4408_v6 = vld [vmem:[#allocation2 + $0xb8] ss:$28 sps:$4 sm:$0xff]  }
  0x8e   :  { %1360 = vmatmul.mubr.bf16.gmra.mxu0 %v4317_v8  ;;  %v4421_v8 = vld [vmem:[#allocation2 + $0x1a0] ss:$28 sps:$4 sm:$0xff]  }
  0x8f   :  { %1367 = vmatprep.mubr.bf16.mxu0 %v4323_v9  ;;  %v4428_v9 = vld [vmem:[#allocation2 + $0x1d8] ss:$28 sps:$4 sm:$0xff]  }
  0x90   :  { %1521 = vmatmul.mubr.bf16.gmra.mxu1 %v4322_v11  ;;  %v4414_v11 = vld [vmem:[#allocation2 + $0x12c] ss:$28 sps:$4 sm:$0xff]  }
  0x91   :  { %1528 = vmatprep.mubr.bf16.mxu1 %v4326_v12  ;;  %v4429_v12 = vld [vmem:[#allocation2 + $0x210] ss:$28 sps:$4 sm:$0xff]  }
  0x96   :  { %1368 = vmatmul.mubr.bf16.gmra.mxu0 %v4325_v15  ;;  %v4417_v15 = vld [vmem:[#allocation2 + $0x164] ss:$28 sps:$4 sm:$0xff]  }
  0x97   :  { %1375 = vmatprep.mubr.bf16.mxu0 %v4329_v16  ;;  %v4437_v16 = vld [vmem:[#allocation2 + $0x280] ss:$28 sps:$4 sm:$0xff]  }
  0x98   :  { %1529 = vmatmul.mubr.bf16.gmra.mxu1 %v4328_v19  ;;  %v4422_v19 = vld [vmem:[#allocation2 + $0x19c] ss:$28 sps:$4 sm:$0xff]  }
  0x99   :  { %1536 = vmatprep.mubr.bf16.mxu1 %v4333_v20  ;;  %v4445_v20 = vld [vmem:[#allocation2 + $0x2f0] ss:$28 sps:$4 sm:$0xff]  }
  0x9e   :  { %1376 = vmatmul.mubr.bf16.gmra.mxu0 %v4331_v23  ;;  %v4425_v23 = vld [vmem:[#allocation2 + $0x1d4] ss:$28 sps:$4 sm:$0xff]  }
  0x9f   :  { %1383 = vmatprep.mubr.bf16.mxu0 %v4338_v25  ;;  %v4427_v25 = vld [vmem:[#allocation2 + $0x1d0] ss:$28 sps:$4 sm:$0xff]  }
  0xa0   :  { %1537 = vmatmul.mubr.bf16.gmra.mxu1 %v4336_v27  ;;  %v4430_v27 = vld [vmem:[#allocation2 + $0x20c] ss:$28 sps:$4 sm:$0xff]  }
  0xa1   :  { %1544 = vmatprep.mubr.bf16.mxu1 %v4341_v28 }
  0xa6   :  { %1384 = vmatmul.mubr.bf16.gmra.mxu0 %v4340_v30  ;;  %v4859_v30 = vld [vmem:[%s5650_s2] ss:$0 sm:$0xff] }
  0xa7   :  { %1391 = vmatprep.mubr.bf16.mxu0 %v4344_v31 }
  0xa8   :  { %1545 = vmatmul.mubr.bf16.gmra.mxu1 %v4343_v32 }
  0xa9   :  { %1552 = vmatprep.mubr.bf16.mxu1 %v4348_v33 }
  0xae   :  { %1392 = vmatmul.mubr.bf16.gmra.mxu0 %v4346_v34 }
  0xaf   :  { %1399 = vmatprep.mubr.bf16.mxu0 %v4353_v35  ;;  %v4432_v35 = vld [vmem:[#allocation2 + $0x208] ss:$28 sps:$4 sm:$0xff]  }
  0xb0   :  { %1553 = vmatmul.mubr.bf16.gmra.mxu1 %v4351_v36  ;;  %v4459_v36 = vld [vmem:[#allocation7 + $0x28] sm:$0xff]  }
  0xb1   :  { %1560 = vmatprep.mubr.bf16.mxu1 %v4356_v37 }
  0xb6   :  { %1400 = vmatmul.mubr.bf16.gmra.mxu0 %v4355_v38 }
  0xb7   :  { %1407 = vmatprep.mubr.bf16.mxu0 %v4359_v39  ;;  %v4433_v39 = vld [vmem:[#allocation2 + $0x244] ss:$28 sps:$4 sm:$0xff]  }
  0xb8   :  { %1561 = vmatmul.mubr.bf16.gmra.mxu1 %v4358_v40 }
  0xb9   :  { %1568 = vmatprep.mubr.bf16.mxu1 %v4363_v41 }
  0xbe   :  { %1408 = vmatmul.mubr.bf16.gmra.mxu0 %v4361_v42 }
  0xbf   :  { %1415 = vmatprep.mubr.bf16.mxu0 %v4368_v43 }
  0xc0   :  { %1569 = vmatmul.mubr.bf16.gmra.mxu1 %v4366_v44 }
  0xc1   :  { %1576 = vmatprep.mubr.bf16.mxu1 %v4371_v45 }
  0xc6   :  { %1416 = vmatmul.mubr.bf16.gmra.mxu0 %v4370_v46  ;;  %v4460_v46 = vld [vmem:[#allocation7 + $0x20] sm:$0xff]  }
  0xc7   :  { %1423 = vmatprep.mubr.bf16.mxu0 %v4374_v47 }
  0xc8   :  { %1577 = vmatmul.mubr.bf16.gmra.mxu1 %v4373_v48 }
  0xc9   :  { %1584 = vmatprep.mubr.bf16.mxu1 %v4379_v49 }
  0xce   :  { %1424 = vmatmul.mubr.bf16.gmra.mxu0 %v4376_v50 }
  0xcf   :  { %1431 = vmatprep.mubr.bf16.mxu0 %v4384_v51 }
  0xd0   :  { %1585 = vmatmul.mubr.bf16.gmra.mxu1 %v4382_v52 }
  0xd1   :  { %1592 = vmatprep.mubr.bf16.mxu1 %v4388_v53 }
  0xd6   :  { %1432 = vmatmul.mubr.bf16.gmra.mxu0 %v4386_v54 }
  0xd7   :  { %1633 = vmatprep.mubr.bf16.mxu0 %v4394_v55  ;;  %v4435_v55 = vld [vmem:[#allocation2 + $0x240] ss:$28 sps:$4 sm:$0xff]  }
  0xd8   :  { %1593 = vmatmul.mubr.bf16.gmra.mxu1 %v4390_v56  ;;  %v4461_v56 = vld [vmem:[#allocation7 + $0x18] sm:$0xff]  }
  0xd9   :  { %4053 = vmatprep.mubr.bf16.mxu1 %v4396_v57 }
  0xde   :  { %1634 = vmatmul.mubr.bf16.vlgmr.msra.gmra.mxu0 %v4392_v58 }
  0xdf   :  { %1641 = vmatprep.mubr.bf16.mxu0 %v4398_v59  ;;  %v4438_v59 = vld [vmem:[#allocation2 + $0x27c] ss:$28 sps:$4 sm:$0xff]  }
  0xe0   :  { %4054 = vmatmul.mubr.bf16.vlgmr.msra.gmra.mxu1 %v4397_v60 }
  0xe1   :  { %4057 = vmatprep.mubr.bf16.mxu1 %v4404_v61  ;;  %4086 = vmatpush3.bf16.msra.mxu1 %v4457_v26 }
  0xe2   :  { %4087 = vmatprep.subr.bf16.mxu1 %v4458_v29 }
  0xe5   :  { %4088 = vmatpush3.bf16.msra.mxu1 %v4458_v29 }
  0xe6   :  { %1642 = vmatmul.mubr.bf16.gmra.mxu0 %v4400_v62  ;;  %4089 = vmatprep.subr.bf16.mxu1 %v4459_v36 }
  0xe7   :  { %1649 = vmatprep.mubr.bf16.mxu0 %v4401_v63 }
  0xe8   :  { %4058 = vmatmul.mubr.bf16.gmra.mxu1 %v4405_v0 }
  0xe9   :  { %4061 = vmatprep.mubr.bf16.mxu1 %v4412_v1  ;;  %4090 = vmatpush3.bf16.msra.mxu1 %v4459_v36 }
  0xea   :  { %4091 = vmatprep.subr.bf16.mxu1 %v4460_v46 }
  0xed   :  { %4092 = vmatpush3.bf16.msra.mxu1 %v4460_v46 }
  0xee   :  { %1650 = vmatmul.mubr.bf16.gmra.mxu0 %v4403_v2  ;;  %4093 = vmatprep.subr.bf16.mxu1 %v4461_v56  ;;  %v4462_v2 = vld [vmem:[#allocation7 + $0x10] sm:$0xff]  }
  0xef   :  { %1657 = vmatprep.mubr.bf16.mxu0 %v4406_v3 }
  0xf0   :  { %4062 = vmatmul.mubr.bf16.gmra.mxu1 %v4413_v4 }
  0xf1   :  { %4065 = vmatprep.mubr.bf16.mxu1 %v4420_v5  ;;  %4094 = vmatpush3.bf16.msra.mxu1 %v4461_v56 }
  0xf2   :  { %4095 = vmatprep.subr.bf16.mxu1 %v4462_v2 }
  0xf5   :  { %4096 = vmatpush3.bf16.msra.mxu1 %v4462_v2 }
  0xf6   :  { %1658 = vmatmul.mubr.bf16.gmra.mxu0 %v4408_v6 }
  0xf7   :  { %1665 = vmatprep.mubr.bf16.mxu0 %v4409_v7 }
  0xf8   :  { %4066 = vmatmul.mubr.bf16.gmra.mxu1 %v4421_v8 }
  0xf9   :  { %4069 = vmatprep.mubr.bf16.mxu1 %v4428_v9 }
  0xfe   :  { %1666 = vmatmul.mubr.bf16.gmra.mxu0 %v4411_v10 }
  0xff   :  { %1673 = vmatprep.mubr.bf16.mxu0 %v4414_v11  ;;  %v4440_v11 = vld [vmem:[#allocation2 + $0x278] ss:$28 sps:$4 sm:$0xff]  }
 0x100   :  { %4070 = vmatmul.mubr.bf16.gmra.mxu1 %v4429_v12  ;;  %v4463_v12 = vld [vmem:[#allocation7 + $0x8] sm:$0xff]  }
 0x101   :  { %4073 = vmatprep.mubr.bf16.mxu1 %v4436_v13  ;;  %4097 = vmatprep.subr.bf16.mxu1 %v4463_v12 }
 0x102   :  { %4098 = vmatpush3.bf16.msra.mxu1 %v4463_v12 }
 0x106   :  { %1674 = vmatmul.mubr.bf16.gmra.mxu0 %v4416_v14 }
 0x107   :  { %1681 = vmatprep.mubr.bf16.mxu0 %v4417_v15  ;;  %v4443_v15 = vld [vmem:[#allocation2 + $0x2b4] ss:$28 sps:$4 sm:$0xff]  }
 0x108   :  { %4074 = vmatmul.mubr.bf16.gmra.mxu1 %v4437_v16 }
 0x109   :  { %4077 = vmatprep.mubr.bf16.mxu1 %v4444_v17 }
 0x10e   :  { %1682 = vmatmul.mubr.bf16.gmra.mxu0 %v4419_v18 }
 0x10f   :  { %1689 = vmatprep.mubr.bf16.mxu0 %v4422_v19 }
 0x110   :  { %4078 = vmatmul.mubr.bf16.gmra.mxu1 %v4445_v20 }
 0x111   :  { %4081 = vmatprep.mubr.bf16.mxu1 %v4452_v21 }
 0x116   :  { %1690 = vmatmul.mubr.bf16.gmra.mxu0 %v4424_v22  ;;  %v4464_v22 = vld [vmem:[#allocation7] sm:$0xff]  }
 0x117   :  { %1697 = vmatprep.mubr.bf16.mxu0 %v4425_v23  ;;  %4099 = vmatprep.subr.bf16.mxu1 %v4464_v22 }
 0x118   :  { %4082 = vmatmul.mubr.bf16.gmra.mxu1 %v4453_v24 }
 0x119   :  { %4100 = vmatpush3.bf16.msra.mxu1 %v4464_v22 }
 0x11e   :  { %v3621_v28 = vpop.f32.mrf.mxu0  ;;  %1698 = vmatmul.mubr.bf16.gmra.mxu0 %v4427_v25 }
 0x11f   :  { %1705 = vmatprep.mubr.bf16.mxu0 %v4430_v27 }
 0x120   :  { %v3622_v31 = vpop.f32.mrf.mxu0  ;;  %v3733_v33 = vpop.f32.mrf.mxu1 }
 0x121   :  { %v3623_v32 = vadd.f32 %v3622_v31, %v3621_v28 }
 0x122   :  { %v3624_v34 = vpop.f32.mrf.mxu0  ;;  %v3734_v38 = vpop.f32.mrf.mxu1 }
 0x123   :  { %v1314_v37 = vadd.f32 %v3623_v32, %v4859_v30  ;;  %v3735_v40 = vadd.f32 %v3734_v38, %v3733_v33  ;;  %v4441_v32 = vld [vmem:[#allocation2 + $0x2b0] ss:$28 sps:$4 sm:$0xff]  }
 0x124   :  { %v3625_v41 = vpop.f32.mrf.mxu0  ;;  %v3736_v43 = vpop.f32.mrf.mxu1 }
 0x125   :  { %v3626_v42 = vadd.f32 %v3625_v41, %v3624_v34  ;;  %v4862_v44 = vadd.f32 %v3735_v40, %v1314_v37 }
 0x126   :  { %v3627_v45 = vpop.f32.mrf.mxu0  ;;  %1706 = vmatmul.mubr.bf16.gmra.mxu0 %v4432_v35  ;;  %v3737_v48 = vpop.f32.mrf.mxu1  ;;  %v4448_v35 = vld [vmem:[#allocation2 + $0x2ec] ss:$28 sps:$4 sm:$0xff]  }
 0x127   :  { %v1317_v47 = vadd.f32 %v3626_v42, %v4859_v30  ;;  %1713 = vmatprep.mubr.bf16.mxu0 %v4433_v39  ;;  %v3738_v49 = vadd.f32 %v3737_v48, %v3736_v43 }
 0x128   :  { %v3628_v50 = vpop.f32.mrf.mxu0  ;;  %v3739_v52 = vpop.f32.mrf.mxu1 }
 0x129   :  { %v3629_v51 = vadd.f32 %v3628_v50, %v3627_v45  ;;  %v4865_v53 = vadd.f32 %v3738_v49, %v1317_v47 }
 0x12a   :  { %v3630_v54 = vpop.f32.mrf.mxu0  ;;  %v3740_v58 = vpop.f32.mrf.mxu1 }
 0x12b   :  { %v1322_v57 = vadd.f32 %v3629_v51, %v4859_v30  ;;  %v3741_v60 = vadd.f32 %v3740_v58, %v3739_v52  ;;  %v4446_v51 = vld [vmem:[#allocation2 + $0x2e8] ss:$28 sps:$4 sm:$0xff]  }
 0x12c   :  { %v3631_v61 = vpop.f32.mrf.mxu0  ;;  %v3742_v63 = vpop.f32.mrf.mxu1 }
 0x12d   :  { %v3632_v62 = vadd.f32 %v3631_v61, %v3630_v54  ;;  %v4868_v0 = vadd.f32 %v3741_v60, %v1322_v57 }
 0x12e   :  { %v3633_v1 = vpop.f32.mrf.mxu0  ;;  %1714 = vmatmul.mubr.bf16.gmra.mxu0 %v4435_v55  ;;  %v3743_v4 = vpop.f32.mrf.mxu1  ;;  %v4451_v55 = vld [vmem:[#allocation2 + $0x324] ss:$28 sps:$4 sm:$0xff]  }
 0x12f   :  { %v1325_v3 = vadd.f32 %v3632_v62, %v4859_v30  ;;  %1721 = vmatprep.mubr.bf16.mxu0 %v4438_v59  ;;  %v3744_v5 = vadd.f32 %v3743_v4, %v3742_v63 }
 0x130   :  { %v3634_v6 = vpop.f32.mrf.mxu0  ;;  %v3745_v8 = vpop.f32.mrf.mxu1 }
 0x131   :  { %v3635_v7 = vadd.f32 %v3634_v6, %v3633_v1  ;;  %v4871_v9 = vadd.f32 %v3744_v5, %v1325_v3 }
 0x132   :  { %v3636_v10 = vpop.f32.mrf.mxu0  ;;  %v3746_v14 = vpop.f32.mrf.mxu1 }
 0x133   :  { %v1330_v13 = vadd.f32 %v3635_v7, %v4859_v30  ;;  %v3747_v16 = vadd.f32 %v3746_v14, %v3745_v8  ;;  %v4449_v7 = vld [vmem:[#allocation2 + $0x320] ss:$28 sps:$4 sm:$0xff]  }
 0x134   :  { %v3637_v17 = vpop.f32.mrf.mxu0  ;;  %v3748_v19 = vpop.f32.mrf.mxu1 }
 0x135   :  { %v3638_v18 = vadd.f32 %v3637_v17, %v3636_v10  ;;  %v4874_v20 = vadd.f32 %v3747_v16, %v1330_v13 }
 0x136   :  { %v3639_v21 = vpop.f32.mrf.mxu0  ;;  %1722 = vmatmul.mubr.bf16.gmra.mxu0 %v4440_v11  ;;  %v3749_v24 = vpop.f32.mrf.mxu1  ;;  %v4456_v11 = vld [vmem:[#allocation2 + $0x35c] ss:$28 sps:$4 sm:$0xff]  }
 0x137   :  { %v1333_v23 = vadd.f32 %v3638_v18, %v4859_v30  ;;  %1729 = vmatprep.mubr.bf16.mxu0 %v4443_v15  ;;  %v3750_v25 = vadd.f32 %v3749_v24, %v3748_v19 }
 0x138   :  { %v3640_v26 = vpop.f32.mrf.mxu0  ;;  %v3751_v28 = vpop.f32.mrf.mxu1 }
 0x139   :  { %v3641_v27 = vadd.f32 %v3640_v26, %v3639_v21  ;;  %v4877_v29 = vadd.f32 %v3750_v25, %v1333_v23 }
 0x13a   :  { %v3642_v31 = vpop.f32.mrf.mxu0  ;;  %v3752_v34 = vpop.f32.mrf.mxu1 }
 0x13b   :  { %v1338_v33 = vadd.f32 %v3641_v27, %v4859_v30  ;;  %v3753_v36 = vadd.f32 %v3752_v34, %v3751_v28  ;;  %v4454_v27 = vld [vmem:[#allocation2 + $0x358] ss:$28 sps:$4 sm:$0xff]  }
 0x13c   :  { %v3643_v37 = vpop.f32.mrf.mxu0  ;;  %v3754_v39 = vpop.f32.mrf.mxu1 }
 0x13d   :  { %v3644_v38 = vadd.f32 %v3643_v37, %v3642_v31  ;;  %v4880_v40 = vadd.f32 %v3753_v36, %v1338_v33 }
 0x13e   :  { %v3645_v41 = vpop.f32.mrf.mxu0  ;;  %1730 = vmatmul.mubr.bf16.gmra.mxu0 %v4441_v32  ;;  %v3755_v43 = vpop.f32.mrf.mxu1 }
 0x13f   :  { %v1341_v42 = vadd.f32 %v3644_v38, %v4859_v30  ;;  %1737 = vmatprep.mubr.bf16.mxu0 %v4448_v35  ;;  %v3756_v45 = vadd.f32 %v3755_v43, %v3754_v39 }
 0x140   :  { %v3646_v46 = vpop.f32.mrf.mxu0  ;;  %v3757_v48 = vpop.f32.mrf.mxu1 }
 0x141   :  { %v3647_v47 = vadd.f32 %v3646_v46, %v3645_v41  ;;  %v4883_v49 = vadd.f32 %v3756_v45, %v1341_v42 }
 0x142   :  { %v3648_v50 = vpop.f32.mrf.mxu0  ;;  %v3758_v54 = vpop.f32.mrf.mxu1 }
 0x143   :  { %v1346_v52 = vadd.f32 %v3647_v47, %v4859_v30  ;;  %v3759_v56 = vadd.f32 %v3758_v54, %v3757_v48 }
 0x144   :  { %v3649_v57 = vpop.f32.mrf.mxu0  ;;  %v3760_v59 = vpop.f32.mrf.mxu1 }
 0x145   :  { %v3650_v58 = vadd.f32 %v3649_v57, %v3648_v50  ;;  %v4886_v60 = vadd.f32 %v3759_v56, %v1346_v52 }
 0x146   :  { %v3651_v61 = vpop.f32.mrf.mxu0  ;;  %1738 = vmatmul.mubr.bf16.gmra.mxu0 %v4446_v51  ;;  %v3761_v63 = vpop.f32.mrf.mxu1 }
 0x147   :  { %v1349_v62 = vadd.f32 %v3650_v58, %v4859_v30  ;;  %1745 = vmatprep.mubr.bf16.mxu0 %v4451_v55  ;;  %v3762_v1 = vadd.f32 %v3761_v63, %v3760_v59 }
 0x148   :  { %v3652_v2 = vpop.f32.mrf.mxu0  ;;  %v3763_v4 = vpop.f32.mrf.mxu1 }
 0x149   :  { %v3653_v3 = vadd.f32 %v3652_v2, %v3651_v61  ;;  %v4889_v5 = vadd.f32 %v3762_v1, %v1349_v62 }
 0x14a   :  { %v3654_v6 = vpop.f32.mrf.mxu0  ;;  %v3764_v10 = vpop.f32.mrf.mxu1 }
 0x14b   :  { %v1354_v8 = vadd.f32 %v3653_v3, %v4859_v30  ;;  %v3765_v12 = vadd.f32 %v3764_v10, %v3763_v4 }
 0x14c   :  { %v3655_v13 = vpop.f32.mrf.mxu0  ;;  %v3766_v15 = vpop.f32.mrf.mxu1 }
 0x14d   :  { %v3656_v14 = vadd.f32 %v3655_v13, %v3654_v6  ;;  %v4892_v16 = vadd.f32 %v3765_v12, %v1354_v8 }
 0x14e   :  { %v3657_v17 = vpop.f32.mrf.mxu0  ;;  %1746 = vmatmul.mubr.bf16.gmra.mxu0 %v4449_v7  ;;  %v3767_v19 = vpop.f32.mrf.mxu1 }
 0x14f   :  { %v1357_v18 = vadd.f32 %v3656_v14, %v4859_v30  ;;  %1753 = vmatprep.mubr.bf16.mxu0 %v4456_v11  ;;  %v3768_v21 = vadd.f32 %v3767_v19, %v3766_v15 }
 0x150   :  { %v3658_v22 = vpop.f32.mrf.mxu0  ;;  %v3769_v24 = vpop.f32.mrf.mxu1 }
 0x151   :  { %v3659_v23 = vadd.f32 %v3658_v22, %v3657_v17  ;;  %v4895_v25 = vadd.f32 %v3768_v21, %v1357_v18 }
 0x152   :  { %v3660_v26 = vpop.f32.mrf.mxu0  ;;  %v3770_v31 = vpop.f32.mrf.mxu1 }
 0x153   :  { %v1362_v28 = vadd.f32 %v3659_v23, %v4859_v30  ;;  %v3771_v32 = vadd.f32 %v3770_v31, %v3769_v24 }
 0x154   :  { %v3661_v33 = vpop.f32.mrf.mxu0  ;;  %v3772_v35 = vpop.f32.mrf.mxu1 }
 0x155   :  { %v3662_v34 = vadd.f32 %v3661_v33, %v3660_v26  ;;  %v4898_v36 = vadd.f32 %v3771_v32, %v1362_v28 }
 0x156   :  { %v3663_v37 = vpop.f32.mrf.mxu0  ;;  %1754 = vmatmul.mubr.bf16.gmra.mxu0 %v4454_v27  ;;  %v3773_v39 = vpop.f32.mrf.mxu1 }
 0x157   :  { %v1365_v38 = vadd.f32 %v3662_v34, %v4859_v30  ;;  %v3774_v41 = vadd.f32 %v3773_v39, %v3772_v35 }
 0x158   :  { %v3664_v42 = vpop.f32.mrf.mxu0  ;;  %v3775_v45 = vpop.f32.mrf.mxu1 }
 0x159   :  { %v3665_v43 = vadd.f32 %v3664_v42, %v3663_v37  ;;  %v4901_v46 = vadd.f32 %v3774_v41, %v1365_v38 }
 0x15a   :  { %v3666_v47 = vpop.f32.mrf.mxu0  ;;  %v3776_v50 = vpop.f32.mrf.mxu1 }
 0x15b   :  { %v1370_v48 = vadd.f32 %v3665_v43, %v4859_v30  ;;  %v3777_v51 = vadd.f32 %v3776_v50, %v3775_v45 }
 0x15c   :  { %v3667_v52 = vpop.f32.mrf.mxu0  ;;  %v3778_v55 = vpop.f32.mrf.mxu1 }
 0x15d   :  { %v3668_v54 = vadd.f32 %v3667_v52, %v3666_v47  ;;  %v4904_v56 = vadd.f32 %v3777_v51, %v1370_v48 }
 0x15e   :  { %v3669_v57 = vpop.f32.mrf.mxu0  ;;  %v3779_v59 = vpop.f32.mrf.mxu1 }
 0x15f   :  { %v1373_v58 = vadd.f32 %v3668_v54, %v4859_v30  ;;  %v3780_v61 = vadd.f32 %v3779_v59, %v3778_v55 }
 0x160   :  { %v3670_v62 = vpop.f32.mrf.mxu0  ;;  %v3781_v1 = vpop.f32.mrf.mxu1 }
 0x161   :  { %v3671_v63 = vadd.f32 %v3670_v62, %v3669_v57  ;;  %v4907_v2 = vadd.f32 %v3780_v61, %v1373_v58 }
 0x162   :  { %v3672_v3 = vpop.f32.mrf.mxu0  ;;  %v3782_v6 = vpop.f32.mrf.mxu1 }
 0x163   :  { %v1378_v4 = vadd.f32 %v3671_v63, %v4859_v30  ;;  %v3783_v7 = vadd.f32 %v3782_v6, %v3781_v1 }
 0x164   :  { %v3673_v8 = vpop.f32.mrf.mxu0  ;;  %v3784_v11 = vpop.f32.mrf.mxu1 }
 0x165   :  { %v3674_v10 = vadd.f32 %v3673_v8, %v3672_v3  ;;  %v4910_v12 = vadd.f32 %v3783_v7, %v1378_v4 }
 0x166   :  { %v3675_v13 = vpop.f32.mrf.mxu0  ;;  %v3785_v15 = vpop.f32.mrf.mxu1 }
 0x167   :  { %v1381_v14 = vadd.f32 %v3674_v10, %v4859_v30  ;;  %v3786_v17 = vadd.f32 %v3785_v15, %v3784_v11 }
 0x168   :  { %v3676_v18 = vpop.f32.mrf.mxu0  ;;  %v3787_v21 = vpop.f32.mrf.mxu1 }
 0x169   :  { %v3677_v19 = vadd.f32 %v3676_v18, %v3675_v13  ;;  %v4913_v22 = vadd.f32 %v3786_v17, %v1381_v14 }
 0x16a   :  { %v3678_v23 = vpop.f32.mrf.mxu0  ;;  %v3788_v26 = vpop.f32.mrf.mxu1 }
 0x16b   :  { %v1386_v24 = vadd.f32 %v3677_v19, %v4859_v30  ;;  %v3789_v27 = vadd.f32 %v3788_v26, %v3787_v21 }
 0x16c   :  { %v3679_v28 = vpop.f32.mrf.mxu0  ;;  %v3790_v32 = vpop.f32.mrf.mxu1 }
 0x16d   :  { %v3680_v31 = vadd.f32 %v3679_v28, %v3678_v23  ;;  %v4916_v33 = vadd.f32 %v3789_v27, %v1386_v24 }
 0x16e   :  { %v3681_v34 = vpop.f32.mrf.mxu0  ;;  %v3791_v37 = vpop.f32.mrf.mxu1 }
 0x16f   :  { %v1389_v35 = vadd.f32 %v3680_v31, %v4859_v30  ;;  %v3792_v38 = vadd.f32 %v3791_v37, %v3790_v32 }
 0x170   :  { %v3682_v39 = vpop.f32.mrf.mxu0  ;;  %v3793_v42 = vpop.f32.mrf.mxu1 }
 0x171   :  { %v3683_v41 = vadd.f32 %v3682_v39, %v3681_v34  ;;  %v4919_v43 = vadd.f32 %v3792_v38, %v1389_v35 }
 0x172   :  { %v3684_v45 = vpop.f32.mrf.mxu0  ;;  %v3794_v48 = vpop.f32.mrf.mxu1 }
 0x173   :  { %v1394_v47 = vadd.f32 %v3683_v41, %v4859_v30  ;;  %v3795_v50 = vadd.f32 %v3794_v48, %v3793_v42 }
 0x174   :  { %v3685_v51 = vpop.f32.mrf.mxu0  ;;  %v3796_v54 = vpop.f32.mrf.mxu1 }
 0x175   :  { %v3686_v52 = vadd.f32 %v3685_v51, %v3684_v45  ;;  %v4922_v55 = vadd.f32 %v3795_v50, %v1394_v47 }
 0x176   :  { %v3687_v57 = vpop.f32.mrf.mxu0  ;;  %v3797_v59 = vpop.f32.mrf.mxu1 }
 0x177   :  { %v1397_v58 = vadd.f32 %v3686_v52, %v4859_v30  ;;  %v3798_v61 = vadd.f32 %v3797_v59, %v3796_v54 }
 0x178   :  { %v3688_v62 = vpop.f32.mrf.mxu0  ;;  %v3799_v1 = vpop.f32.mrf.mxu1 }
 0x179   :  { %v3689_v63 = vadd.f32 %v3688_v62, %v3687_v57  ;;  %v4925_v3 = vadd.f32 %v3798_v61, %v1397_v58 }
 0x17a   :  { %v3690_v4 = vpop.f32.mrf.mxu0  ;;  %v3800_v7 = vpop.f32.mrf.mxu1 }
 0x17b   :  { %v1402_v6 = vadd.f32 %v3689_v63, %v4859_v30  ;;  %v3801_v8 = vadd.f32 %v3800_v7, %v3799_v1 }
 0x17c   :  { %v3691_v10 = vpop.f32.mrf.mxu0  ;;  %v3802_v13 = vpop.f32.mrf.mxu1 }
 0x17d   :  { %v3692_v11 = vadd.f32 %v3691_v10, %v3690_v4  ;;  %v4928_v14 = vadd.f32 %v3801_v8, %v1402_v6 }
 0x17e   :  { %v3693_v15 = vpop.f32.mrf.mxu0  ;;  %v3803_v18 = vpop.f32.mrf.mxu1 }
 0x17f   :  { %v1405_v17 = vadd.f32 %v3692_v11, %v4859_v30  ;;  %v3804_v19 = vadd.f32 %v3803_v18, %v3802_v13 }
 0x180   :  { %v3694_v21 = vpop.f32.mrf.mxu0  ;;  %v3805_v24 = vpop.f32.mrf.mxu1 }
 0x181   :  { %v3695_v23 = vadd.f32 %v3694_v21, %v3693_v15  ;;  %v4931_v26 = vadd.f32 %v3804_v19, %v1405_v17 }
 0x182   :  { %v3696_v27 = vpop.f32.mrf.mxu0  ;;  %v3806_v31 = vpop.f32.mrf.mxu1 }
 0x183   :  { %v1410_v28 = vadd.f32 %v3695_v23, %v4859_v30  ;;  %v3807_v32 = vadd.f32 %v3806_v31, %v3805_v24 }
 0x184   :  { %v3697_v34 = vpop.f32.mrf.mxu0  ;;  %v3808_v37 = vpop.f32.mrf.mxu1 }
 0x185   :  { %v3698_v35 = vadd.f32 %v3697_v34, %v3696_v27  ;;  %v4934_v38 = vadd.f32 %v3807_v32, %v1410_v28 }
 0x186   :  { %v3699_v39 = vpop.f32.mrf.mxu0  ;;  %v3809_v42 = vpop.f32.mrf.mxu1 }
 0x187   :  { %v1413_v41 = vadd.f32 %v3698_v35, %v4859_v30  ;;  %v3810_v45 = vadd.f32 %v3809_v42, %v3808_v37 }
 0x188   :  { %v3700_v47 = vpop.f32.mrf.mxu0  ;;  %v3811_v50 = vpop.f32.mrf.mxu1 }
 0x189   :  { %v3701_v48 = vadd.f32 %v3700_v47, %v3699_v39  ;;  %v4937_v51 = vadd.f32 %v3810_v45, %v1413_v41 }
 0x18a   :  { %v3702_v52 = vpop.f32.mrf.mxu0  ;;  %v3812_v57 = vpop.f32.mrf.mxu1 }
 0x18b   :  { %v1418_v54 = vadd.f32 %v3701_v48, %v4859_v30  ;;  %v3813_v58 = vadd.f32 %v3812_v57, %v3811_v50 }
 0x18c   :  { %v3703_v59 = vpop.f32.mrf.mxu0  ;;  %v3814_v62 = vpop.f32.mrf.mxu1 }
 0x18d   :  { %v3704_v61 = vadd.f32 %v3703_v59, %v3702_v52  ;;  %v4940_v63 = vadd.f32 %v3813_v58, %v1418_v54 }
 0x18e   :  { %v3705_v1 = vpop.f32.mrf.mxu0  ;;  %v3815_v6 = vpop.f32.mrf.mxu1 }
 0x18f   :  { %v1421_v4 = vadd.f32 %v3704_v61, %v4859_v30  ;;  %v3816_v7 = vadd.f32 %v3815_v6, %v3814_v62 }
 0x190   :  { %v3706_v8 = vpop.f32.mrf.mxu0  ;;  %v3817_v11 = vpop.f32.mrf.mxu1 }
 0x191   :  { %v3707_v10 = vadd.f32 %v3706_v8, %v3705_v1  ;;  %v4943_v13 = vadd.f32 %v3816_v7, %v1421_v4 }
 0x192   :  { %v3708_v15 = vpop.f32.mrf.mxu0  ;;  %v3818_v18 = vpop.f32.mrf.mxu1 }
 0x193   :  { %v1426_v17 = vadd.f32 %v3707_v10, %v4859_v30  ;;  %v3819_v19 = vadd.f32 %v3818_v18, %v3817_v11 }
 0x194   :  { %v3709_v21 = vpop.f32.mrf.mxu0  ;;  %v3820_v24 = vpop.f32.mrf.mxu1 }
 0x195   :  { %v3710_v23 = vadd.f32 %v3709_v21, %v3708_v15  ;;  %v4946_v27 = vadd.f32 %v3819_v19, %v1426_v17 }
 0x196   :  { %v3711_v28 = vpop.f32.mrf.mxu0  ;;  %v3821_v32 = vpop.f32.mrf.mxu1 }
 0x197   :  { %v1429_v31 = vadd.f32 %v3710_v23, %v4859_v30  ;;  %v3822_v34 = vadd.f32 %v3821_v32, %v3820_v24 }
 0x198   :  { %v3712_v35 = vpop.f32.mrf.mxu0  ;;  %v3823_v39 = vpop.f32.mrf.mxu1 }
 0x199   :  { %v3713_v37 = vadd.f32 %v3712_v35, %v3711_v28  ;;  %v4949_v41 = vadd.f32 %v3822_v34, %v1429_v31  ;;  %v4962_v28 = vld [vmem:[%s5651_s3] ss:$0 sm:$0xff] }
 0x19a   :  { %v3714_v42 = vpop.f32.mrf.mxu0  ;;  %v3824_v47 = vpop.f32.mrf.mxu1 }
 0x19b   :  { %v1434_v45 = vadd.f32 %v3713_v37, %v4859_v30  ;;  %v3825_v48 = vadd.f32 %v3824_v47, %v3823_v39  ;;  %v4466_v47 = vld [vmem:[#allocation8 + $0x30] sm:$0xff]  }
 0x19c   :  { %v3715_v50 = vpop.f32.mrf.mxu0  ;;  %v3826_v54 = vpop.f32.mrf.mxu1 }
 0x19d   :  { %v3716_v52 = vadd.f32 %v3715_v50, %v3714_v42  ;;  %v4952_v57 = vadd.f32 %v3825_v48, %v1434_v45  ;;  %v4465_v45 = vld [vmem:[#allocation8 + $0x38] sm:$0xff]  }
 0x19e   :  { %v3845_v58 = vpop.f32.mrf.mxu0  ;;  %v3827_v61 = vpop.f32.mrf.mxu1  ;;  %4133 = vmatprep.subr.bf16.mxu0 %v4465_v45 }
 0x19f   :  { %v1437_v59 = vadd.f32 %v3716_v52, %v4859_v30  ;;  %v3828_v62 = vadd.f32 %v3827_v61, %v3826_v54  ;;  %4134 = vmatpush3.bf16.msra.mxu0 %v4465_v45 }
 0x1a0   :  { %v3846_v1 = vpop.f32.mrf.mxu0  ;;  %v4055_v6 = vpop.f32.mrf.mxu1  ;;  %4135 = vmatprep.subr.bf16.mxu0 %v4466_v47 }
 0x1a1   :  { %v3847_v4 = vadd.f32 %v3846_v1, %v3845_v58  ;;  %v4955_v7 = vadd.f32 %v3828_v62, %v1437_v59 }
 0x1a2   :  { %v3848_v8 = vpop.f32.mrf.mxu0  ;;  %v1796_v11 = vpop.f32.mrf.mxu1 }
 0x1a3   :  { %v1636_v10 = vadd.f32 %v3847_v4, %v4862_v44  ;;  %v4467_v4 = vld [vmem:[#allocation8 + $0x28] sm:$0xff]   ;;  %4136 = vmatpush3.bf16.msra.mxu0 %v4466_v47 }
 0x1a4   :  { %v3849_v15 = vpop.f32.mrf.mxu0  ;;  %v4056_v19 = vpop.f32.mrf.mxu1  ;;  %4137 = vmatprep.subr.bf16.mxu0 %v4467_v4 }
 0x1a5   :  { %v3850_v17 = vadd.f32 %v3849_v15, %v3848_v8  ;;  %v1797_v18 = vadd.f32 %v1796_v11, %v1636_v10 }
 0x1a6   :  { %v3851_v21 = vpop.f32.mrf.mxu0  ;;  %v1799_v30 = vpop.f32.mrf.mxu1 }
 0x1a7   :  { %v1923_v23 = vmax.f32 %v1797_v18, 0.0  ;;  %v1639_v24 = vadd.f32 %v3850_v17, %v4865_v53  ;;  %v4969_v53 = vld [vmem:[%s5652_s4] ss:$0 sm:$0xff]  ;;  %4138 = vmatpush3.bf16.msra.mxu0 %v4467_v4 }
 0x1a8   :  { %v3852_v31 = vpop.f32.mrf.mxu0  ;;  %v4059_v44 = vpop.f32.mrf.mxu1 }
 0x1a9   :  { %v3853_v32 = vadd.f32 %v3852_v31, %v3851_v21  ;;  %v1800_v34 = vadd.f32 %v1799_v30, %v1639_v24  ;;  %v1962_v37 = vmul.f32 %v4962_v28, %v1923_v23  ;;  %v4468_v24 = vld [vmem:[#allocation8 + $0x20] sm:$0xff]  }
 0x1aa   :  { %v3854_v35 = vpop.f32.mrf.mxu0  ;;  %v1812_v59 = vpop.f32.mrf.mxu1  ;;  %4139 = vmatprep.subr.bf16.mxu0 %v4468_v24 }
 0x1ab   :  { %v1644_v39 = vadd.f32 %v3853_v32, %v4868_v0  ;;  %v1924_v42 = vmax.f32 %v1800_v34, 0.0  ;;  %v2001_v61 = vadd.f32 %v4969_v53, %v1962_v37  ;;  %4140 = vmatpush3.bf16.msra.mxu0 %v4468_v24 }
 0x1ac   :  { %v3855_v48 = vpop.f32.mrf.mxu0  ;;  %v4060_v17 = vpop.f32.mrf.mxu1 }
 0x1ad   :  { %v1805_v50 = vadd.f32 %v4055_v6, %v1644_v39  ;;  %v1963_v52 = vmul.f32 %v4962_v28, %v1924_v42  ;;  %v3856_v54 = vadd.f32 %v3855_v48, %v3854_v35 }
 0x1ae   :  { %v3857_v58 = vpop.f32.mrf.mxu0 }
 0x1af   :  { %v1925_v0 = vmax.f32 %v1805_v50, 0.0  ;;  %v2002_v62 = vadd.f32 %v4969_v53, %v1963_v52  ;;  %v1647_v1 = vadd.f32 %v3856_v54, %v4871_v9 }
 0x1b0   :  { %v3858_v8 = vpop.f32.mrf.mxu0 }
 0x1b1   :  { %v1808_v10 = vadd.f32 %v4056_v19, %v1647_v1  ;;  %v3859_v11 = vadd.f32 %v3858_v8, %v3857_v58  ;;  %v2033_v6 = vpack.c.bf16 %v2002_v62, %v2001_v61  ;;  %v1964_v18 = vmul.f32 %v4962_v28, %v1925_v0  ;;  %v1815_v19 = vpop.f32.mrf.mxu1 }
 0x1b2   :  { %v3860_v15 = vpop.f32.mrf.mxu0 }
 0x1b3   :  { %v1926_v21 = vmax.f32 %v1808_v10, 0.0  ;;  %4101 = vmatprep.mubr.bf16.mxu1 %v2033_v6  ;;  %v1652_v23 = vadd.f32 %v3859_v11, %v4874_v20  ;;  %v2003_v35 = vadd.f32 %v4969_v53, %v1964_v18  ;;  %v4063_v52 = vpop.f32.mrf.mxu1 }
 0x1b4   :  { %v3861_v30 = vpop.f32.mrf.mxu0 }
 0x1b5   :  { %v1965_v9 = vmul.f32 %v4962_v28, %v1926_v21  ;;  %v3862_v31 = vadd.f32 %v3861_v30, %v3860_v15  ;;  %v1813_v32 = vadd.f32 %v1812_v59, %v1652_v23  ;;  %v1828_v4 = vpop.f32.mrf.mxu1 }
 0x1b6   :  { %v3863_v34 = vpop.f32.mrf.mxu0 }
 0x1b7   :  { %v2004_v37 = vadd.f32 %v4969_v53, %v1965_v9  ;;  %v1927_v39 = vmax.f32 %v1813_v32, 0.0  ;;  %v1655_v42 = vadd.f32 %v3862_v31, %v4877_v29  ;;  %v4064_v24 = vpop.f32.mrf.mxu1 }
 0x1b8   :  { %v3864_v45 = vpop.f32.mrf.mxu0 }
 0x1b9   :  { %v2034_v20 = vpack.c.bf16 %v2004_v37, %v2003_v35  ;;  %v3865_v47 = vadd.f32 %v3864_v45, %v3863_v34  ;;  %v1816_v48 = vadd.f32 %v1815_v19, %v1655_v42  ;;  %v1966_v54 = vmul.f32 %v4962_v28, %v1927_v39  ;;  %v1831_v37 = vpop.f32.mrf.mxu1 }
 0x1ba   :  { %v3866_v50 = vpop.f32.mrf.mxu0 }
 0x1bb   :  { %v1660_v58 = vadd.f32 %v3865_v47, %v4880_v40  ;;  %v1928_v59 = vmax.f32 %v1816_v48, 0.0  ;;  %4102 = vmatmul.mubr.bf16.vlgmr.msra.gmra.mxu1 %v2034_v20  ;;  %v2005_v8 = vadd.f32 %v4969_v53, %v1966_v54 }
 0x1bc   :  { %v3867_v61 = vpop.f32.mrf.mxu0 }
 0x1bd   :  { %v1821_v0 = vadd.f32 %v4059_v44, %v1660_v58  ;;  %v1967_v62 = vmul.f32 %v4962_v28, %v1928_v59  ;;  %v3868_v1 = vadd.f32 %v3867_v61, %v3866_v50 }
 0x1be   :  { %v3869_v29 = vpop.f32.mrf.mxu0 }
 0x1bf   :  { %v1929_v10 = vmax.f32 %v1821_v0, 0.0  ;;  %v2006_v11 = vadd.f32 %v4969_v53, %v1967_v62  ;;  %v1663_v6 = vadd.f32 %v3868_v1, %v4883_v49 }
 0x1c0   :  { %v3870_v15 = vpop.f32.mrf.mxu0 }
 0x1c1   :  { %v1824_v18 = vadd.f32 %v4060_v17, %v1663_v6  ;;  %v3871_v21 = vadd.f32 %v3870_v15, %v3869_v29  ;;  %v2035_v40 = vpack.c.bf16 %v2006_v11, %v2005_v8  ;;  %v1968_v44 = vmul.f32 %v4962_v28, %v1929_v10 }
 0x1c2   :  { %v3872_v23 = vpop.f32.mrf.mxu0 }
 0x1c3   :  { %v1930_v30 = vmax.f32 %v1824_v18, 0.0  ;;  %4105 = vmatprep.mubr.bf16.mxu1 %v2035_v40  ;;  %v1668_v9 = vadd.f32 %v3871_v21, %v4886_v60  ;;  %v2007_v39 = vadd.f32 %v4969_v53, %v1968_v44  ;;  %v4067_v60 = vpop.f32.mrf.mxu1 }
 0x1c4   :  { %v3873_v31 = vpop.f32.mrf.mxu0 }
 0x1c5   :  { %v1969_v32 = vmul.f32 %v4962_v28, %v1930_v30  ;;  %v3874_v34 = vadd.f32 %v3873_v31, %v3872_v23  ;;  %v1829_v19 = vadd.f32 %v1828_v4, %v1668_v9  ;;  %v1844_v29 = vpop.f32.mrf.mxu1 }
 0x1c6   :  { %v3875_v35 = vpop.f32.mrf.mxu0 }
 0x1c7   :  { %v1931_v49 = vmax.f32 %v1829_v19, 0.0  ;;  %v1671_v17 = vadd.f32 %v3874_v34, %v4889_v5  ;;  %v2008_v42 = vadd.f32 %v4969_v53, %v1969_v32  ;;  %v4068_v40 = vpop.f32.mrf.mxu1 }
 0x1c8   :  { %v3876_v45 = vpop.f32.mrf.mxu0 }
 0x1c9   :  { %v3877_v20 = vadd.f32 %v3876_v45, %v3875_v35  ;;  %v1832_v47 = vadd.f32 %v1831_v37, %v1671_v17  ;;  %v2036_v48 = vpack.c.bf16 %v2008_v42, %v2007_v39  ;;  %v1970_v54 = vmul.f32 %v4962_v28, %v1931_v49  ;;  %v1847_v19 = vpop.f32.mrf.mxu1 }
 0x1ca   :  { %v3878_v50 = vpop.f32.mrf.mxu0 }
 0x1cb   :  { %v1676_v58 = vadd.f32 %v3877_v20, %v4892_v16  ;;  %v1932_v59 = vmax.f32 %v1832_v47, 0.0  ;;  %4106 = vmatmul.mubr.bf16.gmra.mxu1 %v2036_v48  ;;  %v2009_v4 = vadd.f32 %v4969_v53, %v1970_v54 }
 0x1cc   :  { %v3879_v61 = vpop.f32.mrf.mxu0 }
 0x1cd   :  { %v1837_v0 = vadd.f32 %v4063_v52, %v1676_v58  ;;  %v1971_v5 = vmul.f32 %v4962_v28, %v1932_v59  ;;  %v3880_v62 = vadd.f32 %v3879_v61, %v3878_v50 }
 0x1ce   :  { %v3881_v1 = vpop.f32.mrf.mxu0 }
 0x1cf   :  { %v1933_v8 = vmax.f32 %v1837_v0, 0.0  ;;  %v2010_v10 = vadd.f32 %v4969_v53, %v1971_v5  ;;  %v1679_v11 = vadd.f32 %v3880_v62, %v4895_v25 }
 0x1d0   :  { %v3882_v6 = vpop.f32.mrf.mxu0 }
 0x1d1   :  { %v1840_v15 = vadd.f32 %v4064_v24, %v1679_v11  ;;  %v3883_v18 = vadd.f32 %v3882_v6, %v3881_v1  ;;  %v2037_v16 = vpack.c.bf16 %v2010_v10, %v2009_v4  ;;  %v1972_v52 = vmul.f32 %v4962_v28, %v1933_v8 }
 0x1d2   :  { %v3884_v21 = vpop.f32.mrf.mxu0 }
 0x1d3   :  { %v1934_v23 = vmax.f32 %v1840_v15, 0.0  ;;  %4109 = vmatprep.mubr.bf16.mxu1 %v2037_v16  ;;  %v1684_v44 = vadd.f32 %v3883_v18, %v4898_v36  ;;  %v2011_v35 = vadd.f32 %v4969_v53, %v1972_v52  ;;  %v4071_v36 = vpop.f32.mrf.mxu1 }
 0x1d4   :  { %v3885_v30 = vpop.f32.mrf.mxu0 }
 0x1d5   :  { %v1973_v9 = vmul.f32 %v4962_v28, %v1934_v23  ;;  %v3886_v31 = vadd.f32 %v3885_v30, %v3884_v21  ;;  %v1845_v32 = vadd.f32 %v1844_v29, %v1684_v44  ;;  %v1860_v61 = vpop.f32.mrf.mxu1 }
 0x1d6   :  { %v3887_v34 = vpop.f32.mrf.mxu0 }
 0x1d7   :  { %v1935_v25 = vmax.f32 %v1845_v32, 0.0  ;;  %v1687_v24 = vadd.f32 %v3886_v31, %v4901_v46  ;;  %v2012_v37 = vadd.f32 %v4969_v53, %v1973_v9  ;;  %v4072_v11 = vpop.f32.mrf.mxu1 }
 0x1d8   :  { %v3888_v49 = vpop.f32.mrf.mxu0 }
 0x1d9   :  { %v3889_v17 = vadd.f32 %v3888_v49, %v3887_v34  ;;  %v1848_v39 = vadd.f32 %v1847_v19, %v1687_v24  ;;  %v2038_v42 = vpack.c.bf16 %v2012_v37, %v2011_v35  ;;  %v1974_v20 = vmul.f32 %v4962_v28, %v1935_v25  ;;  %v1863_v44 = vpop.f32.mrf.mxu1 }
 0x1da   :  { %v3890_v45 = vpop.f32.mrf.mxu0 }
 0x1db   :  { %v1692_v47 = vadd.f32 %v3889_v17, %v4904_v56  ;;  %v1936_v48 = vmax.f32 %v1848_v39, 0.0  ;;  %4110 = vmatmul.mubr.bf16.gmra.mxu1 %v2038_v42  ;;  %v2013_v0 = vadd.f32 %v4969_v53, %v1974_v20 }
 0x1dc   :  { %v3891_v50 = vpop.f32.mrf.mxu0 }
 0x1dd   :  { %v1853_v54 = vadd.f32 %v4067_v60, %v1692_v47  ;;  %v1975_v46 = vmul.f32 %v4962_v28, %v1936_v48  ;;  %v3892_v58 = vadd.f32 %v3891_v50, %v3890_v45 }
 0x1de   :  { %v3893_v59 = vpop.f32.mrf.mxu0 }
 0x1df   :  { %v1937_v5 = vmax.f32 %v1853_v54, 0.0  ;;  %v2014_v62 = vadd.f32 %v4969_v53, %v1975_v46  ;;  %v1695_v1 = vadd.f32 %v3892_v58, %v4907_v2 }
 0x1e0   :  { %v3894_v29 = vpop.f32.mrf.mxu0 }
 0x1e1   :  { %v1856_v4 = vadd.f32 %v4068_v40, %v1695_v1  ;;  %v3895_v8 = vadd.f32 %v3894_v29, %v3893_v59  ;;  %v2039_v56 = vpack.c.bf16 %v2014_v62, %v2013_v0  ;;  %v1976_v60 = vmul.f32 %v4962_v28, %v1937_v5 }
 0x1e2   :  { %v3896_v10 = vpop.f32.mrf.mxu0 }
 0x1e3   :  { %v1938_v6 = vmax.f32 %v1856_v4, 0.0  ;;  %4113 = vmatprep.mubr.bf16.mxu1 %v2039_v56  ;;  %v1700_v15 = vadd.f32 %v3895_v8, %v4910_v12  ;;  %v2015_v30 = vadd.f32 %v4969_v53, %v1976_v60  ;;  %v4075_v12 = vpop.f32.mrf.mxu1 }
 0x1e4   :  { %v3897_v18 = vpop.f32.mrf.mxu0 }
 0x1e5   :  { %v1977_v16 = vmul.f32 %v4962_v28, %v1938_v6  ;;  %v3898_v21 = vadd.f32 %v3897_v18, %v3896_v10  ;;  %v1861_v52 = vadd.f32 %v1860_v61, %v1700_v15  ;;  %v1876_v45 = vpop.f32.mrf.mxu1 }
 0x1e6   :  { %v3899_v23 = vpop.f32.mrf.mxu0 }
 0x1e7   :  { %v1939_v2 = vmax.f32 %v1861_v52, 0.0  ;;  %v1703_v40 = vadd.f32 %v3898_v21, %v4913_v22  ;;  %v2016_v9 = vadd.f32 %v4969_v53, %v1977_v16  ;;  %v4076_v61 = vpop.f32.mrf.mxu1 }
 0x1e8   :  { %v3900_v31 = vpop.f32.mrf.mxu0 }
 0x1e9   :  { %v3901_v32 = vadd.f32 %v3900_v31, %v3899_v23  ;;  %v1864_v34 = vadd.f32 %v1863_v44, %v1703_v40  ;;  %v2040_v19 = vpack.c.bf16 %v2016_v9, %v2015_v30  ;;  %v1978_v24 = vmul.f32 %v4962_v28, %v1939_v2  ;;  %v1879_v56 = vpop.f32.mrf.mxu1  ;;  %v4469_v40 = vld [vmem:[#allocation8 + $0x18] sm:$0xff]  }
 0x1ea   :  { %v3902_v25 = vpop.f32.mrf.mxu0  ;;  %4141 = vmatprep.subr.bf16.mxu0 %v4469_v40 }
 0x1eb   :  { %v1708_v35 = vadd.f32 %v3901_v32, %v4916_v33  ;;  %v1940_v37 = vmax.f32 %v1864_v34, 0.0  ;;  %4114 = vmatmul.mubr.bf16.gmra.mxu1 %v2040_v19  ;;  %v2017_v20 = vadd.f32 %v4969_v53, %v1978_v24  ;;  %4142 = vmatpush3.bf16.msra.mxu0 %v4469_v40 }
 0x1ec   :  { %v3903_v49 = vpop.f32.mrf.mxu0 }
 0x1ed   :  { %v1869_v17 = vadd.f32 %v4071_v36, %v1708_v35  ;;  %v1979_v22 = vmul.f32 %v4962_v28, %v1940_v37  ;;  %v3904_v39 = vadd.f32 %v3903_v49, %v3902_v25  ;;  %v4470_v35 = vld [vmem:[#allocation8 + $0x10] sm:$0xff]  }
 0x1ee   :  { %v3905_v42 = vpop.f32.mrf.mxu0  ;;  %4143 = vmatprep.subr.bf16.mxu0 %v4470_v35 }
 0x1ef   :  { %v1941_v47 = vmax.f32 %v1869_v17, 0.0  ;;  %v2018_v48 = vadd.f32 %v4969_v53, %v1979_v22  ;;  %v1711_v50 = vadd.f32 %v3904_v39, %v4919_v43  ;;  %4144 = vmatpush3.bf16.msra.mxu0 %v4470_v35 }
 0x1f0   :  { %v3906_v54 = vpop.f32.mrf.mxu0 }
 0x1f1   :  { %v1872_v46 = vadd.f32 %v4072_v11, %v1711_v50  ;;  %v3907_v58 = vadd.f32 %v3906_v54, %v3905_v42  ;;  %v2041_v33 = vpack.c.bf16 %v2018_v48, %v2017_v20  ;;  %v1980_v36 = vmul.f32 %v4962_v28, %v1941_v47  ;;  %v4471_v47 = vld [vmem:[#allocation8 + $0x8] sm:$0xff]  }
 0x1f2   :  { %v3908_v59 = vpop.f32.mrf.mxu0  ;;  %4145 = vmatprep.subr.bf16.mxu0 %v4471_v47 }
 0x1f3   :  { %v1942_v0 = vmax.f32 %v1872_v46, 0.0  ;;  %4117 = vmatprep.mubr.bf16.mxu1 %v2041_v33  ;;  %v1716_v5 = vadd.f32 %v3907_v58, %v4922_v55  ;;  %v2019_v43 = vadd.f32 %v4969_v53, %v1980_v36  ;;  %v4079_v55 = vpop.f32.mrf.mxu1  ;;  %4146 = vmatpush3.bf16.msra.mxu0 %v4471_v47 }
 0x1f4   :  { %v3909_v62 = vpop.f32.mrf.mxu0 }
 0x1f5   :  { %v1981_v1 = vmul.f32 %v4962_v28, %v1942_v0  ;;  %v3910_v29 = vadd.f32 %v3909_v62, %v3908_v59  ;;  %v1877_v4 = vadd.f32 %v1876_v45, %v1716_v5 }
 0x1f6   :  { %v3911_v8 = vpop.f32.mrf.mxu0 }
 0x1f7   :  { %v2020_v10 = vadd.f32 %v4969_v53, %v1981_v1  ;;  %v1943_v11 = vmax.f32 %v1877_v4, 0.0  ;;  %v1719_v60 = vadd.f32 %v3910_v29, %v4925_v3  ;;  %v1892_v3 = vpop.f32.mrf.mxu1 }
 0x1f8   :  { %v3912_v6 = vpop.f32.mrf.mxu0 }
 0x1f9   :  { %v3913_v15 = vadd.f32 %v3912_v6, %v3911_v8  ;;  %v1880_v18 = vadd.f32 %v1879_v56, %v1719_v60  ;;  %v2042_v16 = vpack.c.bf16 %v2020_v10, %v2019_v43  ;;  %v1982_v52 = vmul.f32 %v4962_v28, %v1943_v11  ;;  %v4080_v22 = vpop.f32.mrf.mxu1 }
 0x1fa   :  { %v3914_v21 = vpop.f32.mrf.mxu0 }
 0x1fb   :  { %v1724_v23 = vadd.f32 %v3913_v15, %v4928_v14  ;;  %v1944_v44 = vmax.f32 %v1880_v18, 0.0  ;;  %4118 = vmatmul.mubr.bf16.gmra.mxu1 %v2042_v16  ;;  %v2021_v34 = vadd.f32 %v4969_v53, %v1982_v52  ;;  %v1895_v46 = vpop.f32.mrf.mxu1 }
 0x1fc   :  { %v3915_v2 = vpop.f32.mrf.mxu0 }
 0x1fd   :  { %v1885_v30 = vadd.f32 %v4075_v12, %v1724_v23  ;;  %v1983_v9 = vmul.f32 %v4962_v28, %v1944_v44  ;;  %v3916_v31 = vadd.f32 %v3915_v2, %v3914_v21  ;;  %v4083_v29 = vpop.f32.mrf.mxu1 }
 0x1fe   :  { %v3917_v32 = vpop.f32.mrf.mxu0 }
 0x1ff   :  { %v1945_v19 = vmax.f32 %v1885_v30, 0.0  ;;  %v2022_v25 = vadd.f32 %v4969_v53, %v1983_v9  ;;  %v1727_v24 = vadd.f32 %v3916_v31, %v4931_v26  ;;  %v1908_v6 = vpop.f32.mrf.mxu1 }
 0x200   :  { %v3918_v14 = vpop.f32.mrf.mxu0 }
 0x201   :  { %v1888_v37 = vadd.f32 %v4076_v61, %v1727_v24  ;;  %v3919_v49 = vadd.f32 %v3918_v14, %v3917_v32  ;;  %v2043_v17 = vpack.c.bf16 %v2022_v25, %v2021_v34  ;;  %v1984_v39 = vmul.f32 %v4962_v28, %v1945_v19  ;;  %v4084_v40 = vpop.f32.mrf.mxu1 }
 0x202   :  { %v3920_v12 = vpop.f32.mrf.mxu0 }
 0x203   :  { %v1946_v42 = vmax.f32 %v1888_v37, 0.0  ;;  %4121 = vmatprep.mubr.bf16.mxu1 %v2043_v17  ;;  %v1732_v45 = vadd.f32 %v3919_v49, %v4934_v38  ;;  %v2023_v58 = vadd.f32 %v4969_v53, %v1984_v39  ;;  %v4472_v38 = vld [vmem:[#allocation8] sm:$0xff]   ;;  %v1911_v25 = vpop.f32.mrf.mxu1 }
 0x204   :  { %v3921_v20 = vpop.f32.mrf.mxu0  ;;  %4147 = vmatprep.subr.bf16.mxu0 %v4472_v38 }
 0x205   :  { %v1985_v26 = vmul.f32 %v4962_v28, %v1946_v42  ;;  %v3922_v48 = vadd.f32 %v3921_v20, %v3920_v12  ;;  %v1893_v50 = vadd.f32 %v1892_v3, %v1732_v45  ;;  %4148 = vmatpush3.bf16.msra.mxu0 %v4472_v38 }
 0x206   :  { %v3923_v54 = vpop.f32.mrf.mxu0 }
 0x207   :  { %v2024_v33 = vadd.f32 %v4969_v53, %v1985_v26  ;;  %v1947_v59 = vmax.f32 %v1893_v50, 0.0  ;;  %v1735_v61 = vadd.f32 %v3922_v48, %v4937_v51 }
 0x208   :  { %v3924_v36 = vpop.f32.mrf.mxu0 }
 0x209   :  { %v3925_v0 = vadd.f32 %v3924_v36, %v3923_v54  ;;  %v1896_v5 = vadd.f32 %v1895_v46, %v1735_v61  ;;  %v2044_v62 = vpack.c.bf16 %v2024_v33, %v2023_v58  ;;  %v1986_v4 = vmul.f32 %v4962_v28, %v1947_v59 }
 0x20a   :  { %v3926_v1 = vpop.f32.mrf.mxu0 }
 0x20b   :  { %v1740_v8 = vadd.f32 %v3925_v0, %v4940_v63  ;;  %v1948_v56 = vmax.f32 %v1896_v5, 0.0  ;;  %4122 = vmatmul.mubr.bf16.gmra.mxu1 %v2044_v62  ;;  %v2025_v15 = vadd.f32 %v4969_v53, %v1986_v4  ;;  %v5066_v0 = vld [vmem:[%s5654_s6] ss:$0 sm:$0xff] }
 0x20c   :  { %v3927_v43 = vpop.f32.mrf.mxu0 }
 0x20d   :  { %v1901_v10 = vadd.f32 %v4079_v55, %v1740_v8  ;;  %v1987_v51 = vmul.f32 %v4962_v28, %v1948_v56  ;;  %v3928_v11 = vadd.f32 %v3927_v43, %v3926_v1  ;;  %v4473_v1 = vld [vmem:[#allocation10 + $0x38] sm:$0xff]  }
 0x20e   :  { %v3929_v60 = vpop.f32.mrf.mxu0  ;;  %4181 = vmatprep.subr.bf16.mxu1 %v4473_v1 }
 0x20f   :  { %v1949_v18 = vmax.f32 %v1901_v10, 0.0  ;;  %v2026_v16 = vadd.f32 %v4969_v53, %v1987_v51  ;;  %v1743_v21 = vadd.f32 %v3928_v11, %v4943_v13  ;;  %4182 = vmatpush3.bf16.msra.mxu1 %v4473_v1  ;;  %v4475_v10 = vld [vmem:[#allocation10 + $0x28] sm:$0xff]   ;;  %v5074_v51 = vld [vmem:[%s5655_s7] ss:$0 sm:$0xff] }
 0x210   :  { %v3930_v52 = vpop.f32.mrf.mxu0 }
 0x211   :  { %v1904_v23 = vadd.f32 %v4080_v22, %v1743_v21  ;;  %v3931_v63 = vadd.f32 %v3930_v52, %v3929_v60  ;;  %v2045_v44 = vpack.c.bf16 %v2026_v16, %v2025_v15  ;;  %v1988_v55 = vmul.f32 %v4962_v28, %v1949_v18  ;;  %v4476_v21 = vld [vmem:[#allocation10 + $0x20] sm:$0xff]  }
 0x212   :  { %v3932_v2 = vpop.f32.mrf.mxu0  ;;  %v5083_v52 = vld [vmem:[%s5656_s8] ss:$0 sm:$0xff] }
 0x213   :  { %v1950_v30 = vmax.f32 %v1904_v23, 0.0  ;;  %4125 = vmatprep.mubr.bf16.mxu1 %v2045_v44  ;;  %v1748_v9 = vadd.f32 %v3931_v63, %v4946_v27  ;;  %v2027_v13 = vadd.f32 %v4969_v53, %v1988_v55 }
 0x214   :  { %v3933_v31 = vpop.f32.mrf.mxu0 }
 0x215   :  { %v1989_v32 = vmul.f32 %v4962_v28, %v1950_v30  ;;  %v3934_v3 = vadd.f32 %v3933_v31, %v3932_v2  ;;  %v1909_v34 = vadd.f32 %v1908_v6, %v1748_v9 }
 0x216   :  { %v3935_v19 = vpop.f32.mrf.mxu0 }
 0x217   :  { %v2028_v24 = vadd.f32 %v4969_v53, %v1989_v32  ;;  %v1951_v14 = vmax.f32 %v1909_v34, 0.0  ;;  %v1751_v35 = vadd.f32 %v3934_v3, %v4949_v41 }
 0x218   :  { %v3936_v37 = vpop.f32.mrf.mxu0 }
 0x219   :  { %v3937_v49 = vadd.f32 %v3936_v37, %v3935_v19  ;;  %v1912_v17 = vadd.f32 %v1911_v25, %v1751_v35  ;;  %v2046_v12 = vpack.c.bf16 %v2028_v24, %v2027_v13  ;;  %v1990_v27 = vmul.f32 %v4962_v28, %v1951_v14 }
 0x21a   :  { %v3938_v22 = vpop.f32.mrf.mxu0 }
 0x21b   :  { %v1756_v39 = vadd.f32 %v3937_v49, %v4952_v57  ;;  %v1952_v42 = vmax.f32 %v1912_v17, 0.0  ;;  %4126 = vmatmul.mubr.bf16.gmra.mxu1 %v2046_v12  ;;  %v2029_v48 = vadd.f32 %v4969_v53, %v1990_v27 }
 0x21c   :  { %v3939_v45 = vpop.f32.mrf.mxu0 }
 0x21d   :  { %v1917_v20 = vadd.f32 %v4083_v29, %v1756_v39  ;;  %v1991_v47 = vmul.f32 %v4962_v28, %v1952_v42  ;;  %v3940_v26 = vadd.f32 %v3939_v45, %v3938_v22  ;;  %v4474_v29 = vld [vmem:[#allocation10 + $0x30] sm:$0xff]  }
 0x21e   :  { %4183 = vmatprep.subr.bf16.mxu1 %v4474_v29 }
 0x21f   :  { %v1953_v50 = vmax.f32 %v1917_v20, 0.0  ;;  %v2030_v41 = vadd.f32 %v4969_v53, %v1991_v47  ;;  %v1759_v54 = vadd.f32 %v3940_v26, %v4955_v7  ;;  %4184 = vmatpush3.bf16.msra.mxu1 %v4474_v29 }
 0x220   :  { %4185 = vmatprep.subr.bf16.mxu1 %v4475_v10 }
 0x221   :  { %v1920_v46 = vadd.f32 %v4084_v40, %v1759_v54  ;;  %v2047_v58 = vpack.c.bf16 %v2030_v41, %v2029_v48  ;;  %v1992_v33 = vmul.f32 %v4962_v28, %v1953_v50 }
 0x223   :  { %v1954_v59 = vmax.f32 %v1920_v46, 0.0  ;;  %4129 = vmatprep.mubr.bf16.mxu1 %v2047_v58  ;;  %v2031_v61 = vadd.f32 %v4969_v53, %v1992_v33  ;;  %4186 = vmatpush3.bf16.msra.mxu1 %v4475_v10 }
 0x224   :  { %4187 = vmatprep.subr.bf16.mxu1 %v4476_v21 }
 0x225   :  { %v1993_v57 = vmul.f32 %v4962_v28, %v1954_v59 }
 0x227   :  { %v2032_v36 = vadd.f32 %v4969_v53, %v1993_v57  ;;  %4188 = vmatpush3.bf16.msra.mxu1 %v4476_v21 }
 0x229   :  { %v2048_v38 = vpack.c.bf16 %v2032_v36, %v2031_v61 }
 0x22b   :  { %4130 = vmatmul.mubr.bf16.gmra.mxu1 %v2048_v38 }
 0x27b   :  { %v4103_v7 = vpop.f32.mrf.mxu1 }
 0x27c   :  { %v2163_v5 = vadd.f32 %v4103_v7, %v5066_v0 }
 0x27d   :  { %v2154_v62 = vpop.f32.mrf.mxu1 }
 0x27e   :  { %v2155_v4 = vadd.f32 %v5066_v0, %v2154_v62  ;;  %v2283_v56 = vmax.f32 %v2163_v5, 0.0 }
 0x27f   :  { %v4104_v28 = vpop.f32.mrf.mxu1 }
 0x280   :  { %v2281_v8 = vmax.f32 %v2155_v4, 0.0  ;;  %v2166_v53 = vadd.f32 %v4104_v28, %v5066_v0  ;;  %v2322_v16 = vmul.f32 %v5074_v51, %v2283_v56 }
 0x281   :  { %v2157_v43 = vpop.f32.mrf.mxu1 }
 0x282   :  { %v2284_v11 = vmax.f32 %v2166_v53, 0.0  ;;  %v2158_v60 = vadd.f32 %v5066_v0, %v2157_v43  ;;  %v2320_v6 = vmul.f32 %v5074_v51, %v2281_v8  ;;  %v2361_v40 = vadd.f32 %v5083_v52, %v2322_v16 }
 0x284   :  { %v2323_v15 = vmul.f32 %v5074_v51, %v2284_v11  ;;  %v2282_v18 = vmax.f32 %v2158_v60, 0.0  ;;  %v2359_v44 = vadd.f32 %v5083_v52, %v2320_v6 }
 0x286   :  { %v2321_v23 = vmul.f32 %v5074_v51, %v2282_v18  ;;  %v2362_v63 = vadd.f32 %v5083_v52, %v2323_v15 }
 0x288   :  { %v2360_v2 = vadd.f32 %v5083_v52, %v2321_v23  ;;  %v2392_v30 = vpack.c.bf16 %v2362_v63, %v2361_v40 }
 0x28a   :  { %v2391_v55 = vpack.c.bf16 %v2360_v2, %v2359_v44 }
 0x28b   :  { %v4107_v9 = vpop.f32.mrf.mxu1 }
 0x28c   :  { %4149 = vmatprep.mubr.bf16.mxu0 %v2391_v55  ;;  %v2179_v31 = vadd.f32 %v4107_v9, %v5066_v0 }
 0x28d   :  { %v2170_v32 = vpop.f32.mrf.mxu1  ;;  %4150 = vmatmul.mubr.bf16.vlgmr.msra.gmra.mxu0 %v2392_v30 }
 0x28e   :  { %v2171_v3 = vadd.f32 %v5066_v0, %v2170_v32  ;;  %v2287_v13 = vmax.f32 %v2179_v31, 0.0 }
 0x28f   :  { %v4108_v34 = vpop.f32.mrf.mxu1 }
 0x290   :  { %v2285_v19 = vmax.f32 %v2171_v3, 0.0  ;;  %v2182_v25 = vadd.f32 %v4108_v34, %v5066_v0  ;;  %v2326_v12 = vmul.f32 %v5074_v51, %v2287_v13 }
 0x291   :  { %v2173_v24 = vpop.f32.mrf.mxu1 }
 0x292   :  { %v2288_v14 = vmax.f32 %v2182_v25, 0.0  ;;  %v2174_v35 = vadd.f32 %v5066_v0, %v2173_v24  ;;  %v2324_v37 = vmul.f32 %v5074_v51, %v2285_v19  ;;  %v2365_v45 = vadd.f32 %v5083_v52, %v2326_v12 }
 0x294   :  { %v2327_v49 = vmul.f32 %v5074_v51, %v2288_v14  ;;  %v2286_v17 = vmax.f32 %v2174_v35, 0.0  ;;  %v2363_v39 = vadd.f32 %v5083_v52, %v2324_v37 }
 0x296   :  { %v2325_v22 = vmul.f32 %v5074_v51, %v2286_v17  ;;  %v2366_v27 = vadd.f32 %v5083_v52, %v2327_v49 }
 0x298   :  { %v2364_v42 = vadd.f32 %v5083_v52, %v2325_v22  ;;  %v2394_v47 = vpack.c.bf16 %v2366_v27, %v2365_v45 }
 0x29a   :  { %v2393_v20 = vpack.c.bf16 %v2364_v42, %v2363_v39 }
 0x29b   :  { %v4111_v26 = vpop.f32.mrf.mxu1 }
 0x29c   :  { %4153 = vmatprep.mubr.bf16.mxu0 %v2393_v20  ;;  %v2195_v48 = vadd.f32 %v4111_v26, %v5066_v0 }
 0x29d   :  { %v2186_v50 = vpop.f32.mrf.mxu1  ;;  %4154 = vmatmul.mubr.bf16.gmra.mxu0 %v2394_v47 }
 0x29e   :  { %v2187_v41 = vadd.f32 %v5066_v0, %v2186_v50  ;;  %v2291_v33 = vmax.f32 %v2195_v48, 0.0 }
 0x29f   :  { %v4112_v54 = vpop.f32.mrf.mxu1 }
 0x2a0   :  { %v2289_v46 = vmax.f32 %v2187_v41, 0.0  ;;  %v2198_v58 = vadd.f32 %v4112_v54, %v5066_v0  ;;  %v2330_v5 = vmul.f32 %v5074_v51, %v2291_v33 }
 0x2a1   :  { %v2189_v59 = vpop.f32.mrf.mxu1 }
 0x2a2   :  { %v2292_v57 = vmax.f32 %v2198_v58, 0.0  ;;  %v2190_v61 = vadd.f32 %v5066_v0, %v2189_v59  ;;  %v2328_v36 = vmul.f32 %v5074_v51, %v2289_v46  ;;  %v2369_v28 = vadd.f32 %v5083_v52, %v2330_v5 }
 0x2a4   :  { %v2331_v38 = vmul.f32 %v5074_v51, %v2292_v57  ;;  %v2290_v7 = vmax.f32 %v2190_v61, 0.0  ;;  %v2367_v29 = vadd.f32 %v5083_v52, %v2328_v36  ;;  %v4477_v57 = vld [vmem:[#allocation10 + $0x18] sm:$0xff]  }
 0x2a5   :  { %4189 = vmatprep.subr.bf16.mxu1 %v4477_v57 }
 0x2a6   :  { %v2329_v62 = vmul.f32 %v5074_v51, %v2290_v7  ;;  %v2370_v1 = vadd.f32 %v5083_v52, %v2331_v38  ;;  %4190 = vmatpush3.bf16.msra.mxu1 %v4477_v57 }
 0x2a8   :  { %v2368_v4 = vadd.f32 %v5083_v52, %v2329_v62  ;;  %v2396_v53 = vpack.c.bf16 %v2370_v1, %v2369_v28 }
 0x2aa   :  { %v2395_v8 = vpack.c.bf16 %v2368_v4, %v2367_v29  ;;  %v4478_v29 = vld [vmem:[#allocation10 + $0x10] sm:$0xff]  }
 0x2ab   :  { %v4115_v56 = vpop.f32.mrf.mxu1  ;;  %4191 = vmatprep.subr.bf16.mxu1 %v4478_v29 }
 0x2ac   :  { %4157 = vmatprep.mubr.bf16.mxu0 %v2395_v8  ;;  %v2211_v43 = vadd.f32 %v4115_v56, %v5066_v0  ;;  %4192 = vmatpush3.bf16.msra.mxu1 %v4478_v29 }
 0x2ad   :  { %v2202_v10 = vpop.f32.mrf.mxu1  ;;  %4158 = vmatmul.mubr.bf16.gmra.mxu0 %v2396_v53 }
 0x2ae   :  { %v2203_v11 = vadd.f32 %v5066_v0, %v2202_v10  ;;  %v2295_v18 = vmax.f32 %v2211_v43, 0.0  ;;  %v4479_v43 = vld [vmem:[#allocation10 + $0x8] sm:$0xff]  }
 0x2af   :  { %v4116_v60 = vpop.f32.mrf.mxu1  ;;  %4193 = vmatprep.subr.bf16.mxu1 %v4479_v43 }
 0x2b0   :  { %v2293_v6 = vmax.f32 %v2203_v11, 0.0  ;;  %v2214_v15 = vadd.f32 %v4116_v60, %v5066_v0  ;;  %v2334_v40 = vmul.f32 %v5074_v51, %v2295_v18  ;;  %4194 = vmatpush3.bf16.msra.mxu1 %v4479_v43  ;;  %v4480_v18 = vld [vmem:[#allocation10] sm:$0xff]  }
 0x2b1   :  { %v2205_v16 = vpop.f32.mrf.mxu1  ;;  %4195 = vmatprep.subr.bf16.mxu1 %v4480_v18 }
 0x2b2   :  { %v2296_v21 = vmax.f32 %v2214_v15, 0.0  ;;  %v2206_v23 = vadd.f32 %v5066_v0, %v2205_v16  ;;  %v2332_v63 = vmul.f32 %v5074_v51, %v2293_v6  ;;  %v2373_v32 = vadd.f32 %v5083_v52, %v2334_v40 }
 0x2b4   :  { %v2335_v44 = vmul.f32 %v5074_v51, %v2296_v21  ;;  %v2294_v2 = vmax.f32 %v2206_v23, 0.0  ;;  %v2371_v9 = vadd.f32 %v5083_v52, %v2332_v63  ;;  %4196 = vmatpush3.bf16.msra.mxu1 %v4480_v18 }
 0x2b6   :  { %v2333_v55 = vmul.f32 %v5074_v51, %v2294_v2  ;;  %v2374_v30 = vadd.f32 %v5083_v52, %v2335_v44 }
 0x2b8   :  { %v2372_v31 = vadd.f32 %v5083_v52, %v2333_v55  ;;  %v2398_v34 = vpack.c.bf16 %v2374_v30, %v2373_v32 }
 0x2ba   :  { %v2397_v3 = vpack.c.bf16 %v2372_v31, %v2371_v9 }
 0x2bb   :  { %v4119_v19 = vpop.f32.mrf.mxu1 }
 0x2bc   :  { %4161 = vmatprep.mubr.bf16.mxu0 %v2397_v3  ;;  %v2227_v25 = vadd.f32 %v4119_v19, %v5066_v0 }
 0x2bd   :  { %v2218_v13 = vpop.f32.mrf.mxu1  ;;  %4162 = vmatmul.mubr.bf16.gmra.mxu0 %v2398_v34 }
 0x2be   :  { %v2219_v24 = vadd.f32 %v5066_v0, %v2218_v13  ;;  %v2299_v49 = vmax.f32 %v2227_v25, 0.0 }
 0x2bf   :  { %v4120_v14 = vpop.f32.mrf.mxu1 }
 0x2c0   :  { %v2297_v35 = vmax.f32 %v2219_v24, 0.0  ;;  %v2230_v37 = vadd.f32 %v4120_v14, %v5066_v0  ;;  %v2338_v45 = vmul.f32 %v5074_v51, %v2299_v49 }
 0x2c1   :  { %v2221_v17 = vpop.f32.mrf.mxu1 }
 0x2c2   :  { %v2300_v12 = vmax.f32 %v2230_v37, 0.0  ;;  %v2222_v22 = vadd.f32 %v5066_v0, %v2221_v17  ;;  %v2336_v27 = vmul.f32 %v5074_v51, %v2297_v35  ;;  %v2377_v50 = vadd.f32 %v5083_v52, %v2338_v45 }
 0x2c4   :  { %v2339_v39 = vmul.f32 %v5074_v51, %v2300_v12  ;;  %v2298_v42 = vmax.f32 %v2222_v22, 0.0  ;;  %v2375_v26 = vadd.f32 %v5083_v52, %v2336_v27 }
 0x2c6   :  { %v2337_v20 = vmul.f32 %v5074_v51, %v2298_v42  ;;  %v2378_v47 = vadd.f32 %v5083_v52, %v2339_v39 }
 0x2c8   :  { %v2376_v48 = vadd.f32 %v5083_v52, %v2337_v20  ;;  %v2400_v54 = vpack.c.bf16 %v2378_v47, %v2377_v50 }
 0x2ca   :  { %v2399_v41 = vpack.c.bf16 %v2376_v48, %v2375_v26 }
 0x2cb   :  { %v4123_v46 = vpop.f32.mrf.mxu1 }
 0x2cc   :  { %4165 = vmatprep.mubr.bf16.mxu0 %v2399_v41  ;;  %v2243_v58 = vadd.f32 %v4123_v46, %v5066_v0 }
 0x2cd   :  { %v2234_v33 = vpop.f32.mrf.mxu1  ;;  %4166 = vmatmul.mubr.bf16.gmra.mxu0 %v2400_v54 }
 0x2ce   :  { %v2235_v59 = vadd.f32 %v5066_v0, %v2234_v33  ;;  %v2303_v7 = vmax.f32 %v2243_v58, 0.0 }
 0x2cf   :  { %v4124_v61 = vpop.f32.mrf.mxu1 }
 0x2d0   :  { %v2301_v36 = vmax.f32 %v2235_v59, 0.0  ;;  %v2246_v38 = vadd.f32 %v4124_v61, %v5066_v0  ;;  %v2342_v53 = vmul.f32 %v5074_v51, %v2303_v7 }
 0x2d1   :  { %v2237_v5 = vpop.f32.mrf.mxu1 }
 0x2d2   :  { %v2304_v62 = vmax.f32 %v2246_v38, 0.0  ;;  %v2238_v1 = vadd.f32 %v5066_v0, %v2237_v5  ;;  %v2340_v4 = vmul.f32 %v5074_v51, %v2301_v36  ;;  %v2381_v6 = vadd.f32 %v5083_v52, %v2342_v53  ;;  %v5185_v53 = vld [vmem:[%s5659_s11] ss:$0 sm:$0xff] }
 0x2d4   :  { %v2343_v28 = vmul.f32 %v5074_v51, %v2304_v62  ;;  %v2302_v8 = vmax.f32 %v2238_v1, 0.0  ;;  %v2379_v11 = vadd.f32 %v5083_v52, %v2340_v4 }
 0x2d6   :  { %v2341_v56 = vmul.f32 %v5074_v51, %v2302_v8  ;;  %v2382_v10 = vadd.f32 %v5083_v52, %v2343_v28 }
 0x2d8   :  { %v2380_v60 = vadd.f32 %v5083_v52, %v2341_v56  ;;  %v2402_v16 = vpack.c.bf16 %v2382_v10, %v2381_v6 }
 0x2da   :  { %v2401_v15 = vpack.c.bf16 %v2380_v60, %v2379_v11 }
 0x2db   :  { %v4127_v21 = vpop.f32.mrf.mxu1 }
 0x2dc   :  { %4169 = vmatprep.mubr.bf16.mxu0 %v2401_v15  ;;  %v2259_v23 = vadd.f32 %v4127_v21, %v5066_v0  ;;  %v5194_v15 = vld [vmem:[%s5660_s12] ss:$0 sm:$0xff] }
 0x2dd   :  { %v2250_v63 = vpop.f32.mrf.mxu1  ;;  %4170 = vmatmul.mubr.bf16.gmra.mxu0 %v2402_v16 }
 0x2de   :  { %v2251_v44 = vadd.f32 %v5066_v0, %v2250_v63  ;;  %v2307_v30 = vmax.f32 %v2259_v23, 0.0 }
 0x2df   :  { %v4128_v2 = vpop.f32.mrf.mxu1 }
 0x2e0   :  { %v2305_v40 = vmax.f32 %v2251_v44, 0.0  ;;  %v2262_v55 = vadd.f32 %v4128_v2, %v5066_v0  ;;  %v2346_v25 = vmul.f32 %v5074_v51, %v2307_v30 }
 0x2e1   :  { %v2253_v9 = vpop.f32.mrf.mxu1 }
 0x2e2   :  { %v2308_v31 = vmax.f32 %v2262_v55, 0.0  ;;  %v2254_v32 = vadd.f32 %v5066_v0, %v2253_v9  ;;  %v2344_v3 = vmul.f32 %v5074_v51, %v2305_v40  ;;  %v2385_v37 = vadd.f32 %v5083_v52, %v2346_v25 }
 0x2e4   :  { %v2347_v34 = vmul.f32 %v5074_v51, %v2308_v31  ;;  %v2306_v19 = vmax.f32 %v2254_v32, 0.0  ;;  %v2383_v14 = vadd.f32 %v5083_v52, %v2344_v3 }
 0x2e6   :  { %v2345_v13 = vmul.f32 %v5074_v51, %v2306_v19  ;;  %v2386_v24 = vadd.f32 %v5083_v52, %v2347_v34 }
 0x2e8   :  { %v2384_v35 = vadd.f32 %v5083_v52, %v2345_v13  ;;  %v2404_v17 = vpack.c.bf16 %v2386_v24, %v2385_v37 }
 0x2ea   :  { %v2403_v49 = vpack.c.bf16 %v2384_v35, %v2383_v14 }
 0x2eb   :  { %v4131_v12 = vpop.f32.mrf.mxu1 }
 0x2ec   :  { %4173 = vmatprep.mubr.bf16.mxu0 %v2403_v49  ;;  %v2275_v22 = vadd.f32 %v4131_v12, %v5066_v0 }
 0x2ed   :  { %v2266_v27 = vpop.f32.mrf.mxu1  ;;  %4174 = vmatmul.mubr.bf16.gmra.mxu0 %v2404_v17 }
 0x2ee   :  { %v2267_v39 = vadd.f32 %v5066_v0, %v2266_v27  ;;  %v2311_v47 = vmax.f32 %v2275_v22, 0.0 }
 0x2ef   :  { %v4132_v42 = vpop.f32.mrf.mxu1 }
 0x2f0   :  { %v2309_v45 = vmax.f32 %v2267_v39, 0.0  ;;  %v2278_v20 = vadd.f32 %v4132_v42, %v5066_v0  ;;  %v2350_v58 = vmul.f32 %v5074_v51, %v2311_v47 }
 0x2f1   :  { %v2269_v26 = vpop.f32.mrf.mxu1 }
 0x2f2   :  { %v2312_v48 = vmax.f32 %v2278_v20, 0.0  ;;  %v2270_v50 = vadd.f32 %v5066_v0, %v2269_v26  ;;  %v2348_v41 = vmul.f32 %v5074_v51, %v2309_v45  ;;  %v2389_v36 = vadd.f32 %v5083_v52, %v2350_v58  ;;  %v5177_v0 = vld [vmem:[%s5658_s10] ss:$0 sm:$0xff] }
 0x2f4   :  { %v2351_v54 = vmul.f32 %v5074_v51, %v2312_v48  ;;  %v2310_v46 = vmax.f32 %v2270_v50, 0.0  ;;  %v2387_v57 = vadd.f32 %v5083_v52, %v2348_v41 }
 0x2f6   :  { %v2349_v33 = vmul.f32 %v5074_v51, %v2310_v46  ;;  %v2390_v59 = vadd.f32 %v5083_v52, %v2351_v54 }
 0x2f8   :  { %v2388_v61 = vadd.f32 %v5083_v52, %v2349_v33  ;;  %v2406_v7 = vpack.c.bf16 %v2390_v59, %v2389_v36 }
 0x2fa   :  { %v2405_v38 = vpack.c.bf16 %v2388_v61, %v2387_v57 }
 0x2fc   :  { %4177 = vmatprep.mubr.bf16.mxu0 %v2405_v38 }
 0x2fd   :  { %4178 = vmatmul.mubr.bf16.gmra.mxu0 %v2406_v7 }
 0x34d   :  { %v4151_v5 = vpop.f32.mrf.mxu0 }
 0x34e   :  { %v2521_v51 = vadd.f32 %v4151_v5, %v5177_v0 }
 0x34f   :  { %v2512_v62 = vpop.f32.mrf.mxu0 }
 0x350   :  { %v2513_v1 = vadd.f32 %v5177_v0, %v2512_v62  ;;  %v2641_v52 = vmax.f32 %v2521_v51, 0.0 }
 0x351   :  { %v4152_v29 = vpop.f32.mrf.mxu0 }
 0x352   :  { %v2639_v4 = vmax.f32 %v2513_v1, 0.0  ;;  %v2524_v28 = vadd.f32 %v4152_v29, %v5177_v0  ;;  %v2680_v6 = vmul.f32 %v5185_v53, %v2641_v52 }
 0x353   :  { %v2515_v8 = vpop.f32.mrf.mxu0 }
 0x354   :  { %v2642_v56 = vmax.f32 %v2524_v28, 0.0  ;;  %v2516_v43 = vadd.f32 %v5177_v0, %v2515_v8  ;;  %v2678_v10 = vmul.f32 %v5185_v53, %v2639_v4  ;;  %v2719_v63 = vadd.f32 %v5194_v15, %v2680_v6 }
 0x356   :  { %v2681_v11 = vmul.f32 %v5185_v53, %v2642_v56  ;;  %v2640_v60 = vmax.f32 %v2516_v43, 0.0  ;;  %v2717_v21 = vadd.f32 %v5194_v15, %v2678_v10 }
 0x358   :  { %v2679_v18 = vmul.f32 %v5185_v53, %v2640_v60  ;;  %v2720_v16 = vadd.f32 %v5194_v15, %v2681_v11 }
 0x35a   :  { %v2718_v23 = vadd.f32 %v5194_v15, %v2679_v18  ;;  %v2750_v2 = vpack.c.bf16 %v2720_v16, %v2719_v63 }
 0x35c   :  { %v2749_v44 = vpack.c.bf16 %v2718_v23, %v2717_v21 }
 0x35d   :  { %v4155_v40 = vpop.f32.mrf.mxu0 }
 0x35e   :  { %4197 = vmatprep.mubr.bf16.mxu1 %v2749_v44  ;;  %v2537_v55 = vadd.f32 %v4155_v40, %v5177_v0 }
 0x35f   :  { %v2528_v30 = vpop.f32.mrf.mxu0  ;;  %4198 = vmatmul.mubr.bf16.vlgmr.msra.gmra.mxu1 %v2750_v2 }
 0x360   :  { %v2529_v9 = vadd.f32 %v5177_v0, %v2528_v30  ;;  %v2645_v34 = vmax.f32 %v2537_v55, 0.0 }
 0x361   :  { %v4156_v31 = vpop.f32.mrf.mxu0 }
 0x362   :  { %v2643_v32 = vmax.f32 %v2529_v9, 0.0  ;;  %v2540_v3 = vadd.f32 %v4156_v31, %v5177_v0  ;;  %v2684_v37 = vmul.f32 %v5185_v53, %v2645_v34 }
 0x363   :  { %v2531_v19 = vpop.f32.mrf.mxu0 }
 0x364   :  { %v2646_v25 = vmax.f32 %v2540_v3, 0.0  ;;  %v2532_v13 = vadd.f32 %v5177_v0, %v2531_v19  ;;  %v2682_v24 = vmul.f32 %v5185_v53, %v2643_v32  ;;  %v2723_v27 = vadd.f32 %v5194_v15, %v2684_v37 }
 0x366   :  { %v2685_v14 = vmul.f32 %v5185_v53, %v2646_v25  ;;  %v2644_v35 = vmax.f32 %v2532_v13, 0.0  ;;  %v2721_v12 = vadd.f32 %v5194_v15, %v2682_v24 }
 0x368   :  { %v2683_v49 = vmul.f32 %v5185_v53, %v2644_v35  ;;  %v2724_v17 = vadd.f32 %v5194_v15, %v2685_v14 }
 0x36a   :  { %v2722_v22 = vadd.f32 %v5194_v15, %v2683_v49  ;;  %v2752_v42 = vpack.c.bf16 %v2724_v17, %v2723_v27 }
 0x36c   :  { %v2751_v39 = vpack.c.bf16 %v2722_v22, %v2721_v12 }
 0x36d   :  { %v4159_v45 = vpop.f32.mrf.mxu0 }
 0x36e   :  { %4201 = vmatprep.mubr.bf16.mxu1 %v2751_v39  ;;  %v2553_v20 = vadd.f32 %v4159_v45, %v5177_v0 }
 0x36f   :  { %v2544_v47 = vpop.f32.mrf.mxu0  ;;  %4202 = vmatmul.mubr.bf16.gmra.mxu1 %v2752_v42 }
 0x370   :  { %v2545_v26 = vadd.f32 %v5177_v0, %v2544_v47  ;;  %v2649_v54 = vmax.f32 %v2553_v20, 0.0 }
 0x371   :  { %v4160_v48 = vpop.f32.mrf.mxu0 }
 0x372   :  { %v2647_v50 = vmax.f32 %v2545_v26, 0.0  ;;  %v2556_v41 = vadd.f32 %v4160_v48, %v5177_v0  ;;  %v2688_v36 = vmul.f32 %v5185_v53, %v2649_v54 }
 0x373   :  { %v2547_v46 = vpop.f32.mrf.mxu0 }
 0x374   :  { %v2650_v58 = vmax.f32 %v2556_v41, 0.0  ;;  %v2548_v33 = vadd.f32 %v5177_v0, %v2547_v46  ;;  %v2686_v59 = vmul.f32 %v5185_v53, %v2647_v50  ;;  %v2727_v62 = vadd.f32 %v5194_v15, %v2688_v36 }
 0x376   :  { %v2689_v57 = vmul.f32 %v5185_v53, %v2650_v58  ;;  %v2648_v61 = vmax.f32 %v2548_v33, 0.0  ;;  %v2725_v5 = vadd.f32 %v5194_v15, %v2686_v59 }
 0x378   :  { %v2687_v38 = vmul.f32 %v5185_v53, %v2648_v61  ;;  %v2728_v7 = vadd.f32 %v5194_v15, %v2689_v57 }
 0x37a   :  { %v2726_v51 = vadd.f32 %v5194_v15, %v2687_v38  ;;  %v2754_v29 = vpack.c.bf16 %v2728_v7, %v2727_v62 }
 0x37c   :  { %v2753_v1 = vpack.c.bf16 %v2726_v51, %v2725_v5 }
 0x37d   :  { %v4163_v4 = vpop.f32.mrf.mxu0 }
 0x37e   :  { %4205 = vmatprep.mubr.bf16.mxu1 %v2753_v1  ;;  %v2569_v28 = vadd.f32 %v4163_v4, %v5177_v0 }
 0x37f   :  { %v2560_v52 = vpop.f32.mrf.mxu0  ;;  %4206 = vmatmul.mubr.bf16.gmra.mxu1 %v2754_v29 }
 0x380   :  { %v2561_v8 = vadd.f32 %v5177_v0, %v2560_v52  ;;  %v2653_v11 = vmax.f32 %v2569_v28, 0.0 }
 0x381   :  { %v4164_v56 = vpop.f32.mrf.mxu0 }
 0x382   :  { %v2651_v43 = vmax.f32 %v2561_v8, 0.0  ;;  %v2572_v10 = vadd.f32 %v4164_v56, %v5177_v0  ;;  %v2692_v63 = vmul.f32 %v5185_v53, %v2653_v11 }
 0x383   :  { %v2563_v60 = vpop.f32.mrf.mxu0 }
 0x384   :  { %v2654_v6 = vmax.f32 %v2572_v10, 0.0  ;;  %v2564_v18 = vadd.f32 %v5177_v0, %v2563_v60  ;;  %v2690_v16 = vmul.f32 %v5185_v53, %v2651_v43  ;;  %v2731_v30 = vadd.f32 %v5194_v15, %v2692_v63 }
 0x386   :  { %v2693_v21 = vmul.f32 %v5185_v53, %v2654_v6  ;;  %v2652_v23 = vmax.f32 %v2564_v18, 0.0  ;;  %v2729_v40 = vadd.f32 %v5194_v15, %v2690_v16 }
 0x388   :  { %v2691_v44 = vmul.f32 %v5185_v53, %v2652_v23  ;;  %v2732_v2 = vadd.f32 %v5194_v15, %v2693_v21 }
 0x38a   :  { %v2730_v55 = vadd.f32 %v5194_v15, %v2691_v44  ;;  %v2756_v31 = vpack.c.bf16 %v2732_v2, %v2731_v30 }
 0x38c   :  { %v2755_v9 = vpack.c.bf16 %v2730_v55, %v2729_v40 }
 0x38d   :  { %v4167_v32 = vpop.f32.mrf.mxu0 }
 0x38e   :  { %4209 = vmatprep.mubr.bf16.mxu1 %v2755_v9  ;;  %v2585_v3 = vadd.f32 %v4167_v32, %v5177_v0 }
 0x38f   :  { %v2576_v34 = vpop.f32.mrf.mxu0  ;;  %4210 = vmatmul.mubr.bf16.gmra.mxu1 %v2756_v31 }
 0x390   :  { %v2577_v19 = vadd.f32 %v5177_v0, %v2576_v34  ;;  %v2657_v14 = vmax.f32 %v2585_v3, 0.0 }
 0x391   :  { %v4168_v25 = vpop.f32.mrf.mxu0 }
 0x392   :  { %v2655_v13 = vmax.f32 %v2577_v19, 0.0  ;;  %v2588_v24 = vadd.f32 %v4168_v25, %v5177_v0  ;;  %v2696_v27 = vmul.f32 %v5185_v53, %v2657_v14 }
 0x393   :  { %v2579_v35 = vpop.f32.mrf.mxu0 }
 0x394   :  { %v2658_v37 = vmax.f32 %v2588_v24, 0.0  ;;  %v2580_v49 = vadd.f32 %v5177_v0, %v2579_v35  ;;  %v2694_v17 = vmul.f32 %v5185_v53, %v2655_v13  ;;  %v2735_v47 = vadd.f32 %v5194_v15, %v2696_v27 }
 0x396   :  { %v2697_v12 = vmul.f32 %v5185_v53, %v2658_v37  ;;  %v2656_v22 = vmax.f32 %v2580_v49, 0.0  ;;  %v2733_v45 = vadd.f32 %v5194_v15, %v2694_v17 }
 0x398   :  { %v2695_v39 = vmul.f32 %v5185_v53, %v2656_v22  ;;  %v2736_v42 = vadd.f32 %v5194_v15, %v2697_v12 }
 0x39a   :  { %v2734_v20 = vadd.f32 %v5194_v15, %v2695_v39  ;;  %v2758_v48 = vpack.c.bf16 %v2736_v42, %v2735_v47 }
 0x39c   :  { %v2757_v26 = vpack.c.bf16 %v2734_v20, %v2733_v45 }
 0x39d   :  { %v4171_v50 = vpop.f32.mrf.mxu0 }
 0x39e   :  { %4213 = vmatprep.mubr.bf16.mxu1 %v2757_v26  ;;  %v2601_v41 = vadd.f32 %v4171_v50, %v5177_v0 }
 0x39f   :  { %v2592_v54 = vpop.f32.mrf.mxu0  ;;  %4214 = vmatmul.mubr.bf16.gmra.mxu1 %v2758_v48 }
 0x3a0   :  { %v2593_v46 = vadd.f32 %v5177_v0, %v2592_v54  ;;  %v2661_v57 = vmax.f32 %v2601_v41, 0.0 }
 0x3a1   :  { %v4172_v58 = vpop.f32.mrf.mxu0 }
 0x3a2   :  { %v2659_v33 = vmax.f32 %v2593_v46, 0.0  ;;  %v2604_v59 = vadd.f32 %v4172_v58, %v5177_v0  ;;  %v2700_v62 = vmul.f32 %v5185_v53, %v2661_v57 }
 0x3a3   :  { %v2595_v61 = vpop.f32.mrf.mxu0 }
 0x3a4   :  { %v2662_v36 = vmax.f32 %v2604_v59, 0.0  ;;  %v2596_v38 = vadd.f32 %v5177_v0, %v2595_v61  ;;  %v2698_v7 = vmul.f32 %v5185_v53, %v2659_v33  ;;  %v2739_v52 = vadd.f32 %v5194_v15, %v2700_v62  ;;  %v5288_v33 = vld [vmem:[%s5662_s14] ss:$0 sm:$0xff]  ;;  %s4746_s14 = smov [#allocation11]  }
 0x3a5   :  { %s3389_s24 = sshll.u32 %s4746_s14, 4  ;;  %s3390_s24 = int_to_ptr.vmem [resolvable:$true] %s3389_s24 }
 0x3a6   :  { %v2701_v5 = vmul.f32 %v5185_v53, %v2662_v36  ;;  %v2660_v51 = vmax.f32 %v2596_v38, 0.0  ;;  %v2737_v4 = vadd.f32 %v5194_v15, %v2698_v7  ;;  %s4709_s25 = scalar_lea.vmem %s3390_s24, 4096  ;;  %p4714_p12 = scmp.lt.s32.totalorder %s3390_s24, %s3390_s24 }
 0x3a7   :  { %p4710_p11 = scmp.ne.s32.totalorder %s3390_s24, %s4709_s25  ;;  %p4715_p13 = scmp.lt.s32.totalorder %s4709_s25, %s4709_s25 }
 0x3a8   :  { %v2699_v1 = vmul.f32 %v5185_v53, %v2660_v51  ;;  %v2740_v29 = vadd.f32 %v5194_v15, %v2701_v5 }
 0x3a9   :  { %p4716_p0 = por %p4715_p13, %p4714_p12 }
 0x3aa   :  { %v2738_v28 = vadd.f32 %v5194_v15, %v2699_v1  ;;  %v2760_v56 = vpack.c.bf16 %v2740_v29, %v2739_v52 }
 0x3ab   :  { %p4717_p1 = pnand %p4716_p0, %p4710_p11 }
 0x3ac   :  { %v2759_v8 = vpack.c.bf16 %v2738_v28, %v2737_v4 }
 0x3ad   :  { %v4175_v43 = vpop.f32.mrf.mxu0 }
 0x3ae   :  { %4217 = vmatprep.mubr.bf16.mxu1 %v2759_v8  ;;  %v2617_v10 = vadd.f32 %v4175_v43, %v5177_v0 }
 0x3af   :  { %v2608_v11 = vpop.f32.mrf.mxu0  ;;  %4218 = vmatmul.mubr.bf16.gmra.mxu1 %v2760_v56 }
 0x3b0   :  { %v2609_v60 = vadd.f32 %v5177_v0, %v2608_v11  ;;  %v2665_v21 = vmax.f32 %v2617_v10, 0.0 }
 0x3b1   :  { %v4176_v6 = vpop.f32.mrf.mxu0 }
 0x3b2   :  { %v2663_v18 = vmax.f32 %v2609_v60, 0.0  ;;  %v2620_v16 = vadd.f32 %v4176_v6, %v5177_v0  ;;  %v2704_v30 = vmul.f32 %v5185_v53, %v2665_v21 }
 0x3b3   :  { %v2611_v23 = vpop.f32.mrf.mxu0 }
 0x3b4   :  { %v2666_v63 = vmax.f32 %v2620_v16, 0.0  ;;  %v2612_v44 = vadd.f32 %v5177_v0, %v2611_v23  ;;  %v2702_v2 = vmul.f32 %v5185_v53, %v2663_v18  ;;  %v2743_v34 = vadd.f32 %v5194_v15, %v2704_v30 }
 0x3b6   :  { %v2705_v40 = vmul.f32 %v5185_v53, %v2666_v63  ;;  %v2664_v55 = vmax.f32 %v2612_v44, 0.0  ;;  %v2741_v32 = vadd.f32 %v5194_v15, %v2702_v2 }
 0x3b8   :  { %v2703_v9 = vmul.f32 %v5185_v53, %v2664_v55  ;;  %v2744_v31 = vadd.f32 %v5194_v15, %v2705_v40 }
 0x3ba   :  { %v2742_v3 = vadd.f32 %v5194_v15, %v2703_v9  ;;  %v2762_v25 = vpack.c.bf16 %v2744_v31, %v2743_v34 }
 0x3bc   :  { %v2761_v19 = vpack.c.bf16 %v2742_v3, %v2741_v32 }
 0x3bd   :  { %v4179_v13 = vpop.f32.mrf.mxu0 }
 0x3be   :  { %4221 = vmatprep.mubr.bf16.mxu1 %v2761_v19  ;;  %v2633_v24 = vadd.f32 %v4179_v13, %v5177_v0 }
 0x3bf   :  { %v2624_v14 = vpop.f32.mrf.mxu0  ;;  %4222 = vmatmul.mubr.bf16.gmra.mxu1 %v2762_v25 }
 0x3c0   :  { %v2625_v35 = vadd.f32 %v5177_v0, %v2624_v14  ;;  %v2669_v12 = vmax.f32 %v2633_v24, 0.0 }
 0x3c1   :  { %v4180_v37 = vpop.f32.mrf.mxu0 }
 0x3c2   :  { %v2667_v49 = vmax.f32 %v2625_v35, 0.0  ;;  %v2636_v17 = vadd.f32 %v4180_v37, %v5177_v0  ;;  %v2708_v47 = vmul.f32 %v5185_v53, %v2669_v12 }
 0x3c3   :  { %v2627_v22 = vpop.f32.mrf.mxu0 }
 0x3c4   :  { %v2670_v27 = vmax.f32 %v2636_v17, 0.0  ;;  %v2628_v39 = vadd.f32 %v5177_v0, %v2627_v22  ;;  %v2706_v42 = vmul.f32 %v5185_v53, %v2667_v49  ;;  %v2747_v54 = vadd.f32 %v5194_v15, %v2708_v47 }
 0x3c5   :  { %v3029_v0 = vlaneseq }
 0x3c6   :  { %v2709_v45 = vmul.f32 %v5185_v53, %v2670_v27  ;;  %v2668_v20 = vmax.f32 %v2628_v39, 0.0  ;;  %v2745_v50 = vadd.f32 %v5194_v15, %v2706_v42 }
 0x3c7   :  { %v5290_v59 = vand.u32 127, %v3029_v0 }
 0x3c8   :  { %v2707_v26 = vmul.f32 %v5185_v53, %v2668_v20  ;;  %v2748_v48 = vadd.f32 %v5194_v15, %v2709_v45 }
 0x3c9   :  { %vm3031_vm0 = vcmp.lt.s32.totalorder %v5290_v59, 10 }
 0x3ca   :  { %v2746_v41 = vadd.f32 %v5194_v15, %v2707_v26  ;;  %v2764_v58 = vpack.c.bf16 %v2748_v48, %v2747_v54 }
 0x3cc   :  { %v2763_v46 = vpack.c.bf16 %v2746_v41, %v2745_v50 }
 0x3ce   :  { %4225 = vmatprep.mubr.bf16.mxu1 %v2763_v46 }
 0x3cf   :  { %4226 = vmatmul.mubr.bf16.gmra.mxu1 %v2764_v58 }
 0x41f   :  { %v4199_v53 = vpop.f32.mrf.mxu1 }
 0x420   :  { %v2879_v57 = vadd.f32 %v4199_v53, %v5288_v33 }
 0x421   :  { %v2870_v61 = vpop.f32.mrf.mxu1 }
 0x422   :  { %v2999_v36 = vmax.f32 %v2879_v57, 0.0  ;;  %v2871_v15 = vadd.f32 %v5288_v33, %v2870_v61 }
 0x423   :  { %v4200_v38 = vpop.f32.mrf.mxu1 }
 0x424   :  { %v2997_v7 = vmax.f32 %v2871_v15, 0.0  ;;  %v2882_v5 = vadd.f32 %v4200_v38, %v5288_v33  ;;  %v5298_v51 = vsel %vm3031_vm0, %v2999_v36, -1e+30 }
 0x425   :  { %3068 = vmax.xlane.f32.xlu1 %v5298_v51  ;;  %v2873_v62 = vpop.f32.mrf.mxu1 }
 0x426   :  { %v3000_v1 = vmax.f32 %v2882_v5, 0.0  ;;  %v2874_v29 = vadd.f32 %v5288_v33, %v2873_v62  ;;  %v5304_v4 = vsel %vm3031_vm0, %v2997_v7, -1e+30 }
 0x427   :  { %3064 = vmax.xlane.f32.xlu0 %v5304_v4 }
 0x428   :  { %v2998_v28 = vmax.f32 %v2874_v29, 0.0  ;;  %v5309_v52 = vsel %vm3031_vm0, %v3000_v1, -1e+30 }
 0x429   :  { %3070 = vmax.xlane.f32.xlu1 %v5309_v52 }
 0x42a   :  { %v5314_v8 = vsel %vm3031_vm0, %v2998_v28, -1e+30 }
 0x42b   :  { %3066 = vmax.xlane.f32.xlu0 %v5314_v8 }
 0x42f   :  { %v4203_v56 = vpop.f32.mrf.mxu1 }
 0x430   :  { %v2895_v43 = vadd.f32 %v4203_v56, %v5288_v33 }
 0x431   :  { %v2886_v10 = vpop.f32.mrf.mxu1 }
 0x432   :  { %v3003_v11 = vmax.f32 %v2895_v43, 0.0  ;;  %v2887_v60 = vadd.f32 %v5288_v33, %v2886_v10 }
 0x433   :  { %v4204_v6 = vpop.f32.mrf.mxu1 }
 0x434   :  { %v3001_v18 = vmax.f32 %v2887_v60, 0.0  ;;  %v2898_v16 = vadd.f32 %v4204_v6, %v5288_v33  ;;  %v5322_v21 = vsel %vm3031_vm0, %v3003_v11, -1e+30 }
 0x435   :  { %v2889_v23 = vpop.f32.mrf.mxu1  ;;  %3076 = vmax.xlane.f32.xlu0 %v5322_v21 }
 0x436   :  { %v3004_v63 = vmax.f32 %v2898_v16, 0.0  ;;  %v2890_v44 = vadd.f32 %v5288_v33, %v2889_v23  ;;  %v5332_v55 = vsel %vm3031_vm0, %v3001_v18, -1e+30 }
 0x438   :  { %v3002_v2 = vmax.f32 %v2890_v44, 0.0  ;;  %v5328_v40 = vsel %vm3031_vm0, %v3004_v63, -1e+30 }
 0x439   :  { %3078 = vmax.xlane.f32.xlu1 %v5328_v40  ;;  %3072 = vmax.xlane.f32.xlu0 %v5332_v55 }
 0x43a   :  { %v5338_v30 = vsel %vm3031_vm0, %v3002_v2, -1e+30 }
 0x43d   :  { %3074 = vmax.xlane.f32.xlu1 %v5338_v30 }
 0x43f   :  { %v4207_v9 = vpop.f32.mrf.mxu1 }
 0x440   :  { %v2911_v31 = vadd.f32 %v4207_v9, %v5288_v33 }
 0x441   :  { %v2902_v32 = vpop.f32.mrf.mxu1 }
 0x442   :  { %v3007_v3 = vmax.f32 %v2911_v31, 0.0  ;;  %v2903_v34 = vadd.f32 %v5288_v33, %v2902_v32 }
 0x443   :  { %v4208_v19 = vpop.f32.mrf.mxu1 }
 0x444   :  { %v3005_v25 = vmax.f32 %v2903_v34, 0.0  ;;  %v2914_v13 = vadd.f32 %v4208_v19, %v5288_v33  ;;  %v5346_v24 = vsel %vm3031_vm0, %v3007_v3, -1e+30 }
 0x445   :  { %v2905_v14 = vpop.f32.mrf.mxu1  ;;  %3084 = vmax.xlane.f32.xlu0 %v5346_v24 }
 0x446   :  { %v3008_v35 = vmax.f32 %v2914_v13, 0.0  ;;  %v2906_v37 = vadd.f32 %v5288_v33, %v2905_v14  ;;  %v5356_v12 = vsel %vm3031_vm0, %v3005_v25, -1e+30 }
 0x448   :  { %v3006_v49 = vmax.f32 %v2906_v37, 0.0  ;;  %v5352_v17 = vsel %vm3031_vm0, %v3008_v35, -1e+30 }
 0x449   :  { %3086 = vmax.xlane.f32.xlu1 %v5352_v17  ;;  %3080 = vmax.xlane.f32.xlu0 %v5356_v12 }
 0x44a   :  { %v5362_v22 = vsel %vm3031_vm0, %v3006_v49, -1e+30 }
 0x44d   :  { %3082 = vmax.xlane.f32.xlu1 %v5362_v22 }
 0x44f   :  { %v4211_v27 = vpop.f32.mrf.mxu1 }
 0x450   :  { %v2927_v39 = vadd.f32 %v4211_v27, %v5288_v33 }
 0x451   :  { %v2918_v42 = vpop.f32.mrf.mxu1 }
 0x452   :  { %v3011_v45 = vmax.f32 %v2927_v39, 0.0  ;;  %v2919_v20 = vadd.f32 %v5288_v33, %v2918_v42 }
 0x453   :  { %v4212_v47 = vpop.f32.mrf.mxu1 }
 0x454   :  { %v3009_v26 = vmax.f32 %v2919_v20, 0.0  ;;  %v2930_v48 = vadd.f32 %v4212_v47, %v5288_v33  ;;  %v5370_v50 = vsel %vm3031_vm0, %v3011_v45, -1e+30 }
 0x455   :  { %v2921_v41 = vpop.f32.mrf.mxu1  ;;  %3092 = vmax.xlane.f32.xlu0 %v5370_v50 }
 0x456   :  { %v3012_v54 = vmax.f32 %v2930_v48, 0.0  ;;  %v2922_v46 = vadd.f32 %v5288_v33, %v2921_v41  ;;  %v5380_v53 = vsel %vm3031_vm0, %v3009_v26, -1e+30 }
 0x458   :  { %v3010_v58 = vmax.f32 %v2922_v46, 0.0  ;;  %v5376_v0 = vsel %vm3031_vm0, %v3012_v54, -1e+30 }
 0x459   :  { %3094 = vmax.xlane.f32.xlu1 %v5376_v0  ;;  %3088 = vmax.xlane.f32.xlu0 %v5380_v53 }
 0x45a   :  { %v5386_v57 = vsel %vm3031_vm0, %v3010_v58, -1e+30 }
 0x45d   :  { %3090 = vmax.xlane.f32.xlu1 %v5386_v57 }
 0x45f   :  { %v4215_v61 = vpop.f32.mrf.mxu1 }
 0x460   :  { %v2943_v36 = vadd.f32 %v4215_v61, %v5288_v33 }
 0x461   :  { %v2934_v15 = vpop.f32.mrf.mxu1 }
 0x462   :  { %v3015_v38 = vmax.f32 %v2943_v36, 0.0  ;;  %v2935_v7 = vadd.f32 %v5288_v33, %v2934_v15 }
 0x463   :  { %v4216_v5 = vpop.f32.mrf.mxu1 }
 0x464   :  { %v3013_v62 = vmax.f32 %v2935_v7, 0.0  ;;  %v2946_v1 = vadd.f32 %v4216_v5, %v5288_v33  ;;  %v5394_v29 = vsel %vm3031_vm0, %v3015_v38, -1e+30 }
 0x465   :  { %v2937_v28 = vpop.f32.mrf.mxu1  ;;  %3100 = vmax.xlane.f32.xlu0 %v5394_v29 }
 0x466   :  { %v3016_v56 = vmax.f32 %v2946_v1, 0.0  ;;  %v2938_v43 = vadd.f32 %v5288_v33, %v2937_v28  ;;  %v5404_v60 = vsel %vm3031_vm0, %v3013_v62, -1e+30 }
 0x468   :  { %v3014_v10 = vmax.f32 %v2938_v43, 0.0  ;;  %v5400_v11 = vsel %vm3031_vm0, %v3016_v56, -1e+30 }
 0x469   :  { %3102 = vmax.xlane.f32.xlu1 %v5400_v11  ;;  %3096 = vmax.xlane.f32.xlu0 %v5404_v60 }
 0x46a   :  { %v5410_v6 = vsel %vm3031_vm0, %v3014_v10, -1e+30 }
 0x46d   :  { %3098 = vmax.xlane.f32.xlu1 %v5410_v6 }
 0x46f   :  { %v4219_v18 = vpop.f32.mrf.mxu1 }
 0x470   :  { %v2959_v16 = vadd.f32 %v4219_v18, %v5288_v33 }
 0x471   :  { %v2950_v23 = vpop.f32.mrf.mxu1 }
 0x472   :  { %v3019_v63 = vmax.f32 %v2959_v16, 0.0  ;;  %v2951_v44 = vadd.f32 %v5288_v33, %v2950_v23 }
 0x473   :  { %v4220_v2 = vpop.f32.mrf.mxu1 }
 0x474   :  { %v3017_v9 = vmax.f32 %v2951_v44, 0.0  ;;  %v2962_v31 = vadd.f32 %v4220_v2, %v5288_v33  ;;  %v5418_v32 = vsel %vm3031_vm0, %v3019_v63, -1e+30 }
 0x475   :  { %v2953_v3 = vpop.f32.mrf.mxu1  ;;  %3108 = vmax.xlane.f32.xlu0 %v5418_v32 }
 0x476   :  { %v3020_v34 = vmax.f32 %v2962_v31, 0.0  ;;  %v2954_v19 = vadd.f32 %v5288_v33, %v2953_v3  ;;  %v5428_v14 = vsel %vm3031_vm0, %v3017_v9, -1e+30 }
 0x478   :  { %v3018_v25 = vmax.f32 %v2954_v19, 0.0  ;;  %v5424_v13 = vsel %vm3031_vm0, %v3020_v34, -1e+30 }
 0x479   :  { %3110 = vmax.xlane.f32.xlu1 %v5424_v13  ;;  %3104 = vmax.xlane.f32.xlu0 %v5428_v14 }
 0x47a   :  { %v5434_v35 = vsel %vm3031_vm0, %v3018_v25, -1e+30 }
 0x47d   :  { %3106 = vmax.xlane.f32.xlu1 %v5434_v35 }
 0x47f   :  { %v4223_v37 = vpop.f32.mrf.mxu1 }
 0x480   :  { %v2975_v49 = vadd.f32 %v4223_v37, %v5288_v33 }
 0x481   :  { %v2966_v27 = vpop.f32.mrf.mxu1 }
 0x482   :  { %v3023_v39 = vmax.f32 %v2975_v49, 0.0  ;;  %v2967_v42 = vadd.f32 %v5288_v33, %v2966_v27 }
 0x483   :  { %v4224_v45 = vpop.f32.mrf.mxu1 }
 0x484   :  { %v3021_v20 = vmax.f32 %v2967_v42, 0.0  ;;  %v2978_v47 = vadd.f32 %v4224_v45, %v5288_v33  ;;  %v5442_v26 = vsel %vm3031_vm0, %v3023_v39, -1e+30 }
 0x485   :  { %v2969_v48 = vpop.f32.mrf.mxu1  ;;  %3116 = vmax.xlane.f32.xlu0 %v5442_v26 }
 0x486   :  { %v3024_v41 = vmax.f32 %v2978_v47, 0.0  ;;  %v2970_v54 = vadd.f32 %v5288_v33, %v2969_v48  ;;  %v5452_v61 = vsel %vm3031_vm0, %v3021_v20, -1e+30 }
 0x488   :  { %v3022_v46 = vmax.f32 %v2970_v54, 0.0  ;;  %v5448_v58 = vsel %vm3031_vm0, %v3024_v41, -1e+30 }
 0x489   :  { %3118 = vmax.xlane.f32.xlu1 %v5448_v58  ;;  %3112 = vmax.xlane.f32.xlu0 %v5452_v61 }
 0x48a   :  { %v5458_v36 = vsel %vm3031_vm0, %v3022_v46, -1e+30 }
 0x48d   :  { %3114 = vmax.xlane.f32.xlu1 %v5458_v36 }
 0x48f   :  { %v4227_v15 = vpop.f32.mrf.mxu1 }
 0x490   :  { %v2991_v7 = vadd.f32 %v4227_v15, %v5288_v33 }
 0x491   :  { %v2982_v38 = vpop.f32.mrf.mxu1 }
 0x492   :  { %v2983_v5 = vadd.f32 %v5288_v33, %v2982_v38  ;;  %v3027_v56 = vmax.f32 %v2991_v7, 0.0 }
 0x493   :  { %v4228_v62 = vpop.f32.mrf.mxu1 }
 0x494   :  { %v3025_v1 = vmax.f32 %v2983_v5, 0.0  ;;  %v2994_v43 = vadd.f32 %v4228_v62, %v5288_v33  ;;  %v5476_v44 = vsel %vm3031_vm0, %v3027_v56, -1e+30 }
 0x495   :  { %v2985_v28 = vpop.f32.mrf.mxu1 }
 0x496   :  { %v2986_v10 = vadd.f32 %v5288_v33, %v2985_v28  ;;  %v5467_v18 = vsel %vm3031_vm0, %v3025_v1, -1e+30  ;;  %v3028_v23 = vmax.f32 %v2994_v43, 0.0 }
 0x497   :  { %3120 = vmax.xlane.f32.xlu0 %v5467_v18 }
 0x498   :  { %v3026_v16 = vmax.f32 %v2986_v10, 0.0  ;;  %v5482_v33 = vsel %vm3031_vm0, %v3028_v23, -1e+30 }
 0x49a   :  { %v5472_v63 = vsel %vm3031_vm0, %v3026_v16, -1e+30 }
 0x49b   :  { %3122 = vmax.xlane.f32.xlu1 %v5472_v63  ;;  %3124 = vmax.xlane.f32.xlu0 %v5476_v44 }
 0x49f   :  { %3126 = vmax.xlane.f32.xlu1 %v5482_v33 }
 0x4ae   :  { %v3069_v2 = vpop.xlane.xlu1 %3068 }
 0x4af   :  { %v3130_v9 = vsub.f32 %v5298_v51, %v3069_v2 }
 0x4b0   :  { %v3065_v31 = vpop.xlane.xlu0 %3064 }
 0x4b1   :  { %v3164_v3 = vmul.f32 1.442695, %v3130_v9  ;;  %v3128_v34 = vsub.f32 %v5304_v4, %v3065_v31 }
 0x4b2   :  { %v3071_v19 = vpop.xlane.xlu1 %3070 }
 0x4b3   :  { %4481 = vpow2.f32 %v3164_v3  ;;  %v3160_v25 = vmul.f32 1.442695, %v3128_v34  ;;  %v3131_v37 = vsub.f32 %v5309_v52, %v3071_v19 }
 0x4b4   :  { %v3067_v49 = vpop.xlane.xlu0 %3066 }
 0x4b5   :  { %v3166_v27 = vmul.f32 1.442695, %v3131_v37  ;;  %v3129_v59 = vsub.f32 %v5314_v8, %v3067_v49  ;;  %4483 = vpow2.f32 %v3160_v25 }
 0x4b7   :  { %4485 = vpow2.f32 %v3166_v27  ;;  %v3162_v39 = vmul.f32 1.442695, %v3129_v59 }
 0x4b9   :  { %4487 = vpow2.f32 %v3162_v39 }
 0x4be   :  { %v3077_v42 = vpop.xlane.xlu0 %3076 }
 0x4bf   :  { %v3134_v51 = vsub.f32 %v5322_v21, %v3077_v42 }
 0x4c0   :  { %v5490_v45 = vpop.eup %4481 }
 0x4c1   :  { %v3172_v20 = vmul.f32 1.442695, %v3134_v51  ;;  %3228 = vadd.xlane.f32.xlu0 %v5490_v45 }
 0x4c2   :  { %v3079_v4 = vpop.xlane.xlu1 %3078  ;;  %v3073_v47 = vpop.xlane.xlu0 %3072 }
 0x4c3   :  { %v5493_v48 = vpop.eup %4483  ;;  %4489 = vpow2.f32 %v3172_v20  ;;  %v3135_v52 = vsub.f32 %v5328_v40, %v3079_v4  ;;  %v3132_v8 = vsub.f32 %v5332_v55, %v3073_v47 }
 0x4c4   :  { %v5497_v41 = vpop.eup %4485 }
 0x4c5   :  { %v3174_v54 = vmul.f32 1.442695, %v3135_v52  ;;  %v3168_v46 = vmul.f32 1.442695, %v3132_v8  ;;  %3230 = vadd.xlane.f32.xlu1 %v5497_v41  ;;  %3224 = vadd.xlane.f32.xlu0 %v5493_v48 }
 0x4c6   :  { %v3075_v21 = vpop.xlane.xlu1 %3074  ;;  %v5502_v38 = vpop.eup %4487 }
 0x4c7   :  { %4491 = vpow2.f32 %v3174_v54  ;;  %v3133_v15 = vsub.f32 %v5338_v30, %v3075_v21 }
 0x4c8   :  { %4493 = vpow2.f32 %v3168_v46 }
 0x4c9   :  { %v3170_v7 = vmul.f32 1.442695, %v3133_v15  ;;  %3226 = vadd.xlane.f32.xlu1 %v5502_v38 }
 0x4cb   :  { %4495 = vpow2.f32 %v3170_v7 }
 0x4ce   :  { %v3085_v40 = vpop.xlane.xlu0 %3084 }
 0x4cf   :  { %v3138_v55 = vsub.f32 %v5346_v24, %v3085_v40 }
 0x4d0   :  { %v5506_v5 = vpop.eup %4489 }
 0x4d1   :  { %v3180_v62 = vmul.f32 1.442695, %v3138_v55  ;;  %3236 = vadd.xlane.f32.xlu0 %v5506_v5 }
 0x4d2   :  { %v3087_v1 = vpop.xlane.xlu1 %3086  ;;  %v3081_v28 = vpop.xlane.xlu0 %3080 }
 0x4d3   :  { %4497 = vpow2.f32 %v3180_v62  ;;  %v3139_v30 = vsub.f32 %v5352_v17, %v3087_v1  ;;  %v3136_v56 = vsub.f32 %v5356_v12, %v3081_v28 }
 0x4d4   :  { %v5511_v43 = vpop.eup %4491 }
 0x4d5   :  { %v5513_v10 = vpop.eup %4493  ;;  %v3182_v16 = vmul.f32 1.442695, %v3139_v30  ;;  %v3176_v23 = vmul.f32 1.442695, %v3136_v56  ;;  %3238 = vadd.xlane.f32.xlu1 %v5511_v43 }
 0x4d6   :  { %3232 = vadd.xlane.f32.xlu0 %v5513_v10  ;;  %v3083_v24 = vpop.xlane.xlu1 %3082 }
 0x4d7   :  { %4499 = vpow2.f32 %v3182_v16  ;;  %v3137_v2 = vsub.f32 %v5362_v22, %v3083_v24 }
 0x4d8   :  { %v5518_v9 = vpop.eup %4495  ;;  %4501 = vpow2.f32 %v3176_v23 }
 0x4d9   :  { %v3178_v17 = vmul.f32 1.442695, %v3137_v2  ;;  %3234 = vadd.xlane.f32.xlu1 %v5518_v9 }
 0x4db   :  { %4503 = vpow2.f32 %v3178_v17 }
 0x4de   :  { %v3093_v12 = vpop.xlane.xlu0 %3092 }
 0x4df   :  { %v3142_v31 = vsub.f32 %v5370_v50, %v3093_v12 }
 0x4e0   :  { %v5522_v3 = vpop.eup %4497 }
 0x4e1   :  { %v3188_v34 = vmul.f32 1.442695, %v3142_v31  ;;  %3244 = vadd.xlane.f32.xlu0 %v5522_v3 }
 0x4e2   :  { %v3095_v19 = vpop.xlane.xlu1 %3094  ;;  %v3089_v25 = vpop.xlane.xlu0 %3088 }
 0x4e3   :  { %4505 = vpow2.f32 %v3188_v34  ;;  %v3143_v22 = vsub.f32 %v5376_v0, %v3095_v19  ;;  %v3140_v37 = vsub.f32 %v5380_v53, %v3089_v25 }
 0x4e4   :  { %v5527_v49 = vpop.eup %4499 }
 0x4e5   :  { %v5529_v27 = vpop.eup %4501  ;;  %v3190_v59 = vmul.f32 1.442695, %v3143_v22  ;;  %v3184_v39 = vmul.f32 1.442695, %v3140_v37  ;;  %3246 = vadd.xlane.f32.xlu1 %v5527_v49 }
 0x4e6   :  { %3240 = vadd.xlane.f32.xlu0 %v5529_v27  ;;  %v3091_v50 = vpop.xlane.xlu1 %3090 }
 0x4e7   :  { %4507 = vpow2.f32 %v3190_v59  ;;  %v3141_v42 = vsub.f32 %v5386_v57, %v3091_v50 }
 0x4e8   :  { %v5534_v51 = vpop.eup %4503  ;;  %4509 = vpow2.f32 %v3184_v39 }
 0x4e9   :  { %v3186_v0 = vmul.f32 1.442695, %v3141_v42  ;;  %3242 = vadd.xlane.f32.xlu1 %v5534_v51 }
 0x4eb   :  { %4511 = vpow2.f32 %v3186_v0 }
 0x4ee   :  { %v3101_v53 = vpop.xlane.xlu0 %3100 }
 0x4ef   :  { %v3146_v20 = vsub.f32 %v5394_v29, %v3101_v53 }
 0x4f0   :  { %v5538_v4 = vpop.eup %4505 }
 0x4f1   :  { %v3196_v47 = vmul.f32 1.442695, %v3146_v20  ;;  %3252 = vadd.xlane.f32.xlu0 %v5538_v4 }
 0x4f2   :  { %v3103_v52 = vpop.xlane.xlu1 %3102  ;;  %v3097_v8 = vpop.xlane.xlu0 %3096 }
 0x4f3   :  { %4513 = vpow2.f32 %v3196_v47  ;;  %v3147_v57 = vsub.f32 %v5400_v11, %v3103_v52  ;;  %v3144_v54 = vsub.f32 %v5404_v60, %v3097_v8 }
 0x4f4   :  { %v5543_v46 = vpop.eup %4507 }
 0x4f5   :  { %v5545_v21 = vpop.eup %4509  ;;  %v3198_v15 = vmul.f32 1.442695, %v3147_v57  ;;  %v3192_v7 = vmul.f32 1.442695, %v3144_v54  ;;  %3254 = vadd.xlane.f32.xlu1 %v5543_v46 }
 0x4f6   :  { %3248 = vadd.xlane.f32.xlu0 %v5545_v21  ;;  %v3099_v29 = vpop.xlane.xlu1 %3098 }
 0x4f7   :  { %4515 = vpow2.f32 %v3198_v15  ;;  %v3145_v40 = vsub.f32 %v5410_v6, %v3099_v29 }
 0x4f8   :  { %v5550_v55 = vpop.eup %4511  ;;  %4517 = vpow2.f32 %v3192_v7 }
 0x4f9   :  { %v3194_v11 = vmul.f32 1.442695, %v3145_v40  ;;  %3250 = vadd.xlane.f32.xlu1 %v5550_v55 }
 0x4fb   :  { %4519 = vpow2.f32 %v3194_v11 }
 0x4fe   :  { %v3109_v60 = vpop.xlane.xlu0 %3108 }
 0x4ff   :  { %v3150_v62 = vsub.f32 %v5418_v32, %v3109_v60 }
 0x500   :  { %v5554_v1 = vpop.eup %4513 }
 0x501   :  { %v3204_v28 = vmul.f32 1.442695, %v3150_v62  ;;  %3260 = vadd.xlane.f32.xlu0 %v5554_v1 }
 0x502   :  { %v3111_v30 = vpop.xlane.xlu1 %3110  ;;  %v3105_v56 = vpop.xlane.xlu0 %3104 }
 0x503   :  { %4521 = vpow2.f32 %v3204_v28  ;;  %v3151_v6 = vsub.f32 %v5424_v13, %v3111_v30  ;;  %v3148_v16 = vsub.f32 %v5428_v14, %v3105_v56 }
 0x504   :  { %v5559_v23 = vpop.eup %4515 }
 0x505   :  { %v5561_v24 = vpop.eup %4517  ;;  %v3206_v2 = vmul.f32 1.442695, %v3151_v6  ;;  %v3200_v17 = vmul.f32 1.442695, %v3148_v16  ;;  %3262 = vadd.xlane.f32.xlu1 %v5559_v23 }
 0x506   :  { %3256 = vadd.xlane.f32.xlu0 %v5561_v24  ;;  %v3107_v32 = vpop.xlane.xlu1 %3106 }
 0x507   :  { %4523 = vpow2.f32 %v3206_v2  ;;  %v3149_v12 = vsub.f32 %v5434_v35, %v3107_v32 }
 0x508   :  { %v5566_v31 = vpop.eup %4519  ;;  %4525 = vpow2.f32 %v3200_v17 }
 0x509   :  { %v3202_v13 = vmul.f32 1.442695, %v3149_v12  ;;  %3258 = vadd.xlane.f32.xlu1 %v5566_v31 }
 0x50b   :  { %4527 = vpow2.f32 %v3202_v13 }
 0x50e   :  { %v3117_v14 = vpop.xlane.xlu0 %3116 }
 0x50f   :  { %v3154_v34 = vsub.f32 %v5442_v26, %v3117_v14 }
 0x510   :  { %v5570_v19 = vpop.eup %4521 }
 0x511   :  { %v3212_v25 = vmul.f32 1.442695, %v3154_v34  ;;  %3268 = vadd.xlane.f32.xlu0 %v5570_v19 }
 0x512   :  { %v3119_v22 = vpop.xlane.xlu1 %3118  ;;  %v3113_v37 = vpop.xlane.xlu0 %3112 }
 0x513   :  { %4529 = vpow2.f32 %v3212_v25  ;;  %v3155_v35 = vsub.f32 %v5448_v58, %v3119_v22  ;;  %v3152_v59 = vsub.f32 %v5452_v61, %v3113_v37 }
 0x514   :  { %v5575_v39 = vpop.eup %4523 }
 0x515   :  { %v5577_v50 = vpop.eup %4525  ;;  %v3214_v42 = vmul.f32 1.442695, %v3155_v35  ;;  %v3208_v0 = vmul.f32 1.442695, %v3152_v59  ;;  %3270 = vadd.xlane.f32.xlu1 %v5575_v39 }
 0x516   :  { %3264 = vadd.xlane.f32.xlu0 %v5577_v50  ;;  %v3115_v26 = vpop.xlane.xlu1 %3114 }
 0x517   :  { %4531 = vpow2.f32 %v3214_v42  ;;  %v3153_v53 = vsub.f32 %v5458_v36, %v3115_v26 }
 0x518   :  { %v5582_v20 = vpop.eup %4527  ;;  %4533 = vpow2.f32 %v3208_v0 }
 0x519   :  { %v3210_v58 = vmul.f32 1.442695, %v3153_v53  ;;  %3266 = vadd.xlane.f32.xlu1 %v5582_v20 }
 0x51b   :  { %4535 = vpow2.f32 %v3210_v58 }
 0x520   :  { %v5585_v61 = vpop.eup %4529  ;;  %v3121_v47 = vpop.xlane.xlu0 %3120 }
 0x521   :  { %v3156_v52 = vsub.f32 %v5467_v18, %v3121_v47  ;;  %3276 = vadd.xlane.f32.xlu0 %v5585_v61 }
 0x523   :  { %v3216_v8 = vmul.f32 1.442695, %v3156_v52 }
 0x524   :  { %v5589_v57 = vpop.eup %4531  ;;  %v3123_v54 = vpop.xlane.xlu1 %3122 }
 0x525   :  { %v3125_v15 = vpop.xlane.xlu0 %3124  ;;  %v5591_v36 = vpop.eup %4533  ;;  %4537 = vpow2.f32 %v3216_v8  ;;  %v3157_v7 = vsub.f32 %v5472_v63, %v3123_v54  ;;  %3278 = vadd.xlane.f32.xlu1 %v5589_v57 }
 0x526   :  { %v3158_v29 = vsub.f32 %v5476_v44, %v3125_v15  ;;  %3272 = vadd.xlane.f32.xlu0 %v5591_v36 }
 0x527   :  { %v3218_v40 = vmul.f32 1.442695, %v3157_v7 }
 0x528   :  { %v3220_v18 = vmul.f32 1.442695, %v3158_v29  ;;  %v5597_v11 = vpop.eup %4535  ;;  %v3127_v60 = vpop.xlane.xlu1 %3126 }
 0x529   :  { %4539 = vpow2.f32 %v3218_v40  ;;  %v3159_v62 = vsub.f32 %v5482_v33, %v3127_v60  ;;  %3274 = vadd.xlane.f32.xlu1 %v5597_v11 }
 0x52a   :  { %4541 = vpow2.f32 %v3220_v18 }
 0x52b   :  { %v3222_v28 = vmul.f32 1.442695, %v3159_v62 }
 0x52d   :  { %4543 = vpow2.f32 %v3222_v28 }
 0x532   :  { %v5601_v63 = vpop.eup %4537 }
 0x533   :  { %3280 = vadd.xlane.f32.xlu0 %v5601_v63 }
 0x536   :  { %v5604_v44 = vpop.eup %4539 }
 0x537   :  { %v5606_v30 = vpop.eup %4541  ;;  %3282 = vadd.xlane.f32.xlu1 %v5604_v44 }
 0x538   :  { %3284 = vadd.xlane.f32.xlu0 %v5606_v30 }
 0x53a   :  { %v5610_v56 = vpop.eup %4543 }
 0x53b   :  { %3286 = vadd.xlane.f32.xlu1 %v5610_v56 }
 0x54a   :  { %v3229_v33 = vpop.xlane.xlu0 %3228 }
 0x54b   :  { %4545 = vrcp.f32 %v3229_v33 }
 0x54e   :  { %v3231_v6 = vpop.xlane.xlu1 %3230  ;;  %v3225_v16 = vpop.xlane.xlu0 %3224 }
 0x54f   :  { %4547 = vrcp.f32 %v3231_v6 }
 0x550   :  { %4549 = vrcp.f32 %v3225_v16 }
 0x552   :  { %v3227_v2 = vpop.xlane.xlu1 %3226 }
 0x553   :  { %4551 = vrcp.f32 %v3227_v2 }
 0x558   :  { %v4546_v17 = vpop.eup %4545 }
 0x559   :  { %v3293_v32 = vmul.f32 %v4546_v17, %v5490_v45 }
 0x55a   :  { %v3237_v12 = vpop.xlane.xlu0 %3236 }
 0x55b   :  { %3354 = vst [vmem:[#allocation11 + $0x10] sm:$0xff] %v3293_v32  ;;  %4553 = vrcp.f32 %v3237_v12 }
 0x55c   :  { %v4548_v13 = vpop.eup %4547 }
 0x55d   :  { %v4550_v14 = vpop.eup %4549  ;;  %v3295_v34 = vmul.f32 %v4548_v13, %v5497_v41 }
 0x55e   :  { %v3289_v25 = vmul.f32 %v4550_v14, %v5493_v48  ;;  %v3239_v22 = vpop.xlane.xlu1 %3238 }
 0x55f   :  { %3355 = vst [vmem:[#allocation11 + $0x18] sm:$0xff] %v3295_v34  ;;  %4555 = vrcp.f32 %v3239_v22  ;;  %v3233_v37 = vpop.xlane.xlu0 %3232 }
 0x560   :  { %v4552_v35 = vpop.eup %4551  ;;  %3352 = vst [vmem:[#allocation11] sm:$0xff] %v3289_v25  ;;  %4557 = vrcp.f32 %v3233_v37 }
 0x561   :  { %v3291_v59 = vmul.f32 %v4552_v35, %v5502_v38 }
 0x562   :  { %v3235_v42 = vpop.xlane.xlu1 %3234 }
 0x563   :  { %3353 = vst [vmem:[#allocation11 + $0x8] sm:$0xff] %v3291_v59  ;;  %4559 = vrcp.f32 %v3235_v42 }
 0x568   :  { %v4554_v45 = vpop.eup %4553 }
 0x569   :  { %v3301_v0 = vmul.f32 %v4554_v45, %v5506_v5 }
 0x56a   :  { %v3245_v26 = vpop.xlane.xlu0 %3244 }
 0x56b   :  { %3358 = vst [vmem:[#allocation11 + $0x30] sm:$0xff] %v3301_v0  ;;  %4561 = vrcp.f32 %v3245_v26 }
 0x56c   :  { %v4556_v41 = vpop.eup %4555 }
 0x56d   :  { %v4558_v48 = vpop.eup %4557  ;;  %v3303_v53 = vmul.f32 %v4556_v41, %v5511_v43 }
 0x56e   :  { %v3297_v58 = vmul.f32 %v4558_v48, %v5513_v10  ;;  %v3247_v47 = vpop.xlane.xlu1 %3246 }
 0x56f   :  { %3359 = vst [vmem:[#allocation11 + $0x38] sm:$0xff] %v3303_v53  ;;  %4563 = vrcp.f32 %v3247_v47  ;;  %v3241_v52 = vpop.xlane.xlu0 %3240 }
 0x570   :  { %v4560_v38 = vpop.eup %4559  ;;  %3356 = vst [vmem:[#allocation11 + $0x20] sm:$0xff] %v3297_v58  ;;  %4565 = vrcp.f32 %v3241_v52 }
 0x571   :  { %v3299_v8 = vmul.f32 %v4560_v38, %v5518_v9 }
 0x572   :  { %v3243_v54 = vpop.xlane.xlu1 %3242 }
 0x573   :  { %3357 = vst [vmem:[#allocation11 + $0x28] sm:$0xff] %v3299_v8  ;;  %4567 = vrcp.f32 %v3243_v54 }
 0x578   :  { %v4562_v5 = vpop.eup %4561 }
 0x579   :  { %v3309_v15 = vmul.f32 %v4562_v5, %v5522_v3 }
 0x57a   :  { %v3253_v7 = vpop.xlane.xlu0 %3252 }
 0x57b   :  { %3362 = vst [vmem:[#allocation11 + $0x50] sm:$0xff] %v3309_v15  ;;  %4569 = vrcp.f32 %v3253_v7 }
 0x57c   :  { %v4564_v43 = vpop.eup %4563 }
 0x57d   :  { %v4566_v10 = vpop.eup %4565  ;;  %v3311_v29 = vmul.f32 %v4564_v43, %v5527_v49 }
 0x57e   :  { %v3305_v40 = vmul.f32 %v4566_v10, %v5529_v27  ;;  %v3255_v18 = vpop.xlane.xlu1 %3254 }
 0x57f   :  { %3363 = vst [vmem:[#allocation11 + $0x58] sm:$0xff] %v3311_v29  ;;  %4571 = vrcp.f32 %v3255_v18  ;;  %v3249_v60 = vpop.xlane.xlu0 %3248 }
 0x580   :  { %v4568_v9 = vpop.eup %4567  ;;  %3360 = vst [vmem:[#allocation11 + $0x40] sm:$0xff] %v3305_v40  ;;  %4573 = vrcp.f32 %v3249_v60 }
 0x581   :  { %v3307_v62 = vmul.f32 %v4568_v9, %v5534_v51 }
 0x582   :  { %v3251_v28 = vpop.xlane.xlu1 %3250 }
 0x583   :  { %3361 = vst [vmem:[#allocation11 + $0x48] sm:$0xff] %v3307_v62  ;;  %4575 = vrcp.f32 %v3251_v28 }
 0x588   :  { %v4570_v3 = vpop.eup %4569 }
 0x589   :  { %v3317_v33 = vmul.f32 %v4570_v3, %v5538_v4 }
 0x58a   :  { %v3261_v6 = vpop.xlane.xlu0 %3260 }
 0x58b   :  { %3366 = vst [vmem:[#allocation11 + $0x70] sm:$0xff] %v3317_v33  ;;  %4577 = vrcp.f32 %v3261_v6 }
 0x58c   :  { %v4572_v49 = vpop.eup %4571 }
 0x58d   :  { %v4574_v27 = vpop.eup %4573  ;;  %v3319_v16 = vmul.f32 %v4572_v49, %v5543_v46 }
 0x58e   :  { %v3313_v2 = vmul.f32 %v4574_v27, %v5545_v21  ;;  %v3263_v17 = vpop.xlane.xlu1 %3262 }
 0x58f   :  { %3367 = vst [vmem:[#allocation11 + $0x78] sm:$0xff] %v3319_v16  ;;  %4579 = vrcp.f32 %v3263_v17  ;;  %v3257_v32 = vpop.xlane.xlu0 %3256 }
 0x590   :  { %v4576_v51 = vpop.eup %4575  ;;  %3364 = vst [vmem:[#allocation11 + $0x60] sm:$0xff] %v3313_v2  ;;  %4581 = vrcp.f32 %v3257_v32 }
 0x591   :  { %v3315_v12 = vmul.f32 %v4576_v51, %v5550_v55 }
 0x592   :  { %v3259_v13 = vpop.xlane.xlu1 %3258 }
 0x593   :  { %3365 = vst [vmem:[#allocation11 + $0x68] sm:$0xff] %v3315_v12  ;;  %4583 = vrcp.f32 %v3259_v13 }
 0x598   :  { %v4578_v4 = vpop.eup %4577 }
 0x599   :  { %v3325_v14 = vmul.f32 %v4578_v4, %v5554_v1 }
 0x59a   :  { %v3269_v34 = vpop.xlane.xlu0 %3268 }
 0x59b   :  { %3370 = vst [vmem:[#allocation11 + $0x90] sm:$0xff] %v3325_v14  ;;  %4585 = vrcp.f32 %v3269_v34 }
 0x59c   :  { %v4580_v46 = vpop.eup %4579 }
 0x59d   :  { %v4582_v21 = vpop.eup %4581  ;;  %v3327_v25 = vmul.f32 %v4580_v46, %v5559_v23 }
 0x59e   :  { %v3321_v22 = vmul.f32 %v4582_v21, %v5561_v24  ;;  %v3271_v37 = vpop.xlane.xlu1 %3270 }
 0x59f   :  { %3371 = vst [vmem:[#allocation11 + $0x98] sm:$0xff] %v3327_v25  ;;  %4587 = vrcp.f32 %v3271_v37  ;;  %v3265_v35 = vpop.xlane.xlu0 %3264 }
 0x5a0   :  { %v4584_v55 = vpop.eup %4583  ;;  %3368 = vst [vmem:[#allocation11 + $0x80] sm:$0xff] %v3321_v22  ;;  %4589 = vrcp.f32 %v3265_v35 }
 0x5a1   :  { %v3323_v59 = vmul.f32 %v4584_v55, %v5566_v31 }
 0x5a2   :  { %v3267_v42 = vpop.xlane.xlu1 %3266 }
 0x5a3   :  { %3369 = vst [vmem:[#allocation11 + $0x88] sm:$0xff] %v3323_v59  ;;  %4591 = vrcp.f32 %v3267_v42 }
 0x5a8   :  { %v4586_v1 = vpop.eup %4585 }
 0x5a9   :  { %v3333_v45 = vmul.f32 %v4586_v1, %v5570_v19 }
 0x5aa   :  { %v3277_v0 = vpop.xlane.xlu0 %3276 }
 0x5ab   :  { %3374 = vst [vmem:[#allocation11 + $0xb0] sm:$0xff] %v3333_v45  ;;  %4593 = vrcp.f32 %v3277_v0 }
 0x5ac   :  { %v4588_v23 = vpop.eup %4587 }
 0x5ad   :  { %v4590_v24 = vpop.eup %4589  ;;  %v3335_v26 = vmul.f32 %v4588_v23, %v5575_v39 }
 0x5ae   :  { %v3329_v41 = vmul.f32 %v4590_v24, %v5577_v50  ;;  %v3279_v48 = vpop.xlane.xlu1 %3278 }
 0x5af   :  { %3375 = vst [vmem:[#allocation11 + $0xb8] sm:$0xff] %v3335_v26  ;;  %4595 = vrcp.f32 %v3279_v48  ;;  %v3273_v53 = vpop.xlane.xlu0 %3272 }
 0x5b0   :  { %v4592_v31 = vpop.eup %4591  ;;  %3372 = vst [vmem:[#allocation11 + $0xa0] sm:$0xff] %v3329_v41  ;;  %4597 = vrcp.f32 %v3273_v53 }
 0x5b1   :  { %v3331_v58 = vmul.f32 %v4592_v31, %v5582_v20 }
 0x5b2   :  { %v3275_v47 = vpop.xlane.xlu1 %3274 }
 0x5b3   :  { %3373 = vst [vmem:[#allocation11 + $0xa8] sm:$0xff] %v3331_v58  ;;  %4599 = vrcp.f32 %v3275_v47 }
 0x5b8   :  { %v4594_v19 = vpop.eup %4593 }
 0x5b9   :  { %v3341_v52 = vmul.f32 %v4594_v19, %v5585_v61 }
 0x5bb   :  { %3378 = vst [vmem:[#allocation11 + $0xd0] sm:$0xff] %v3341_v52 }
 0x5bc   :  { %v4596_v38 = vpop.eup %4595  ;;  %v3281_v39 = vpop.xlane.xlu0 %3280 }
 0x5bd   :  { %v4598_v8 = vpop.eup %4597  ;;  %v3343_v50 = vmul.f32 %v4596_v38, %v5589_v57  ;;  %4601 = vrcp.f32 %v3281_v39 }
 0x5be   :  { %v3337_v54 = vmul.f32 %v4598_v8, %v5591_v36 }
 0x5bf   :  { %3379 = vst [vmem:[#allocation11 + $0xd8] sm:$0xff] %v3343_v50 }
 0x5c0   :  { %v4600_v5 = vpop.eup %4599  ;;  %3376 = vst [vmem:[#allocation11 + $0xc0] sm:$0xff] %v3337_v54  ;;  %v3283_v15 = vpop.xlane.xlu1 %3282 }
 0x5c1   :  { %v3339_v20 = vmul.f32 %v4600_v5, %v5597_v11  ;;  %4603 = vrcp.f32 %v3283_v15  ;;  %v3285_v7 = vpop.xlane.xlu0 %3284 }
 0x5c2   :  { %4605 = vrcp.f32 %v3285_v7 }
 0x5c3   :  { %3377 = vst [vmem:[#allocation11 + $0xc8] sm:$0xff] %v3339_v20 }
 0x5c4   :  { %v3287_v61 = vpop.xlane.xlu1 %3286 }
 0x5c5   :  { %4607 = vrcp.f32 %v3287_v61 }
 0x5ca   :  { %v4602_v43 = vpop.eup %4601 }
 0x5cb   :  { %v3345_v10 = vmul.f32 %v4602_v43, %v5601_v63 }
 0x5cd   :  { %3380 = vst [vmem:[#allocation11 + $0xe0] sm:$0xff] %v3345_v10 }
 0x5ce   :  { %v4604_v57 = vpop.eup %4603 }
 0x5cf   :  { %v4606_v29 = vpop.eup %4605  ;;  %v3347_v36 = vmul.f32 %v4604_v57, %v5604_v44 }
 0x5d0   :  { %v3349_v40 = vmul.f32 %v4606_v29, %v5606_v30 }
 0x5d1   :  { %3381 = vst [vmem:[#allocation11 + $0xe8] sm:$0xff] %v3347_v36 }
 0x5d2   :  { %v4608_v11 = vpop.eup %4607  ;;  %3382 = vst [vmem:[#allocation11 + $0xf0] sm:$0xff] %v3349_v40 }
 0x5d3   :  { %v3351_v18 = vmul.f32 %v4608_v11, %v5610_v56 }
 0x5d5   :  { %3383 = vst [vmem:[#allocation11 + $0xf8] sm:$0xff] %v3351_v18 }
 0x5d6   :  { %4720 = shalt.err (!%p4717_p1)
}
 0x5d7   :  { %s4747_s27 = smov 128   ;;  %s4748_s9 = smov 8  }
 0x5d8   :  { %3395 = dma.vmem_to_hbm [thread:$0]  %s3390_s24, 4096, %s5663_s15, [#allocation4], %s4747_s27, %s4747_s27, %s4748_s9  }
 0x5d9   :  { %4735 = dma.done.wait [#allocation4], 4096  }
 0x5da   :  { %4736 = vsyncadd [#allocation4], 4294963200 }
 0x5db   :  { %3399 = vsyncpa [#allocation3], 1 }
 0x5dc   :  { %3400 = vsyncpa [#allocation6], 1 }
 0x5dd   :  { %3401 = vsyncpa [#allocation9], 1 }
 0x5de   :  { %3402 = vsyncpa [#allocation4], 1 }

</bundles_post_ra>
